<compile_context>
chip_gen: v6e
topology: v6e:2x2x1
jax: 0.10.0
libtpu: 0.0.40
codegen_flags: <defaults>
</compile_context>

<pallas_src>
import functools

import jax
import jax.numpy as jnp
from jax import lax
from jax.experimental import pallas as pl
from jax.experimental.pallas import tpu as pltpu

_LANE = 128
_SUBLANE = 8
_V7X_VMEM_PER_TC = 64 * 1024 * 1024


def _round_up(x, m):
    return (x + m - 1) // m * m


def _mosaic_params(dimension_semantics, vmem_need_bytes):
    # Derive the scoped-VMEM cap from what the blocks actually need (2x
    # headroom), capped at v7x's 64 MiB per-TC budget so the same code is
    # safe on v5e/v6e (128 MiB) and v7x.
    limit = int(min(_V7X_VMEM_PER_TC,
                    max(2 * vmem_need_bytes, 16 * 1024 * 1024)))
    return pltpu.CompilerParams(
        dimension_semantics=dimension_semantics,
        vmem_limit_bytes=limit,
    )


def _pick_tile_m(M, max_tile=256, min_steps=4):
    # Largest tile <= max_tile that still gives >= min_steps grid steps, so
    # DMA/compute overlap exists and v7x's two TensorCores both get work.
    tm = min(max_tile, M)
    while pl.cdiv(M, tm) < min_steps and tm > _SUBLANE:
        tm = max(_SUBLANE, tm // 2)
    return tm


def _pick_tile_rows(B, H, min_steps=4, max_rows=8):
    tr = min(max_rows, H)
    while tr > 1 and (H % tr != 0 or B * (H // tr) < min_steps):
        tr -= 1
    return tr


# ----------------------------------------------------------------------------
# Kernels
# ----------------------------------------------------------------------------
def _gemm_bn_kernel(p_ref, w_ref, shift_ref, o_ref, *, relu):
    # bf16 x bf16 -> f32 accumulation on the MXU; BN shift (scale folded into
    # the weights) + ReLU on the VPU in f32; single bf16 cast at the store.
    acc = jnp.dot(p_ref[...], w_ref[...], preferred_element_type=jnp.float32)
    y = acc + shift_ref[...]
    if relu:
        y = jnp.maximum(y, 0.0)
    o_ref[...] = y.astype(o_ref.dtype)


def _conv3x3_taps(xp_ref, w_ref, tr, wo, cout):
    # In-kernel im2col: nine shifted slices of the VMEM-resident padded image,
    # each matmul'd against its (Cin, Cout) weight slab into one f32 acc.
    cin = xp_ref.shape[-1]
    r0 = pl.program_id(1) * tr
    acc = jnp.zeros((tr * wo, cout), jnp.float32)
    for di in range(3):
        for dj in range(3):
            win = xp_ref[:, pl.ds(r0 + di, tr), pl.ds(dj, wo), :]
            acc = acc + jnp.dot(win.reshape(tr * wo, cin),
                                w_ref[di * 3 + dj],
                                preferred_element_type=jnp.float32)
    return acc


def _conv3x3_kernel(xp_ref, w_ref, shift_ref, o_ref, *, relu):
    _, tr, wo, cout = o_ref.shape
    y = _conv3x3_taps(xp_ref, w_ref, tr, wo, cout) + shift_ref[...]
    if relu:
        y = jnp.maximum(y, 0.0)
    o_ref[...] = y.reshape(1, tr, wo, cout).astype(o_ref.dtype)


def _conv3x3_res_kernel(xp_ref, w_ref, shift_ref, res_ref, o_ref, *, relu):
    _, tr, wo, cout = o_ref.shape
    y = _conv3x3_taps(xp_ref, w_ref, tr, wo, cout) + shift_ref[...]
    y = y + res_ref[...].reshape(tr * wo, cout).astype(jnp.float32)
    if relu:
        y = jnp.maximum(y, 0.0)
    o_ref[...] = y.reshape(1, tr, wo, cout).astype(o_ref.dtype)


def _maxpool_kernel(win_ref, o_ref, *, kk):
    # win_ref: (KK, tm, C) with taps on the leading axis -> each win_ref[k] is
    # a dense (tm, C) load; pure VPU max chain, C stays on lanes.
    m = win_ref[0]
    for k in range(1, kk):
        m = jnp.maximum(m, win_ref[k])
    o_ref[...] = m


# ----------------------------------------------------------------------------
# Glue
# ----------------------------------------------------------------------------
def _im2col(x_nhwc, kh, kw, stride, pad, pad_value=0.0):
    B, H, W, C = x_nhwc.shape
    xp = jnp.pad(x_nhwc, ((0, 0), (pad, pad), (pad, pad), (0, 0)),
                 constant_values=pad_value)
    Ho = (H + 2 * pad - kh) // stride + 1
    Wo = (W + 2 * pad - kw) // stride + 1
    cols = []
    for i in range(kh):
        for j in range(kw):
            cols.append(lax.slice(
                xp, (0, i, j, 0),
                (B, i + stride * (Ho - 1) + 1, j + stride * (Wo - 1) + 1, C),
                (1, stride, stride, 1)))
    return cols, Ho, Wo


def conv_bn_gemm(x_nhwc, w_hwio, scale, shift, *, stride, pad, relu):
    """im2col + MXU GEMM conv (used for the 7x7/s2 stem; x is already bf16)."""
    B, H, W, Cin = x_nhwc.shape
    kh, kw, _, Cout = w_hwio.shape
    cols, Ho, Wo = _im2col(x_nhwc, kh, kw, stride, pad)
    patches = jnp.stack(cols, axis=3)            # (B, Ho, Wo, kh*kw, C), bf16
    M = B * Ho * Wo
    Kd = kh * kw * Cin                           # no K pad: full-extent last dim
    Np = _round_up(Cout, _LANE)                  # lane-dense output

    w2 = (w_hwio.reshape(Kd, Cout).astype(jnp.float32)
          * scale.reshape(1, Cout).astype(jnp.float32))
    shift2 = shift.reshape(1, Cout).astype(jnp.float32)
    if Np != Cout:
        w2 = jnp.pad(w2, ((0, 0), (0, Np - Cout)))
        shift2 = jnp.pad(shift2, ((0, 0), (0, Np - Cout)))
    w2 = w2.astype(jnp.bfloat16)

    p2 = patches.reshape(M, Kd)                  # bf16 LHS, streamed by tiles
    tm = _pick_tile_m(M)
    grid = (pl.cdiv(M, tm),)
    # NOTE: if M % tm != 0 the trailing LHS block reads padded rows; the
    # corresponding output rows fall outside (M, Np) and are discarded, so the
    # result stays correct (no cross-M reduction consumes them).
    vmem_need = 2 * (tm * Kd * 2 + tm * Np * 2) + Kd * Np * 2 + Np * 4
    cost = pl.CostEstimate(
        flops=2 * M * Kd * Np, transcendentals=0,
        bytes_accessed=M * Kd * 2 + Kd * Np * 2 + Np * 4 + M * Np * 2)

    out = pl.pallas_call(
        functools.partial(_gemm_bn_kernel, relu=relu),
        out_shape=jax.ShapeDtypeStruct((M, Np), jnp.bfloat16),
        grid=grid,
        in_specs=[
            pl.BlockSpec((tm, Kd), lambda i: (i, 0)),    # streamed LHS tiles
            pl.BlockSpec((Kd, Np), lambda i: (0, 0)),    # resident folded weights
            pl.BlockSpec((1, Np), lambda i: (0, 0)),     # resident BN shift
        ],
        out_specs=pl.BlockSpec((tm, Np), lambda i: (i, 0)),
        compiler_params=_mosaic_params(("parallel",), vmem_need),
        cost_estimate=cost,
    )(p2, w2, shift2)

    if Np != Cout:
        out = out[:, :Cout]
    return out.reshape(B, Ho, Wo, Cout)


def conv3x3_bn(x_nhwc, w_hwio, scale, shift, *, relu, residual=None):
    """Fused 3x3/s1/p1 conv + BN + (residual) + ReLU with in-kernel im2col."""
    B, H, W, Cin = x_nhwc.shape
    Cout = w_hwio.shape[-1]
    assert w_hwio.shape[:2] == (3, 3)
    assert Cout % _LANE == 0, "expect lane-dense channel count"

    xp = jnp.pad(x_nhwc, ((0, 0), (1, 1), (1, 1), (0, 0)))   # bf16, one HBM copy
    Hp, Wp = H + 2, W + 2

    w2 = (w_hwio.astype(jnp.float32)
          * scale.reshape(1, 1, 1, Cout).astype(jnp.float32)).astype(jnp.bfloat16)
    w2 = w2.reshape(9, Cin, Cout)                # tap-major, VMEM-resident
    shift2 = shift.reshape(1, Cout).astype(jnp.float32)

    tr = _pick_tile_rows(B, H)
    grid = (B, H // tr)

    vmem_need = (2 * Hp * Wp * Cin * 2 + 9 * Cin * Cout * 2 + Cout * 4
                 + 2 * tr * W * Cout * 2
                 + (2 * tr * W * Cout * 2 if residual is not None else 0))
    cost = pl.CostEstimate(
        flops=2 * B * H * W * 9 * Cin * Cout, transcendentals=0,
        bytes_accessed=(B * Hp * Wp * Cin * 2 + 9 * Cin * Cout * 2 + Cout * 4
                        + B * H * W * Cout * 2
                        * (2 if residual is not None else 1)))

    in_specs = [
        pl.BlockSpec((1, Hp, Wp, Cin), lambda b, r: (b, 0, 0, 0)),  # resident image
        pl.BlockSpec((9, Cin, Cout), lambda b, r: (0, 0, 0)),       # resident weights
        pl.BlockSpec((1, Cout), lambda b, r: (0, 0)),               # resident shift
    ]
    args = [xp, w2, shift2]
    if residual is None:
        kernel = functools.partial(_conv3x3_kernel, relu=relu)
    else:
        in_specs.append(
            pl.BlockSpec((1, tr, W, Cout), lambda b, r: (b, r, 0, 0)))
        args.append(residual.astype(jnp.bfloat16))                  # bf16 stream
        kernel = functools.partial(_conv3x3_res_kernel, relu=relu)

    return pl.pallas_call(
        kernel,
        out_shape=jax.ShapeDtypeStruct((B, H, W, Cout), jnp.bfloat16),
        grid=grid,
        in_specs=in_specs,
        out_specs=pl.BlockSpec((1, tr, W, Cout), lambda b, r: (b, r, 0, 0)),
        compiler_params=_mosaic_params(("parallel", "parallel"), vmem_need),
        cost_estimate=cost,
    )(*args)


def maxpool(x_nhwc, *, ksize, stride, pad):
    """3x3/s2 max pool; taps stacked on a leading axis for dense tap loads."""
    B, H, W, C = x_nhwc.shape
    cols, Ho, Wo = _im2col(x_nhwc, ksize, ksize, stride, pad,
                           pad_value=-jnp.inf)
    KK = ksize * ksize
    M = B * Ho * Wo
    wins = jnp.stack(cols, axis=0).reshape(KK, M, C)     # bf16, taps leading
    tm = _pick_tile_m(M)
    grid = (pl.cdiv(M, tm),)
    vmem_need = 2 * (KK * tm * C * 2 + tm * C * 2)
    out = pl.pallas_call(
        functools.partial(_maxpool_kernel, kk=KK),
        out_shape=jax.ShapeDtypeStruct((M, C), x_nhwc.dtype),
        grid=grid,
        in_specs=[pl.BlockSpec((KK, tm, C), lambda i: (0, i, 0))],
        out_specs=pl.BlockSpec((tm, C), lambda i: (i, 0)),
        compiler_params=_mosaic_params(("parallel",), vmem_need),
        cost_estimate=pl.CostEstimate(
            flops=M * KK * C, transcendentals=0,
            bytes_accessed=(M * KK * C + M * C) * 2),
    )(wins)
    return out.reshape(B, Ho, Wo, C)


# ----------------------------------------------------------------------------
# Parameters (deterministic synthetic init — no checkpoint loading possible)
# ----------------------------------------------------------------------------
def _bn_fold(key, c, eps=1e-5):
    k1, k2, k3, k4 = jax.random.split(key, 4)
    gamma = jax.random.uniform(k1, (c,), jnp.float32, 0.5, 1.5)
    beta = 0.1 * jax.random.normal(k2, (c,), jnp.float32)
    mean = 0.1 * jax.random.normal(k3, (c,), jnp.float32)
    var = jax.random.uniform(k4, (c,), jnp.float32, 0.5, 1.5)
    scale = gamma / jnp.sqrt(var + eps)
    shift = beta - mean * scale
    return scale, shift


def init_params(key, c_in=3, c_feat=128):
    # c_feat = 128 keeps every GEMM N lane-dense (and fully fills v5e's MXU;
    # on v6e/v7x N=128 half-fills the 256-wide MXU but the kernels are
    # memory-bound at these sizes).
    ks = jax.random.split(key, 6)
    params = {}
    params["conv1_w"] = 0.1 * jax.random.normal(ks[0], (7, 7, c_in, c_feat),
                                                jnp.float32)
    params["bn1_scale"], params["bn1_shift"] = _bn_fold(ks[1], c_feat)
    params["l1_conv1_w"] = 0.05 * jax.random.normal(ks[2], (3, 3, c_feat, c_feat),
                                                    jnp.float32)
    params["l1_bn1_scale"], params["l1_bn1_shift"] = _bn_fold(ks[3], c_feat)
    params["l1_conv2_w"] = 0.05 * jax.random.normal(ks[4], (3, 3, c_feat, c_feat),
                                                    jnp.float32)
    params["l1_bn2_scale"], params["l1_bn2_shift"] = _bn_fold(ks[5], c_feat)
    return params


# ----------------------------------------------------------------------------
# VisualExtractor.forward equivalent
# ----------------------------------------------------------------------------
def visual_extractor_forward(images_nchw, params):
    # PyTorch NCHW -> NHWC; bf16 activations end-to-end (f32 accumulation and
    # epilogues inside the kernels).
    x = jnp.transpose(images_nchw, (0, 2, 3, 1)).astype(jnp.bfloat16)
    # stem: conv7x7/s2 + BN + ReLU (im2col GEMM, Kd = 49*3 = 147)
    x = conv_bn_gemm(x, params["conv1_w"], params["bn1_scale"],
                     params["bn1_shift"], stride=2, pad=3, relu=True)
    # maxpool 3x3/s2
    x = maxpool(x, ksize=3, stride=2, pad=1)
    # BasicBlock: two fused 3x3 convs with in-kernel im2col
    identity = x
    y = conv3x3_bn(x, params["l1_conv1_w"], params["l1_bn1_scale"],
                   params["l1_bn1_shift"], relu=True)
    y = conv3x3_bn(y, params["l1_conv2_w"], params["l1_bn2_scale"],
                   params["l1_bn2_shift"], relu=True, residual=identity)
    # TODO(synk): fuse both BasicBlock convs (+residual+ReLU) into one
    # pallas_call with halo recomputation of conv1 rows.
    # torch: reshape(B, C, H*W).permute(0, 2, 1) == NHWC reshape (B, H*W, C)
    B, H, W, C = y.shape
    return y.reshape(B, H * W, C).astype(jnp.float32)


# ----------------------------------------------------------------------------
# Pure-JAX reference (same bf16 operand / f32 accumulation precision)
# ----------------------------------------------------------------------------
def _ref_forward(images_nchw, params):
    x = jnp.transpose(images_nchw, (0, 2, 3, 1)).astype(jnp.bfloat16)

    def conv_bn_ref(x, w, scale, shift, s, p, relu, residual=None):
        wf = (w.astype(jnp.float32) * scale.reshape(1, 1, 1, -1)).astype(jnp.bfloat16)
        y = lax.conv_general_dilated(
            x, wf, window_strides=(s, s), padding=((p, p), (p, p)),
            dimension_numbers=("NHWC", "HWIO", "NHWC"),
            preferred_element_type=jnp.float32)
        y = y + shift.astype(jnp.float32)
        if residual is not None:
            y = y + residual.astype(jnp.float32)
        if relu:
            y = jnp.maximum(y, 0.0)
        return y.astype(jnp.bfloat16)

    x = conv_bn_ref(x, params["conv1_w"], params["bn1_scale"],
                    params["bn1_shift"], 2, 3, True)
    x32 = lax.reduce_window(x.astype(jnp.float32), -jnp.inf, lax.max,
                            (1, 3, 3, 1), (1, 2, 2, 1),
                            ((0, 0), (1, 1), (1, 1), (0, 0)))
    x = x32.astype(jnp.bfloat16)
    idt = x
    y = conv_bn_ref(x, params["l1_conv1_w"], params["l1_bn1_scale"],
                    params["l1_bn1_shift"], 1, 1, True)
    y = conv_bn_ref(y, params["l1_conv2_w"], params["l1_bn2_scale"],
                    params["l1_bn2_shift"], 1, 1, True, residual=idt)
    B, H, W, C = y.shape
    return y.reshape(B, H * W, C).astype(jnp.float32)


if __name__ == "__main__":
    key = jax.random.PRNGKey(0)
    k_img, k_par = jax.random.split(key)
    # PyTorch-style NCHW images: batch=2, 3 channels, 64x64 spatial
    # (stem /2 then maxpool /2 -> 16x16 patches, 128 features).
    images = jax.random.normal(k_img, (2, 3, 64, 64), jnp.float32)
    params = init_params(k_par, c_in=3, c_feat=128)

    fwd = jax.jit(visual_extractor_forward)
    ref_fwd = jax.jit(_ref_forward)

    out = jax.block_until_ready(fwd(images, params))
    ref = jax.block_until_ready(ref_fwd(images, params))

    assert out.shape == (2, 16 * 16, 128), out.shape
    max_err = float(jnp.max(jnp.abs(out - ref)))
    assert jnp.allclose(out, ref, atol=1e-1, rtol=5e-2), max_err

    print("KERNEL_OK")
</pallas_src>

<mosaic_0001>
module attributes {stable_mosaic.version = 11 : i64} {
  func.func @_gemm_bn_kernel(%arg0: i32, %arg1: memref<256x147xbf16, #tpu.memory_space<vmem>>, %arg2: memref<147x128xbf16, #tpu.memory_space<vmem>>, %arg3: memref<1x128xf32, #tpu.memory_space<vmem>>, %arg4: memref<256x128xbf16, #tpu.memory_space<vmem>>) attributes {dimension_semantics = [#tpu.dimension_semantics<parallel>], iteration_bounds = array<i64: 8>, scalar_prefetch = 0 : i64, scratch_operands = 0 : i64, tpu.core_type = #tpu.core_type<tc>, window_params = [{transform_indices = @transform_0, window_bounds = array<i64: 256, 147>}, {pipeline_mode = #tpu.pipeline_mode<synchronous>, transform_indices = @transform_1, window_bounds = array<i64: 147, 128>}, {pipeline_mode = #tpu.pipeline_mode<synchronous>, transform_indices = @transform_2, window_bounds = array<i64: 1, 128>}, {transform_indices = @transform_3, window_bounds = array<i64: 256, 128>}]} {
    %c0 = arith.constant 0 : index
    %c0_0 = arith.constant 0 : index
    %0 = vector.load %arg1[%c0, %c0_0] : memref<256x147xbf16, #tpu.memory_space<vmem>>, vector<256x147xbf16>
    %c0_1 = arith.constant 0 : index
    %c0_2 = arith.constant 0 : index
    %1 = vector.load %arg2[%c0_1, %c0_2] : memref<147x128xbf16, #tpu.memory_space<vmem>>, vector<147x128xbf16>
    %cst = arith.constant dense<0.000000e+00> : vector<256x128xf32>
    %2 = tpu.matmul %0, %1, %cst {dimension_numbers = #tpu.dot_dimension_numbers<[1], [0], [0], [1], [0, 0, 1, 1], [], []>} : vector<256x147xbf16>, vector<147x128xbf16>, vector<256x128xf32> -> vector<256x128xf32>
    %c0_3 = arith.constant 0 : index
    %c0_4 = arith.constant 0 : index
    %3 = vector.load %arg3[%c0_3, %c0_4] : memref<1x128xf32, #tpu.memory_space<vmem>>, vector<1x128xf32>
    %4 = vector.broadcast %3 : vector<1x128xf32> to vector<256x128xf32>
    %5 = arith.addf %2, %4 : vector<256x128xf32>
    %cst_5 = arith.constant 0.000000e+00 : f32
    %6 = vector.broadcast %cst_5 : f32 to vector<256x128xf32>
    %7 = arith.maximumf %5, %6 : vector<256x128xf32>
    %8 = arith.truncf %7 : vector<256x128xf32> to vector<256x128xbf16>
    %c0_6 = arith.constant 0 : index
    %c0_7 = arith.constant 0 : index
    %9 = vector.load %arg4[%c0_6, %c0_7] : memref<256x128xbf16, #tpu.memory_space<vmem>>, vector<256x128xbf16>
    tpu.vector_store %arg4[%c0_6, %c0_7], %8 {strides = array<i32>} : memref<256x128xbf16, #tpu.memory_space<vmem>>, vector<256x128xbf16>,
    return
  }
  func.func @transform_0(%arg0: i32) -> (i32, i32) {
    %c0_i32 = arith.constant 0 : i32
    %c0_i32_0 = arith.constant 0 : i32
    return %arg0, %c0_i32 : i32, i32
  }
  func.func @transform_1(%arg0: i32) -> (i32, i32) {
    %c0_i32 = arith.constant 0 : i32
    %c0_i32_0 = arith.constant 0 : i32
    %c0_i32_1 = arith.constant 0 : i32
    return %c0_i32, %c0_i32_0 : i32, i32
  }
  func.func @transform_2(%arg0: i32) -> (i32, i32) {
    %c0_i32 = arith.constant 0 : i32
    %c0_i32_0 = arith.constant 0 : i32
    %c0_i32_1 = arith.constant 0 : i32
    return %c0_i32, %c0_i32_0 : i32, i32
  }
  func.func @transform_3(%arg0: i32) -> (i32, i32) {
    %c0_i32 = arith.constant 0 : i32
    %c0_i32_0 = arith.constant 0 : i32
    return %arg0, %c0_i32 : i32, i32
  }
}

module attributes {stable_mosaic.version = 11 : i64} {
  func.func @_maxpool_kernel(%arg0: i32, %arg1: memref<9x128x128xbf16, #tpu.memory_space<vmem>>, %arg2: memref<128x128xbf16, #tpu.memory_space<vmem>>) attributes {dimension_semantics = [#tpu.dimension_semantics<parallel>], iteration_bounds = array<i64: 4>, scalar_prefetch = 0 : i64, scratch_operands = 0 : i64, tpu.core_type = #tpu.core_type<tc>, window_params = [{transform_indices = @transform_0, window_bounds = array<i64: 9, 128, 128>}, {transform_indices = @transform_1, window_bounds = array<i64: 128, 128>}]} {
    %c0 = arith.constant 0 : index
    %c0_0 = arith.constant 0 : index
    %c0_1 = arith.constant 0 : index
    %0 = vector.load %arg1[%c0, %c0_0, %c0_1] : memref<9x128x128xbf16, #tpu.memory_space<vmem>>, vector<1x128x128xbf16>
    %1 = vector.shape_cast %0 : vector<1x128x128xbf16> to vector<128x128xbf16>
    %c1 = arith.constant 1 : index
    %c0_2 = arith.constant 0 : index
    %c0_3 = arith.constant 0 : index
    %2 = vector.load %arg1[%c1, %c0_2, %c0_3] : memref<9x128x128xbf16, #tpu.memory_space<vmem>>, vector<1x128x128xbf16>
    %3 = vector.shape_cast %2 : vector<1x128x128xbf16> to vector<128x128xbf16>
    %4 = arith.maximumf %1, %3 : vector<128x128xbf16>
    %c2 = arith.constant 2 : index
    %c0_4 = arith.constant 0 : index
    %c0_5 = arith.constant 0 : index
    %5 = vector.load %arg1[%c2, %c0_4, %c0_5] : memref<9x128x128xbf16, #tpu.memory_space<vmem>>, vector<1x128x128xbf16>
    %6 = vector.shape_cast %5 : vector<1x128x128xbf16> to vector<128x128xbf16>
    %7 = arith.maximumf %4, %6 : vector<128x128xbf16>
    %c3 = arith.constant 3 : index
    %c0_6 = arith.constant 0 : index
    %c0_7 = arith.constant 0 : index
    %8 = vector.load %arg1[%c3, %c0_6, %c0_7] : memref<9x128x128xbf16, #tpu.memory_space<vmem>>, vector<1x128x128xbf16>
    %9 = vector.shape_cast %8 : vector<1x128x128xbf16> to vector<128x128xbf16>
    %10 = arith.maximumf %7, %9 : vector<128x128xbf16>
    %c4 = arith.constant 4 : index
    %c0_8 = arith.constant 0 : index
    %c0_9 = arith.constant 0 : index
    %11 = vector.load %arg1[%c4, %c0_8, %c0_9] : memref<9x128x128xbf16, #tpu.memory_space<vmem>>, vector<1x128x128xbf16>
    %12 = vector.shape_cast %11 : vector<1x128x128xbf16> to vector<128x128xbf16>
    %13 = arith.maximumf %10, %12 : vector<128x128xbf16>
    %c5 = arith.constant 5 : index
    %c0_10 = arith.constant 0 : index
    %c0_11 = arith.constant 0 : index
    %14 = vector.load %arg1[%c5, %c0_10, %c0_11] : memref<9x128x128xbf16, #tpu.memory_space<vmem>>, vector<1x128x128xbf16>
    %15 = vector.shape_cast %14 : vector<1x128x128xbf16> to vector<128x128xbf16>
    %16 = arith.maximumf %13, %15 : vector<128x128xbf16>
    %c6 = arith.constant 6 : index
    %c0_12 = arith.constant 0 : index
    %c0_13 = arith.constant 0 : index
    %17 = vector.load %arg1[%c6, %c0_12, %c0_13] : memref<9x128x128xbf16, #tpu.memory_space<vmem>>, vector<1x128x128xbf16>
    %18 = vector.shape_cast %17 : vector<1x128x128xbf16> to vector<128x128xbf16>
    %19 = arith.maximumf %16, %18 : vector<128x128xbf16>
    %c7 = arith.constant 7 : index
    %c0_14 = arith.constant 0 : index
    %c0_15 = arith.constant 0 : index
    %20 = vector.load %arg1[%c7, %c0_14, %c0_15] : memref<9x128x128xbf16, #tpu.memory_space<vmem>>, vector<1x128x128xbf16>
    %21 = vector.shape_cast %20 : vector<1x128x128xbf16> to vector<128x128xbf16>
    %22 = arith.maximumf %19, %21 : vector<128x128xbf16>
    %c8 = arith.constant 8 : index
    %c0_16 = arith.constant 0 : index
    %c0_17 = arith.constant 0 : index
    %23 = vector.load %arg1[%c8, %c0_16, %c0_17] : memref<9x128x128xbf16, #tpu.memory_space<vmem>>, vector<1x128x128xbf16>
    %24 = vector.shape_cast %23 : vector<1x128x128xbf16> to vector<128x128xbf16>
    %25 = arith.maximumf %22, %24 : vector<128x128xbf16>
    %c0_18 = arith.constant 0 : index
    %c0_19 = arith.constant 0 : index
    %26 = vector.load %arg2[%c0_18, %c0_19] : memref<128x128xbf16, #tpu.memory_space<vmem>>, vector<128x128xbf16>
    tpu.vector_store %arg2[%c0_18, %c0_19], %25 {strides = array<i32>} : memref<128x128xbf16, #tpu.memory_space<vmem>>, vector<128x128xbf16>,
    return
  }
  func.func @transform_0(%arg0: i32) -> (i32, i32, i32) {
    %c0_i32 = arith.constant 0 : i32
    %c0_i32_0 = arith.constant 0 : i32
    %c0_i32_1 = arith.constant 0 : i32
    return %c0_i32, %arg0, %c0_i32_0 : i32, i32, i32
  }
  func.func @transform_1(%arg0: i32) -> (i32, i32) {
    %c0_i32 = arith.constant 0 : i32
    %c0_i32_0 = arith.constant 0 : i32
    return %arg0, %c0_i32 : i32, i32
  }
}

module attributes {stable_mosaic.version = 11 : i64} {
  func.func @_conv3x3_kernel(%arg0: i32, %arg1: i32, %arg2: memref<1x18x18x128xbf16, #tpu.memory_space<vmem>>, %arg3: memref<9x128x128xbf16, #tpu.memory_space<vmem>>, %arg4: memref<1x128xf32, #tpu.memory_space<vmem>>, %arg5: memref<1x8x16x128xbf16, #tpu.memory_space<vmem>>) attributes {dimension_semantics = [#tpu.dimension_semantics<parallel>, #tpu.dimension_semantics<parallel>], iteration_bounds = array<i64: 2, 2>, scalar_prefetch = 0 : i64, scratch_operands = 0 : i64, tpu.core_type = #tpu.core_type<tc>, window_params = [{transform_indices = @transform_0, window_bounds = array<i64: 1, 18, 18, 128>}, {pipeline_mode = #tpu.pipeline_mode<synchronous>, transform_indices = @transform_1, window_bounds = array<i64: 9, 128, 128>}, {pipeline_mode = #tpu.pipeline_mode<synchronous>, transform_indices = @transform_2, window_bounds = array<i64: 1, 128>}, {transform_indices = @transform_3, window_bounds = array<i64: 1, 8, 16, 128>}]} {
    %c8_i32 = arith.constant 8 : i32
    %0 = arith.muli %arg1, %c8_i32 : i32
    %cst = arith.constant 0.000000e+00 : f32
    %1 = vector.broadcast %cst : f32 to vector<128x128xf32>
    %c0_i32 = arith.constant 0 : i32
    %2 = arith.addi %0, %c0_i32 : i32
    %c0 = arith.constant 0 : index
    %3 = arith.index_cast %2 : i32 to index
    %c0_0 = arith.constant 0 : index
    %c0_1 = arith.constant 0 : index
    %4 = vector.load %arg2[%c0, %3, %c0_0, %c0_1] : memref<1x18x18x128xbf16, #tpu.memory_space<vmem>>, vector<1x8x16x128xbf16>
    %5 = vector.shape_cast %4 : vector<1x8x16x128xbf16> to vector<128x128xbf16>
    %c0_2 = arith.constant 0 : index
    %c0_3 = arith.constant 0 : index
    %c0_4 = arith.constant 0 : index
    %6 = vector.load %arg3[%c0_2, %c0_3, %c0_4] : memref<9x128x128xbf16, #tpu.memory_space<vmem>>, vector<1x128x128xbf16>
    %7 = vector.shape_cast %6 : vector<1x128x128xbf16> to vector<128x128xbf16>
    %cst_5 = arith.constant dense<0.000000e+00> : vector<128x128xf32>
    %8 = tpu.matmul %5, %7, %cst_5 {dimension_numbers = #tpu.dot_dimension_numbers<[1], [0], [0], [1], [0, 0, 1, 1], [], []>} : vector<128x128xbf16>, vector<128x128xbf16>, vector<128x128xf32> -> vector<128x128xf32>
    %9 = arith.addf %1, %8 : vector<128x128xf32>
    %c0_i32_6 = arith.constant 0 : i32
    %10 = arith.addi %0, %c0_i32_6 : i32
    %c0_7 = arith.constant 0 : index
    %11 = arith.index_cast %10 : i32 to index
    %c1 = arith.constant 1 : index
    %c0_8 = arith.constant 0 : index
    %12 = vector.load %arg2[%c0_7, %11, %c1, %c0_8] : memref<1x18x18x128xbf16, #tpu.memory_space<vmem>>, vector<1x8x16x128xbf16>
    %13 = vector.shape_cast %12 : vector<1x8x16x128xbf16> to vector<128x128xbf16>
    %c1_9 = arith.constant 1 : index
    %c0_10 = arith.constant 0 : index
    %c0_11 = arith.constant 0 : index
    %14 = vector.load %arg3[%c1_9, %c0_10, %c0_11] : memref<9x128x128xbf16, #tpu.memory_space<vmem>>, vector<1x128x128xbf16>
    %15 = vector.shape_cast %14 : vector<1x128x128xbf16> to vector<128x128xbf16>
    %cst_12 = arith.constant dense<0.000000e+00> : vector<128x128xf32>
    %16 = tpu.matmul %13, %15, %cst_12 {dimension_numbers = #tpu.dot_dimension_numbers<[1], [0], [0], [1], [0, 0, 1, 1], [], []>} : vector<128x128xbf16>, vector<128x128xbf16>, vector<128x128xf32> -> vector<128x128xf32>
    %17 = arith.addf %9, %16 : vector<128x128xf32>
    %c0_i32_13 = arith.constant 0 : i32
    %18 = arith.addi %0, %c0_i32_13 : i32
    %c0_14 = arith.constant 0 : index
    %19 = arith.index_cast %18 : i32 to index
    %c2 = arith.constant 2 : index
    %c0_15 = arith.constant 0 : index
    %20 = vector.load %arg2[%c0_14, %19, %c2, %c0_15] : memref<1x18x18x128xbf16, #tpu.memory_space<vmem>>, vector<1x8x16x128xbf16>
    %21 = vector.shape_cast %20 : vector<1x8x16x128xbf16> to vector<128x128xbf16>
    %c2_16 = arith.constant 2 : index
    %c0_17 = arith.constant 0 : index
    %c0_18 = arith.constant 0 : index
    %22 = vector.load %arg3[%c2_16, %c0_17, %c0_18] : memref<9x128x128xbf16, #tpu.memory_space<vmem>>, vector<1x128x128xbf16>
    %23 = vector.shape_cast %22 : vector<1x128x128xbf16> to vector<128x128xbf16>
    %cst_19 = arith.constant dense<0.000000e+00> : vector<128x128xf32>
    %24 = tpu.matmul %21, %23, %cst_19 {dimension_numbers = #tpu.dot_dimension_numbers<[1], [0], [0], [1], [0, 0, 1, 1], [], []>} : vector<128x128xbf16>, vector<128x128xbf16>, vector<128x128xf32> -> vector<128x128xf32>
    %25 = arith.addf %17, %24 : vector<128x128xf32>
    %c1_i32 = arith.constant 1 : i32
    %26 = arith.addi %0, %c1_i32 : i32
    %c0_20 = arith.constant 0 : index
    %27 = arith.index_cast %26 : i32 to index
    %c0_21 = arith.constant 0 : index
    %c0_22 = arith.constant 0 : index
    %28 = vector.load %arg2[%c0_20, %27, %c0_21, %c0_22] : memref<1x18x18x128xbf16, #tpu.memory_space<vmem>>, vector<1x8x16x128xbf16>
    %29 = vector.shape_cast %28 : vector<1x8x16x128xbf16> to vector<128x128xbf16>
    %c3 = arith.constant 3 : index
    %c0_23 = arith.constant 0 : index
    %c0_24 = arith.constant 0 : index
    %30 = vector.load %arg3[%c3, %c0_23, %c0_24] : memref<9x128x128xbf16, #tpu.memory_space<vmem>>, vector<1x128x128xbf16>
    %31 = vector.shape_cast %30 : vector<1x128x128xbf16> to vector<128x128xbf16>
    %cst_25 = arith.constant dense<0.000000e+00> : vector<128x128xf32>
    %32 = tpu.matmul %29, %31, %cst_25 {dimension_numbers = #tpu.dot_dimension_numbers<[1], [0], [0], [1], [0, 0, 1, 1], [], []>} : vector<128x128xbf16>, vector<128x128xbf16>, vector<128x128xf32> -> vector<128x128xf32>
    %33 = arith.addf %25, %32 : vector<128x128xf32>
    %c1_i32_26 = arith.constant 1 : i32
    %34 = arith.addi %0, %c1_i32_26 : i32
    %c0_27 = arith.constant 0 : index
    %35 = arith.index_cast %34 : i32 to index
    %c1_28 = arith.constant 1 : index
    %c0_29 = arith.constant 0 : index
    %36 = vector.load %arg2[%c0_27, %35, %c1_28, %c0_29] : memref<1x18x18x128xbf16, #tpu.memory_space<vmem>>, vector<1x8x16x128xbf16>
    %37 = vector.shape_cast %36 : vector<1x8x16x128xbf16> to vector<128x128xbf16>
    %c4 = arith.constant 4 : index
    %c0_30 = arith.constant 0 : index
    %c0_31 = arith.constant 0 : index
    %38 = vector.load %arg3[%c4, %c0_30, %c0_31] : memref<9x128x128xbf16, #tpu.memory_space<vmem>>, vector<1x128x128xbf16>
    %39 = vector.shape_cast %38 : vector<1x128x128xbf16> to vector<128x128xbf16>
    %cst_32 = arith.constant dense<0.000000e+00> : vector<128x128xf32>
    %40 = tpu.matmul %37, %39, %cst_32 {dimension_numbers = #tpu.dot_dimension_numbers<[1], [0], [0], [1], [0, 0, 1, 1], [], []>} : vector<128x128xbf16>, vector<128x128xbf16>, vector<128x128xf32> -> vector<128x128xf32>
    %41 = arith.addf %33, %40 : vector<128x128xf32>
    %c1_i32_33 = arith.constant 1 : i32
    %42 = arith.addi %0, %c1_i32_33 : i32
    %c0_34 = arith.constant 0 : index
    %43 = arith.index_cast %42 : i32 to index
    %c2_35 = arith.constant 2 : index
    %c0_36 = arith.constant 0 : index
    %44 = vector.load %arg2[%c0_34, %43, %c2_35, %c0_36] : memref<1x18x18x128xbf16, #tpu.memory_space<vmem>>, vector<1x8x16x128xbf16>
    %45 = vector.shape_cast %44 : vector<1x8x16x128xbf16> to vector<128x128xbf16>
    %c5 = arith.constant 5 : index
    %c0_37 = arith.constant 0 : index
    %c0_38 = arith.constant 0 : index
    %46 = vector.load %arg3[%c5, %c0_37, %c0_38] : memref<9x128x128xbf16, #tpu.memory_space<vmem>>, vector<1x128x128xbf16>
    %47 = vector.shape_cast %46 : vector<1x128x128xbf16> to vector<128x128xbf16>
    %cst_39 = arith.constant dense<0.000000e+00> : vector<128x128xf32>
    %48 = tpu.matmul %45, %47, %cst_39 {dimension_numbers = #tpu.dot_dimension_numbers<[1], [0], [0], [1], [0, 0, 1, 1], [], []>} : vector<128x128xbf16>, vector<128x128xbf16>, vector<128x128xf32> -> vector<128x128xf32>
    %49 = arith.addf %41, %48 : vector<128x128xf32>
    %c2_i32 = arith.constant 2 : i32
    %50 = arith.addi %0, %c2_i32 : i32
    %c0_40 = arith.constant 0 : index
    %51 = arith.index_cast %50 : i32 to index
    %c0_41 = arith.constant 0 : index
    %c0_42 = arith.constant 0 : index
    %52 = vector.load %arg2[%c0_40, %51, %c0_41, %c0_42] : memref<1x18x18x128xbf16, #tpu.memory_space<vmem>>, vector<1x8x16x128xbf16>
    %53 = vector.shape_cast %52 : vector<1x8x16x128xbf16> to vector<128x128xbf16>
    %c6 = arith.constant 6 : index
    %c0_43 = arith.constant 0 : index
    %c0_44 = arith.constant 0 : index
    %54 = vector.load %arg3[%c6, %c0_43, %c0_44] : memref<9x128x128xbf16, #tpu.memory_space<vmem>>, vector<1x128x128xbf16>
    %55 = vector.shape_cast %54 : vector<1x128x128xbf16> to vector<128x128xbf16>
    %cst_45 = arith.constant dense<0.000000e+00> : vector<128x128xf32>
    %56 = tpu.matmul %53, %55, %cst_45 {dimension_numbers = #tpu.dot_dimension_numbers<[1], [0], [0], [1], [0, 0, 1, 1], [], []>} : vector<128x128xbf16>, vector<128x128xbf16>, vector<128x128xf32> -> vector<128x128xf32>
    %57 = arith.addf %49, %56 : vector<128x128xf32>
    %c2_i32_46 = arith.constant 2 : i32
    %58 = arith.addi %0, %c2_i32_46 : i32
    %c0_47 = arith.constant 0 : index
    %59 = arith.index_cast %58 : i32 to index
    %c1_48 = arith.constant 1 : index
    %c0_49 = arith.constant 0 : index
    %60 = vector.load %arg2[%c0_47, %59, %c1_48, %c0_49] : memref<1x18x18x128xbf16, #tpu.memory_space<vmem>>, vector<1x8x16x128xbf16>
    %61 = vector.shape_cast %60 : vector<1x8x16x128xbf16> to vector<128x128xbf16>
    %c7 = arith.constant 7 : index
    %c0_50 = arith.constant 0 : index
    %c0_51 = arith.constant 0 : index
    %62 = vector.load %arg3[%c7, %c0_50, %c0_51] : memref<9x128x128xbf16, #tpu.memory_space<vmem>>, vector<1x128x128xbf16>
    %63 = vector.shape_cast %62 : vector<1x128x128xbf16> to vector<128x128xbf16>
    %cst_52 = arith.constant dense<0.000000e+00> : vector<128x128xf32>
    %64 = tpu.matmul %61, %63, %cst_52 {dimension_numbers = #tpu.dot_dimension_numbers<[1], [0], [0], [1], [0, 0, 1, 1], [], []>} : vector<128x128xbf16>, vector<128x128xbf16>, vector<128x128xf32> -> vector<128x128xf32>
    %65 = arith.addf %57, %64 : vector<128x128xf32>
    %c2_i32_53 = arith.constant 2 : i32
    %66 = arith.addi %0, %c2_i32_53 : i32
    %c0_54 = arith.constant 0 : index
    %67 = arith.index_cast %66 : i32 to index
    %c2_55 = arith.constant 2 : index
    %c0_56 = arith.constant 0 : index
    %68 = vector.load %arg2[%c0_54, %67, %c2_55, %c0_56] : memref<1x18x18x128xbf16, #tpu.memory_space<vmem>>, vector<1x8x16x128xbf16>
    %69 = vector.shape_cast %68 : vector<1x8x16x128xbf16> to vector<128x128xbf16>
    %c8 = arith.constant 8 : index
    %c0_57 = arith.constant 0 : index
    %c0_58 = arith.constant 0 : index
    %70 = vector.load %arg3[%c8, %c0_57, %c0_58] : memref<9x128x128xbf16, #tpu.memory_space<vmem>>, vector<1x128x128xbf16>
    %71 = vector.shape_cast %70 : vector<1x128x128xbf16> to vector<128x128xbf16>
    %cst_59 = arith.constant dense<0.000000e+00> : vector<128x128xf32>
    %72 = tpu.matmul %69, %71, %cst_59 {dimension_numbers = #tpu.dot_dimension_numbers<[1], [0], [0], [1], [0, 0, 1, 1], [], []>} : vector<128x128xbf16>, vector<128x128xbf16>, vector<128x128xf32> -> vector<128x128xf32>
    %73 = arith.addf %65, %72 : vector<128x128xf32>
    %c0_60 = arith.constant 0 : index
    %c0_61 = arith.constant 0 : index
    %74 = vector.load %arg4[%c0_60, %c0_61] : memref<1x128xf32, #tpu.memory_space<vmem>>, vector<1x128xf32>
    %75 = vector.broadcast %74 : vector<1x128xf32> to vector<128x128xf32>
    %76 = arith.addf %73, %75 : vector<128x128xf32>
    %cst_62 = arith.constant 0.000000e+00 : f32
    %77 = vector.broadcast %cst_62 : f32 to vector<128x128xf32>
    %78 = arith.maximumf %76, %77 : vector<128x128xf32>
    %79 = vector.shape_cast %78 : vector<128x128xf32> to vector<1x8x16x128xf32>
    %80 = arith.truncf %79 : vector<1x8x16x128xf32> to vector<1x8x16x128xbf16>
    %c0_63 = arith.constant 0 : index
    %c0_64 = arith.constant 0 : index
    %c0_65 = arith.constant 0 : index
    %c0_66 = arith.constant 0 : index
    %81 = vector.load %arg5[%c0_63, %c0_64, %c0_65, %c0_66] : memref<1x8x16x128xbf16, #tpu.memory_space<vmem>>, vector<1x8x16x128xbf16>
    tpu.vector_store %arg5[%c0_63, %c0_64, %c0_65, %c0_66], %80 {strides = array<i32>} : memref<1x8x16x128xbf16, #tpu.memory_space<vmem>>, vector<1x8x16x128xbf16>,
    return
  }
  func.func @transform_0(%arg0: i32, %arg1: i32) -> (i32, i32, i32, i32) {
    %c0_i32 = arith.constant 0 : i32
    %c0_i32_0 = arith.constant 0 : i32
    %c0_i32_1 = arith.constant 0 : i32
    %c0_i32_2 = arith.constant 0 : i32
    return %arg0, %c0_i32, %c0_i32_0, %c0_i32_1 : i32, i32, i32, i32
  }
  func.func @transform_1(%arg0: i32, %arg1: i32) -> (i32, i32, i32) {
    %c0_i32 = arith.constant 0 : i32
    %c0_i32_0 = arith.constant 0 : i32
    %c0_i32_1 = arith.constant 0 : i32
    %c0_i32_2 = arith.constant 0 : i32
    return %c0_i32, %c0_i32_0, %c0_i32_1 : i32, i32, i32
  }
  func.func @transform_2(%arg0: i32, %arg1: i32) -> (i32, i32) {
    %c0_i32 = arith.constant 0 : i32
    %c0_i32_0 = arith.constant 0 : i32
    %c0_i32_1 = arith.constant 0 : i32
    return %c0_i32, %c0_i32_0 : i32, i32
  }
  func.func @transform_3(%arg0: i32, %arg1: i32) -> (i32, i32, i32, i32) {
    %c0_i32 = arith.constant 0 : i32
    %c0_i32_0 = arith.constant 0 : i32
    %c0_i32_1 = arith.constant 0 : i32
    return %arg0, %arg1, %c0_i32, %c0_i32_0 : i32, i32, i32, i32
  }
}

module attributes {stable_mosaic.version = 11 : i64} {
  func.func @_conv3x3_res_kernel(%arg0: i32, %arg1: i32, %arg2: memref<1x18x18x128xbf16, #tpu.memory_space<vmem>>, %arg3: memref<9x128x128xbf16, #tpu.memory_space<vmem>>, %arg4: memref<1x128xf32, #tpu.memory_space<vmem>>, %arg5: memref<1x8x16x128xbf16, #tpu.memory_space<vmem>>, %arg6: memref<1x8x16x128xbf16, #tpu.memory_space<vmem>>) attributes {dimension_semantics = [#tpu.dimension_semantics<parallel>, #tpu.dimension_semantics<parallel>], iteration_bounds = array<i64: 2, 2>, scalar_prefetch = 0 : i64, scratch_operands = 0 : i64, tpu.core_type = #tpu.core_type<tc>, window_params = [{transform_indices = @transform_0, window_bounds = array<i64: 1, 18, 18, 128>}, {pipeline_mode = #tpu.pipeline_mode<synchronous>, transform_indices = @transform_1, window_bounds = array<i64: 9, 128, 128>}, {pipeline_mode = #tpu.pipeline_mode<synchronous>, transform_indices = @transform_2, window_bounds = array<i64: 1, 128>}, {transform_indices = @transform_3, window_bounds = array<i64: 1, 8, 16, 128>}, {transform_indices = @transform_4, window_bounds = array<i64: 1, 8, 16, 128>}]} {
    %c8_i32 = arith.constant 8 : i32
    %0 = arith.muli %arg1, %c8_i32 : i32
    %cst = arith.constant 0.000000e+00 : f32
    %1 = vector.broadcast %cst : f32 to vector<128x128xf32>
    %c0_i32 = arith.constant 0 : i32
    %2 = arith.addi %0, %c0_i32 : i32
    %c0 = arith.constant 0 : index
    %3 = arith.index_cast %2 : i32 to index
    %c0_0 = arith.constant 0 : index
    %c0_1 = arith.constant 0 : index
    %4 = vector.load %arg2[%c0, %3, %c0_0, %c0_1] : memref<1x18x18x128xbf16, #tpu.memory_space<vmem>>, vector<1x8x16x128xbf16>
    %5 = vector.shape_cast %4 : vector<1x8x16x128xbf16> to vector<128x128xbf16>
    %c0_2 = arith.constant 0 : index
    %c0_3 = arith.constant 0 : index
    %c0_4 = arith.constant 0 : index
    %6 = vector.load %arg3[%c0_2, %c0_3, %c0_4] : memref<9x128x128xbf16, #tpu.memory_space<vmem>>, vector<1x128x128xbf16>
    %7 = vector.shape_cast %6 : vector<1x128x128xbf16> to vector<128x128xbf16>
    %cst_5 = arith.constant dense<0.000000e+00> : vector<128x128xf32>
    %8 = tpu.matmul %5, %7, %cst_5 {dimension_numbers = #tpu.dot_dimension_numbers<[1], [0], [0], [1], [0, 0, 1, 1], [], []>} : vector<128x128xbf16>, vector<128x128xbf16>, vector<128x128xf32> -> vector<128x128xf32>
    %9 = arith.addf %1, %8 : vector<128x128xf32>
    %c0_i32_6 = arith.constant 0 : i32
    %10 = arith.addi %0, %c0_i32_6 : i32
    %c0_7 = arith.constant 0 : index
    %11 = arith.index_cast %10 : i32 to index
    %c1 = arith.constant 1 : index
    %c0_8 = arith.constant 0 : index
    %12 = vector.load %arg2[%c0_7, %11, %c1, %c0_8] : memref<1x18x18x128xbf16, #tpu.memory_space<vmem>>, vector<1x8x16x128xbf16>
    %13 = vector.shape_cast %12 : vector<1x8x16x128xbf16> to vector<128x128xbf16>
    %c1_9 = arith.constant 1 : index
    %c0_10 = arith.constant 0 : index
    %c0_11 = arith.constant 0 : index
    %14 = vector.load %arg3[%c1_9, %c0_10, %c0_11] : memref<9x128x128xbf16, #tpu.memory_space<vmem>>, vector<1x128x128xbf16>
    %15 = vector.shape_cast %14 : vector<1x128x128xbf16> to vector<128x128xbf16>
    %cst_12 = arith.constant dense<0.000000e+00> : vector<128x128xf32>
    %16 = tpu.matmul %13, %15, %cst_12 {dimension_numbers = #tpu.dot_dimension_numbers<[1], [0], [0], [1], [0, 0, 1, 1], [], []>} : vector<128x128xbf16>, vector<128x128xbf16>, vector<128x128xf32> -> vector<128x128xf32>
    %17 = arith.addf %9, %16 : vector<128x128xf32>
    %c0_i32_13 = arith.constant 0 : i32
    %18 = arith.addi %0, %c0_i32_13 : i32
    %c0_14 = arith.constant 0 : index
    %19 = arith.index_cast %18 : i32 to index
    %c2 = arith.constant 2 : index
    %c0_15 = arith.constant 0 : index
    %20 = vector.load %arg2[%c0_14, %19, %c2, %c0_15] : memref<1x18x18x128xbf16, #tpu.memory_space<vmem>>, vector<1x8x16x128xbf16>
    %21 = vector.shape_cast %20 : vector<1x8x16x128xbf16> to vector<128x128xbf16>
    %c2_16 = arith.constant 2 : index
    %c0_17 = arith.constant 0 : index
    %c0_18 = arith.constant 0 : index
    %22 = vector.load %arg3[%c2_16, %c0_17, %c0_18] : memref<9x128x128xbf16, #tpu.memory_space<vmem>>, vector<1x128x128xbf16>
    %23 = vector.shape_cast %22 : vector<1x128x128xbf16> to vector<128x128xbf16>
    %cst_19 = arith.constant dense<0.000000e+00> : vector<128x128xf32>
    %24 = tpu.matmul %21, %23, %cst_19 {dimension_numbers = #tpu.dot_dimension_numbers<[1], [0], [0], [1], [0, 0, 1, 1], [], []>} : vector<128x128xbf16>, vector<128x128xbf16>, vector<128x128xf32> -> vector<128x128xf32>
    %25 = arith.addf %17, %24 : vector<128x128xf32>
    %c1_i32 = arith.constant 1 : i32
    %26 = arith.addi %0, %c1_i32 : i32
    %c0_20 = arith.constant 0 : index
    %27 = arith.index_cast %26 : i32 to index
    %c0_21 = arith.constant 0 : index
    %c0_22 = arith.constant 0 : index
    %28 = vector.load %arg2[%c0_20, %27, %c0_21, %c0_22] : memref<1x18x18x128xbf16, #tpu.memory_space<vmem>>, vector<1x8x16x128xbf16>
    %29 = vector.shape_cast %28 : vector<1x8x16x128xbf16> to vector<128x128xbf16>
    %c3 = arith.constant 3 : index
    %c0_23 = arith.constant 0 : index
    %c0_24 = arith.constant 0 : index
    %30 = vector.load %arg3[%c3, %c0_23, %c0_24] : memref<9x128x128xbf16, #tpu.memory_space<vmem>>, vector<1x128x128xbf16>
    %31 = vector.shape_cast %30 : vector<1x128x128xbf16> to vector<128x128xbf16>
    %cst_25 = arith.constant dense<0.000000e+00> : vector<128x128xf32>
    %32 = tpu.matmul %29, %31, %cst_25 {dimension_numbers = #tpu.dot_dimension_numbers<[1], [0], [0], [1], [0, 0, 1, 1], [], []>} : vector<128x128xbf16>, vector<128x128xbf16>, vector<128x128xf32> -> vector<128x128xf32>
    %33 = arith.addf %25, %32 : vector<128x128xf32>
    %c1_i32_26 = arith.constant 1 : i32
    %34 = arith.addi %0, %c1_i32_26 : i32
    %c0_27 = arith.constant 0 : index
    %35 = arith.index_cast %34 : i32 to index
    %c1_28 = arith.constant 1 : index
    %c0_29 = arith.constant 0 : index
    %36 = vector.load %arg2[%c0_27, %35, %c1_28, %c0_29] : memref<1x18x18x128xbf16, #tpu.memory_space<vmem>>, vector<1x8x16x128xbf16>
    %37 = vector.shape_cast %36 : vector<1x8x16x128xbf16> to vector<128x128xbf16>
    %c4 = arith.constant 4 : index
    %c0_30 = arith.constant 0 : index
    %c0_31 = arith.constant 0 : index
    %38 = vector.load %arg3[%c4, %c0_30, %c0_31] : memref<9x128x128xbf16, #tpu.memory_space<vmem>>, vector<1x128x128xbf16>
    %39 = vector.shape_cast %38 : vector<1x128x128xbf16> to vector<128x128xbf16>
    %cst_32 = arith.constant dense<0.000000e+00> : vector<128x128xf32>
    %40 = tpu.matmul %37, %39, %cst_32 {dimension_numbers = #tpu.dot_dimension_numbers<[1], [0], [0], [1], [0, 0, 1, 1], [], []>} : vector<128x128xbf16>, vector<128x128xbf16>, vector<128x128xf32> -> vector<128x128xf32>
    %41 = arith.addf %33, %40 : vector<128x128xf32>
    %c1_i32_33 = arith.constant 1 : i32
    %42 = arith.addi %0, %c1_i32_33 : i32
    %c0_34 = arith.constant 0 : index
    %43 = arith.index_cast %42 : i32 to index
    %c2_35 = arith.constant 2 : index
    %c0_36 = arith.constant 0 : index
    %44 = vector.load %arg2[%c0_34, %43, %c2_35, %c0_36] : memref<1x18x18x128xbf16, #tpu.memory_space<vmem>>, vector<1x8x16x128xbf16>
    %45 = vector.shape_cast %44 : vector<1x8x16x128xbf16> to vector<128x128xbf16>
    %c5 = arith.constant 5 : index
    %c0_37 = arith.constant 0 : index
    %c0_38 = arith.constant 0 : index
    %46 = vector.load %arg3[%c5, %c0_37, %c0_38] : memref<9x128x128xbf16, #tpu.memory_space<vmem>>, vector<1x128x128xbf16>
    %47 = vector.shape_cast %46 : vector<1x128x128xbf16> to vector<128x128xbf16>
    %cst_39 = arith.constant dense<0.000000e+00> : vector<128x128xf32>
    %48 = tpu.matmul %45, %47, %cst_39 {dimension_numbers = #tpu.dot_dimension_numbers<[1], [0], [0], [1], [0, 0, 1, 1], [], []>} : vector<128x128xbf16>, vector<128x128xbf16>, vector<128x128xf32> -> vector<128x128xf32>
    %49 = arith.addf %41, %48 : vector<128x128xf32>
    %c2_i32 = arith.constant 2 : i32
    %50 = arith.addi %0, %c2_i32 : i32
    %c0_40 = arith.constant 0 : index
    %51 = arith.index_cast %50 : i32 to index
    %c0_41 = arith.constant 0 : index
    %c0_42 = arith.constant 0 : index
    %52 = vector.load %arg2[%c0_40, %51, %c0_41, %c0_42] : memref<1x18x18x128xbf16, #tpu.memory_space<vmem>>, vector<1x8x16x128xbf16>
    %53 = vector.shape_cast %52 : vector<1x8x16x128xbf16> to vector<128x128xbf16>
    %c6 = arith.constant 6 : index
    %c0_43 = arith.constant 0 : index
    %c0_44 = arith.constant 0 : index
    %54 = vector.load %arg3[%c6, %c0_43, %c0_44] : memref<9x128x128xbf16, #tpu.memory_space<vmem>>, vector<1x128x128xbf16>
    %55 = vector.shape_cast %54 : vector<1x128x128xbf16> to vector<128x128xbf16>
    %cst_45 = arith.constant dense<0.000000e+00> : vector<128x128xf32>
    %56 = tpu.matmul %53, %55, %cst_45 {dimension_numbers = #tpu.dot_dimension_numbers<[1], [0], [0], [1], [0, 0, 1, 1], [], []>} : vector<128x128xbf16>, vector<128x128xbf16>, vector<128x128xf32> -> vector<128x128xf32>
    %57 = arith.addf %49, %56 : vector<128x128xf32>
    %c2_i32_46 = arith.constant 2 : i32
    %58 = arith.addi %0, %c2_i32_46 : i32
    %c0_47 = arith.constant 0 : index
    %59 = arith.index_cast %58 : i32 to index
    %c1_48 = arith.constant 1 : index
    %c0_49 = arith.constant 0 : index
    %60 = vector.load %arg2[%c0_47, %59, %c1_48, %c0_49] : memref<1x18x18x128xbf16, #tpu.memory_space<vmem>>, vector<1x8x16x128xbf16>
    %61 = vector.shape_cast %60 : vector<1x8x16x128xbf16> to vector<128x128xbf16>
    %c7 = arith.constant 7 : index
    %c0_50 = arith.constant 0 : index
    %c0_51 = arith.constant 0 : index
    %62 = vector.load %arg3[%c7, %c0_50, %c0_51] : memref<9x128x128xbf16, #tpu.memory_space<vmem>>, vector<1x128x128xbf16>
    %63 = vector.shape_cast %62 : vector<1x128x128xbf16> to vector<128x128xbf16>
    %cst_52 = arith.constant dense<0.000000e+00> : vector<128x128xf32>
    %64 = tpu.matmul %61, %63, %cst_52 {dimension_numbers = #tpu.dot_dimension_numbers<[1], [0], [0], [1], [0, 0, 1, 1], [], []>} : vector<128x128xbf16>, vector<128x128xbf16>, vector<128x128xf32> -> vector<128x128xf32>
    %65 = arith.addf %57, %64 : vector<128x128xf32>
    %c2_i32_53 = arith.constant 2 : i32
    %66 = arith.addi %0, %c2_i32_53 : i32
    %c0_54 = arith.constant 0 : index
    %67 = arith.index_cast %66 : i32 to index
    %c2_55 = arith.constant 2 : index
    %c0_56 = arith.constant 0 : index
    %68 = vector.load %arg2[%c0_54, %67, %c2_55, %c0_56] : memref<1x18x18x128xbf16, #tpu.memory_space<vmem>>, vector<1x8x16x128xbf16>
    %69 = vector.shape_cast %68 : vector<1x8x16x128xbf16> to vector<128x128xbf16>
    %c8 = arith.constant 8 : index
    %c0_57 = arith.constant 0 : index
    %c0_58 = arith.constant 0 : index
    %70 = vector.load %arg3[%c8, %c0_57, %c0_58] : memref<9x128x128xbf16, #tpu.memory_space<vmem>>, vector<1x128x128xbf16>
    %71 = vector.shape_cast %70 : vector<1x128x128xbf16> to vector<128x128xbf16>
    %cst_59 = arith.constant dense<0.000000e+00> : vector<128x128xf32>
    %72 = tpu.matmul %69, %71, %cst_59 {dimension_numbers = #tpu.dot_dimension_numbers<[1], [0], [0], [1], [0, 0, 1, 1], [], []>} : vector<128x128xbf16>, vector<128x128xbf16>, vector<128x128xf32> -> vector<128x128xf32>
    %73 = arith.addf %65, %72 : vector<128x128xf32>
    %c0_60 = arith.constant 0 : index
    %c0_61 = arith.constant 0 : index
    %74 = vector.load %arg4[%c0_60, %c0_61] : memref<1x128xf32, #tpu.memory_space<vmem>>, vector<1x128xf32>
    %75 = vector.broadcast %74 : vector<1x128xf32> to vector<128x128xf32>
    %76 = arith.addf %73, %75 : vector<128x128xf32>
    %c0_62 = arith.constant 0 : index
    %c0_63 = arith.constant 0 : index
    %c0_64 = arith.constant 0 : index
    %c0_65 = arith.constant 0 : index
    %77 = vector.load %arg5[%c0_62, %c0_63, %c0_64, %c0_65] : memref<1x8x16x128xbf16, #tpu.memory_space<vmem>>, vector<1x8x16x128xbf16>
    %78 = vector.shape_cast %77 : vector<1x8x16x128xbf16> to vector<128x128xbf16>
    %79 = arith.extf %78 : vector<128x128xbf16> to vector<128x128xf32>
    %80 = arith.addf %76, %79 : vector<128x128xf32>
    %cst_66 = arith.constant 0.000000e+00 : f32
    %81 = vector.broadcast %cst_66 : f32 to vector<128x128xf32>
    %82 = arith.maximumf %80, %81 : vector<128x128xf32>
    %83 = vector.shape_cast %82 : vector<128x128xf32> to vector<1x8x16x128xf32>
    %84 = arith.truncf %83 : vector<1x8x16x128xf32> to vector<1x8x16x128xbf16>
    %c0_67 = arith.constant 0 : index
    %c0_68 = arith.constant 0 : index
    %c0_69 = arith.constant 0 : index
    %c0_70 = arith.constant 0 : index
    %85 = vector.load %arg6[%c0_67, %c0_68, %c0_69, %c0_70] : memref<1x8x16x128xbf16, #tpu.memory_space<vmem>>, vector<1x8x16x128xbf16>
    tpu.vector_store %arg6[%c0_67, %c0_68, %c0_69, %c0_70], %84 {strides = array<i32>} : memref<1x8x16x128xbf16, #tpu.memory_space<vmem>>, vector<1x8x16x128xbf16>,
    return
  }
  func.func @transform_0(%arg0: i32, %arg1: i32) -> (i32, i32, i32, i32) {
    %c0_i32 = arith.constant 0 : i32
    %c0_i32_0 = arith.constant 0 : i32
    %c0_i32_1 = arith.constant 0 : i32
    %c0_i32_2 = arith.constant 0 : i32
    return %arg0, %c0_i32, %c0_i32_0, %c0_i32_1 : i32, i32, i32, i32
  }
  func.func @transform_1(%arg0: i32, %arg1: i32) -> (i32, i32, i32) {
    %c0_i32 = arith.constant 0 : i32
    %c0_i32_0 = arith.constant 0 : i32
    %c0_i32_1 = arith.constant 0 : i32
    %c0_i32_2 = arith.constant 0 : i32
    return %c0_i32, %c0_i32_0, %c0_i32_1 : i32, i32, i32
  }
  func.func @transform_2(%arg0: i32, %arg1: i32) -> (i32, i32) {
    %c0_i32 = arith.constant 0 : i32
    %c0_i32_0 = arith.constant 0 : i32
    %c0_i32_1 = arith.constant 0 : i32
    return %c0_i32, %c0_i32_0 : i32, i32
  }
  func.func @transform_3(%arg0: i32, %arg1: i32) -> (i32, i32, i32, i32) {
    %c0_i32 = arith.constant 0 : i32
    %c0_i32_0 = arith.constant 0 : i32
    %c0_i32_1 = arith.constant 0 : i32
    return %arg0, %arg1, %c0_i32, %c0_i32_0 : i32, i32, i32, i32
  }
  func.func @transform_4(%arg0: i32, %arg1: i32) -> (i32, i32, i32, i32) {
    %c0_i32 = arith.constant 0 : i32
    %c0_i32_0 = arith.constant 0 : i32
    %c0_i32_1 = arith.constant 0 : i32
    return %arg0, %arg1, %c0_i32, %c0_i32_0 : i32, i32, i32, i32
  }
}

</mosaic_0001>

<bundles_post_ra>
// kernel: visual_extractor_forward.4
= control target key start
LH: loop header
LB: loop body
LE: loop exit
PB: predicated region body
PF: predicated region fallthrough
CT: control target
= control target key end

     0   :  { %s1251_s12 = smov 0   ;;  %s1407_s0 = inlined_call_operand.vmem [shape: bf16[2048,147], index: 0, kind: input, shape index: {}]   ;;  %s1408_s1 = inlined_call_operand.vmem [shape: bf16[147,128], index: 1, kind: input, shape index: {}]   ;;  %s1409_s2 = inlined_call_operand.vmem [shape: f32[1,128], index: 2, kind: input, shape index: {}]   ;;  %s1410_s3 = inlined_call_operand.vmem [shape: bf16[2048,128], index: 3, kind: output, shape index: {}]  }
   0x1 LB: > { %s902_s13 = sadd.s32 4294967295, %s1227_s12   ;;  %p906_p0 = scmp.ge.s32.totalorder %s1227_s12, 1  ;;  %s1227_s12 = sphi %s1251_s12, %s13_s12  }
   0x2   : > { %p139_p1 = scmp.lt.s32.totalorder %s1227_s12, 9 }
   0x4   : > { %p140_p2 = pnand %p906_p0, %p139_p1 }
   0x5   : > { %s907_s20 = sshll.u32 (!%p140_p2), %s902_s13, 5 }
   0x6   : > { %143 = sbr.rel (%p140_p2) target bundleno = 312 (0x138), region = 32  ;;  %p165_p3 = scmp.lt.s32.totalorder (!%p140_p2), %s907_s20, 255 }
   0xb   : > { %v1163_v0 = vld [vmem:[%s1408_s1 + $0x38] sm:$0xff]   ;;  %v1229_v1 = vmov 0   ;;  %v1164_v2 = vld [vmem:[%s1408_s1 + $0x30] sm:$0xff]   ;;  %v1165_v3 = vld [vmem:[%s1408_s1 + $0x28] sm:$0xff]   ;;  %s1412_s20 = smov (!%p165_p3, %s907_s20), 255  ;;  %vm437_vm0 = vcmask 154624  }
   0xc   : > { %493 = vmatprep.subr.bf16.mxu0 %v1229_v1  ;;  %1133 = vmatprep.subr.bf16.mxu1 %v1229_v1  ;;  %v1166_v4 = vld [vmem:[%s1408_s1 + $0x20] sm:$0xff]   ;;  %s1005_s23 = sshll.u32 %s1412_s20, 3  ;;  %v1167_v5 = vld [vmem:[%s1408_s1 + $0x18] sm:$0xff]   ;;  %v1168_v8 = vld [vmem:[%s1408_s1 + $0x10] sm:$0xff]   ;;  %vm486_vm1 = vcmask 1040384   ;;  %vm487_vm2 = vcmask 1041408  }
   0xd   : > { %494 = vmatpush1.bf16.msra.mxu0 %v1163_v0  ;;  %1143 = vmatpush1.bf16.msra.mxu1 %v1163_v0  ;;  %s1277_s26 = scalar_lea.vmem %s1407_s0, %s1005_s23  ;;  %v1169_v9 = vld [vmem:[%s1408_s1 + $0x8] sm:$0xff]   ;;  %v1230_v10 = vmov 65535   ;;  %v1170_v12 = vld [vmem:[%s1408_s1] sm:$0xff]   ;;  %s911_s15 = sshll.u32 %s1412_s20, 2 }
   0xe   : > { %495 = vmatprep.subr.bf16.mxu0 %v1229_v1  ;;  %1134 = vmatprep.subr.bf16.mxu1 %v1229_v1  ;;  %v1175_v6 = vld [vmem:[%s1277_s26 + $0x4] ss:$8 sps:$4 sm:$0xff]   ;;  %v488_v11 = vsel %vm486_vm1, 4294967295, %v1230_v10  ;;  %v1171_v13 = vld [vmem:[%s1408_s1 + $0x48] ss:$0 sps:$4 sm:$0x33]   ;;  %s1358_s18 = scalar_lea.vmem %s1410_s3, %s911_s15 }
   0xf   : > { %v1178_v7 = vld [vmem:[%s1277_s26 + $0x84] ss:$8 sps:$4 sm:$0xff]   ;;  %955 = vmatprep.mubr.msk.bf16.mxu0 %vm437_vm0, %v1175_v6  ;;  %v489_v14 = vsel %vm487_vm2, %v488_v11, 0  ;;  %v1173_v17 = vld [vmem:[%s1277_s26] ss:$8 sps:$4 sm:$0xff]  }
  0x10   : > { %963 = vmatprep.mubr.msk.bf16.mxu1 %vm437_vm0, %v1178_v7  ;;  %v491_v15 = vand.u32 %v1171_v13, %v489_v14  ;;  %v1172_v16 = vld [vmem:[%s1408_s1 + $0x40] sm:$0xff]   ;;  %v1179_v19 = vld [vmem:[%s1277_s26 + $0x14] ss:$8 sps:$4 sm:$0xff]   ;;  %v1183_v21 = vld [vmem:[%s1277_s26 + $0x10] ss:$8 sps:$4 sm:$0xff]  }
  0x11   : > { %496 = vmatpush1.bf16.msra.mxu0 %v1164_v2  ;;  %1144 = vmatpush1.bf16.msra.mxu1 %v1164_v2  ;;  %v1176_v18 = vld [vmem:[%s1277_s26 + $0x80] ss:$8 sps:$4 sm:$0xff]   ;;  %v1181_v20 = vld [vmem:[%s1277_s26 + $0x94] ss:$8 sps:$4 sm:$0xff]   ;;  %v1184_v22 = vld [vmem:[%s1277_s26 + $0x90] ss:$8 sps:$4 sm:$0xff]  }
  0x12   : > { %497 = vmatprep.subr.bf16.mxu0 %v1229_v1  ;;  %1135 = vmatprep.subr.bf16.mxu1 %v1229_v1  ;;  %v1185_v23 = vld [vmem:[%s1277_s26 + $0x24] ss:$8 sps:$4 sm:$0xff]   ;;  %v1189_v25 = vld [vmem:[%s1277_s26 + $0x20] ss:$8 sps:$4 sm:$0xff]   ;;  %v1191_v27 = vld [vmem:[%s1277_s26 + $0x34] ss:$8 sps:$4 sm:$0xff]  }
  0x13   : > { %v1187_v24 = vld [vmem:[%s1277_s26 + $0xa4] ss:$8 sps:$4 sm:$0xff]   ;;  %v1190_v26 = vld [vmem:[%s1277_s26 + $0xa0] ss:$8 sps:$4 sm:$0xff]   ;;  %v1193_v28 = vld [vmem:[%s1277_s26 + $0xb4] ss:$8 sps:$4 sm:$0xff]  }
  0x14   : > { %v1195_v29 = vld [vmem:[%s1277_s26 + $0x30] ss:$8 sps:$4 sm:$0xff]   ;;  %v1197_v31 = vld [vmem:[%s1277_s26 + $0x44] ss:$8 sps:$4 sm:$0xff]   ;;  %v1201_v33 = vld [vmem:[%s1277_s26 + $0x40] ss:$8 sps:$4 sm:$0xff]  }
  0x15   : > { %498 = vmatpush1.bf16.msra.mxu0 %v1165_v3  ;;  %1145 = vmatpush1.bf16.msra.mxu1 %v1165_v3  ;;  %v1196_v30 = vld [vmem:[%s1277_s26 + $0xb0] ss:$8 sps:$4 sm:$0xff]   ;;  %v1199_v32 = vld [vmem:[%s1277_s26 + $0xc4] ss:$8 sps:$4 sm:$0xff]   ;;  %v1202_v34 = vld [vmem:[%s1277_s26 + $0xc0] ss:$8 sps:$4 sm:$0xff]  }
  0x16   : > { %499 = vmatprep.subr.bf16.mxu0 %v1229_v1  ;;  %1136 = vmatprep.subr.bf16.mxu1 %v1229_v1  ;;  %v1203_v35 = vld [vmem:[%s1277_s26 + $0x54] ss:$8 sps:$4 sm:$0xff]   ;;  %v1207_v37 = vld [vmem:[%s1277_s26 + $0x50] ss:$8 sps:$4 sm:$0xff]   ;;  %v1209_v39 = vld [vmem:[%s1277_s26 + $0x64] ss:$8 sps:$4 sm:$0xff]  }
  0x17   : > { %v1205_v36 = vld [vmem:[%s1277_s26 + $0xd4] ss:$8 sps:$4 sm:$0xff]   ;;  %v1208_v38 = vld [vmem:[%s1277_s26 + $0xd0] ss:$8 sps:$4 sm:$0xff]   ;;  %v1211_v40 = vld [vmem:[%s1277_s26 + $0xe4] ss:$8 sps:$4 sm:$0xff]  }
  0x18   : > { %v1213_v41 = vld [vmem:[%s1277_s26 + $0x60] ss:$8 sps:$4 sm:$0xff]   ;;  %v1215_v43 = vld [vmem:[%s1277_s26 + $0x74] ss:$8 sps:$4 sm:$0xff]   ;;  %v1219_v45 = vld [vmem:[%s1277_s26 + $0x70] ss:$8 sps:$4 sm:$0xff]  }
  0x19   : > { %500 = vmatpush1.bf16.msra.mxu0 %v1166_v4  ;;  %1146 = vmatpush1.bf16.msra.mxu1 %v1166_v4  ;;  %v1214_v42 = vld [vmem:[%s1277_s26 + $0xe0] ss:$8 sps:$4 sm:$0xff]   ;;  %v1217_v44 = vld [vmem:[%s1277_s26 + $0xf4] ss:$8 sps:$4 sm:$0xff]   ;;  %v1220_v46 = vld [vmem:[%s1277_s26 + $0xf0] ss:$8 sps:$4 sm:$0xff]  }
  0x1a   : > { %501 = vmatprep.subr.bf16.mxu0 %v1229_v1  ;;  %1137 = vmatprep.subr.bf16.mxu1 %v1229_v1  ;;  %v1348_v47 = vld [vmem:[%s1409_s2] ss:$0 sm:$0xff] }
  0x1d   : > { %502 = vmatpush1.bf16.msra.mxu0 %v1167_v5  ;;  %1147 = vmatpush1.bf16.msra.mxu1 %v1167_v5 }
  0x1e   : > { %503 = vmatprep.subr.bf16.mxu0 %v1229_v1  ;;  %1138 = vmatprep.subr.bf16.mxu1 %v1229_v1 }
  0x21   : > { %504 = vmatpush1.bf16.msra.mxu0 %v1168_v8  ;;  %1148 = vmatpush1.bf16.msra.mxu1 %v1168_v8 }
  0x22   : > { %505 = vmatprep.subr.bf16.mxu0 %v1229_v1  ;;  %1139 = vmatprep.subr.bf16.mxu1 %v1229_v1 }
  0x25   : > { %506 = vmatpush1.bf16.msra.mxu0 %v1169_v9  ;;  %1149 = vmatpush1.bf16.msra.mxu1 %v1169_v9 }
  0x26   : > { %507 = vmatprep.subr.bf16.mxu0 %v1229_v1  ;;  %1140 = vmatprep.subr.bf16.mxu1 %v1229_v1 }
  0x29   : > { %508 = vmatpush1.bf16.msra.mxu0 %v1170_v12  ;;  %1150 = vmatpush1.bf16.msra.mxu1 %v1170_v12 }
  0x2a   : > { %521 = vmatprep.subr.bf16.mxu0 %v1229_v1  ;;  %1141 = vmatprep.subr.bf16.mxu1 %v1229_v1 }
  0x2d   : > { %522 = vmatpush2.bf16.msra.mxu0 %v491_v15  ;;  %1151 = vmatpush2.bf16.msra.mxu1 %v491_v15 }
  0x2e   : > { %523 = vmatprep.subr.bf16.mxu0 %v1229_v1  ;;  %1142 = vmatprep.subr.bf16.mxu1 %v1229_v1 }
  0x31   : > { %524 = vmatpush2.bf16.msra.mxu0 %v1172_v16  ;;  %1152 = vmatpush2.bf16.msra.mxu1 %v1172_v16 }
  0x34   : > { %526 = vmatmul.mubr.bf16.vlgmr.msra.gmra.mxu0 %v1173_v17  ;;  %590 = vmatmul.mubr.bf16.vlgmr.msra.gmra.mxu1 %v1176_v18 }
  0x35   : > { %956 = vmatprep.mubr.msk.bf16.mxu0 %vm437_vm0, %v1179_v19  ;;  %964 = vmatprep.mubr.msk.bf16.mxu1 %vm437_vm0, %v1181_v20 }
  0x3c   : > { %534 = vmatmul.mubr.bf16.gmra.mxu0 %v1183_v21  ;;  %598 = vmatmul.mubr.bf16.gmra.mxu1 %v1184_v22 }
  0x3d   : > { %957 = vmatprep.mubr.msk.bf16.mxu0 %vm437_vm0, %v1185_v23  ;;  %965 = vmatprep.mubr.msk.bf16.mxu1 %vm437_vm0, %v1187_v24 }
  0x44   : > { %542 = vmatmul.mubr.bf16.gmra.mxu0 %v1189_v25  ;;  %606 = vmatmul.mubr.bf16.gmra.mxu1 %v1190_v26 }
  0x45   : > { %958 = vmatprep.mubr.msk.bf16.mxu0 %vm437_vm0, %v1191_v27  ;;  %966 = vmatprep.mubr.msk.bf16.mxu1 %vm437_vm0, %v1193_v28 }
  0x4c   : > { %550 = vmatmul.mubr.bf16.gmra.mxu0 %v1195_v29  ;;  %614 = vmatmul.mubr.bf16.gmra.mxu1 %v1196_v30 }
  0x4d   : > { %959 = vmatprep.mubr.msk.bf16.mxu0 %vm437_vm0, %v1197_v31  ;;  %967 = vmatprep.mubr.msk.bf16.mxu1 %vm437_vm0, %v1199_v32 }
  0x54   : > { %558 = vmatmul.mubr.bf16.gmra.mxu0 %v1201_v33  ;;  %622 = vmatmul.mubr.bf16.gmra.mxu1 %v1202_v34 }
  0x55   : > { %960 = vmatprep.mubr.msk.bf16.mxu0 %vm437_vm0, %v1203_v35  ;;  %968 = vmatprep.mubr.msk.bf16.mxu1 %vm437_vm0, %v1205_v36 }
  0x5c   : > { %566 = vmatmul.mubr.bf16.gmra.mxu0 %v1207_v37  ;;  %630 = vmatmul.mubr.bf16.gmra.mxu1 %v1208_v38 }
  0x5d   : > { %961 = vmatprep.mubr.msk.bf16.mxu0 %vm437_vm0, %v1209_v39  ;;  %969 = vmatprep.mubr.msk.bf16.mxu1 %vm437_vm0, %v1211_v40 }
  0x64   : > { %574 = vmatmul.mubr.bf16.gmra.mxu0 %v1213_v41  ;;  %638 = vmatmul.mubr.bf16.gmra.mxu1 %v1214_v42 }
  0x65   : > { %962 = vmatprep.mubr.msk.bf16.mxu0 %vm437_vm0, %v1215_v43  ;;  %970 = vmatprep.mubr.msk.bf16.mxu1 %vm437_vm0, %v1217_v44 }
  0x6c   : > { %582 = vmatmul.mubr.bf16.gmra.mxu0 %v1219_v45  ;;  %646 = vmatmul.mubr.bf16.gmra.mxu1 %v1220_v46 }
  0xf4   : > { %v527_v48 = vpop.f32.mrf.mxu0  ;;  %v591_v49 = vpop.f32.mrf.mxu1 }
  0xf5   : > { %v528_v52 = vadd.f32 %v1348_v47, %v527_v48  ;;  %v592_v53 = vadd.f32 %v1348_v47, %v591_v49 }
  0xf6   : > { %v529_v50 = vpop.f32.mrf.mxu0  ;;  %v593_v51 = vpop.f32.mrf.mxu1 }
  0xf7   : > { %v654_v60 = vmax.f32 %v528_v52, 0.0  ;;  %v670_v61 = vmax.f32 %v592_v53, 0.0 }
  0xf8   : > { %v530_v54 = vpop.f32.mrf.mxu0  ;;  %v594_v55 = vpop.f32.mrf.mxu1 }
  0xf9   : > { %v531_v56 = vadd.f32 %v1348_v47, %v530_v54  ;;  %v595_v57 = vadd.f32 %v1348_v47, %v594_v55 }
  0xfa   : > { %v532_v58 = vpop.f32.mrf.mxu0  ;;  %v596_v59 = vpop.f32.mrf.mxu1 }
  0xfb   : > { %v655_v62 = vmax.f32 %v531_v56, 0.0  ;;  %v671_v63 = vmax.f32 %v595_v57, 0.0 }
  0xfc   : > { %v535_v0 = vpop.f32.mrf.mxu0  ;;  %v599_v1 = vpop.f32.mrf.mxu1 }
  0xfd   : > { %v1041_v2 = vpack.c.bf16 %v655_v62, %v654_v60  ;;  %v1081_v3 = vpack.c.bf16 %v671_v63, %v670_v61  ;;  %v536_v6 = vadd.f32 %v1348_v47, %v535_v0  ;;  %v600_v7 = vadd.f32 %v1348_v47, %v599_v1 }
  0xfe   : > { %v537_v4 = vpop.f32.mrf.mxu0  ;;  %v601_v5 = vpop.f32.mrf.mxu1 }
  0xff   : > { %1042 = vst [vmem:[%s1358_s18] sm:$0xff] %v1041_v2   ;;  %1125 = vst [vmem:[%s1358_s18 + $0x40] sm:$0xff] %v1081_v3   ;;  %v656_v14 = vmax.f32 %v536_v6, 0.0  ;;  %v672_v15 = vmax.f32 %v600_v7, 0.0 }
 0x100   : > { %v538_v8 = vpop.f32.mrf.mxu0  ;;  %v602_v9 = vpop.f32.mrf.mxu1 }
 0x101   : > { %v539_v10 = vadd.f32 %v1348_v47, %v538_v8  ;;  %v603_v11 = vadd.f32 %v1348_v47, %v602_v9 }
 0x102   : > { %v540_v12 = vpop.f32.mrf.mxu0  ;;  %v604_v13 = vpop.f32.mrf.mxu1 }
 0x103   : > { %v657_v16 = vmax.f32 %v539_v10, 0.0  ;;  %v673_v17 = vmax.f32 %v603_v11, 0.0 }
 0x104   : > { %v543_v18 = vpop.f32.mrf.mxu0  ;;  %v607_v19 = vpop.f32.mrf.mxu1 }
 0x105   : > { %v1046_v20 = vpack.c.bf16 %v657_v16, %v656_v14  ;;  %v1086_v21 = vpack.c.bf16 %v673_v17, %v672_v15  ;;  %v544_v24 = vadd.f32 %v1348_v47, %v543_v18  ;;  %v608_v25 = vadd.f32 %v1348_v47, %v607_v19 }
 0x106   : > { %v545_v22 = vpop.f32.mrf.mxu0  ;;  %v609_v23 = vpop.f32.mrf.mxu1 }
 0x107   : > { %1118 = vst [vmem:[%s1358_s18 + $0x8] sm:$0xff] %v1046_v20   ;;  %1126 = vst [vmem:[%s1358_s18 + $0x48] sm:$0xff] %v1086_v21   ;;  %v658_v32 = vmax.f32 %v544_v24, 0.0  ;;  %v674_v33 = vmax.f32 %v608_v25, 0.0 }
 0x108   : > { %v546_v26 = vpop.f32.mrf.mxu0  ;;  %v610_v27 = vpop.f32.mrf.mxu1 }
 0x109   : > { %v547_v28 = vadd.f32 %v1348_v47, %v546_v26  ;;  %v611_v29 = vadd.f32 %v1348_v47, %v610_v27 }
 0x10a   : > { %v548_v30 = vpop.f32.mrf.mxu0  ;;  %v612_v31 = vpop.f32.mrf.mxu1 }
 0x10b   : > { %v659_v34 = vmax.f32 %v547_v28, 0.0  ;;  %v675_v35 = vmax.f32 %v611_v29, 0.0 }
 0x10c   : > { %v551_v36 = vpop.f32.mrf.mxu0  ;;  %v615_v37 = vpop.f32.mrf.mxu1 }
 0x10d   : > { %v1051_v38 = vpack.c.bf16 %v659_v34, %v658_v32  ;;  %v1091_v39 = vpack.c.bf16 %v675_v35, %v674_v33  ;;  %v552_v42 = vadd.f32 %v1348_v47, %v551_v36  ;;  %v616_v43 = vadd.f32 %v1348_v47, %v615_v37 }
 0x10e   : > { %v553_v40 = vpop.f32.mrf.mxu0  ;;  %v617_v41 = vpop.f32.mrf.mxu1 }
 0x10f   : > { %1119 = vst [vmem:[%s1358_s18 + $0x10] sm:$0xff] %v1051_v38   ;;  %1127 = vst [vmem:[%s1358_s18 + $0x50] sm:$0xff] %v1091_v39   ;;  %v660_v51 = vmax.f32 %v552_v42, 0.0  ;;  %v676_v52 = vmax.f32 %v616_v43, 0.0 }
 0x110   : > { %v554_v44 = vpop.f32.mrf.mxu0  ;;  %v618_v45 = vpop.f32.mrf.mxu1 }
 0x111   : > { %v555_v46 = vadd.f32 %v1348_v47, %v554_v44  ;;  %v619_v48 = vadd.f32 %v1348_v47, %v618_v45 }
 0x112   : > { %v556_v49 = vpop.f32.mrf.mxu0  ;;  %v620_v50 = vpop.f32.mrf.mxu1 }
 0x113   : > { %v661_v53 = vmax.f32 %v555_v46, 0.0  ;;  %v677_v54 = vmax.f32 %v619_v48, 0.0 }
 0x114   : > { %v559_v55 = vpop.f32.mrf.mxu0  ;;  %v623_v56 = vpop.f32.mrf.mxu1 }
 0x115   : > { %v1056_v57 = vpack.c.bf16 %v661_v53, %v660_v51  ;;  %v1096_v58 = vpack.c.bf16 %v677_v54, %v676_v52  ;;  %v560_v61 = vadd.f32 %v1348_v47, %v559_v55  ;;  %v624_v62 = vadd.f32 %v1348_v47, %v623_v56 }
 0x116   : > { %v561_v59 = vpop.f32.mrf.mxu0  ;;  %v625_v60 = vpop.f32.mrf.mxu1 }
 0x117   : > { %1120 = vst [vmem:[%s1358_s18 + $0x18] sm:$0xff] %v1056_v57   ;;  %1128 = vst [vmem:[%s1358_s18 + $0x58] sm:$0xff] %v1096_v58   ;;  %v662_v5 = vmax.f32 %v560_v61, 0.0  ;;  %v678_v6 = vmax.f32 %v624_v62, 0.0 }
 0x118   : > { %v562_v63 = vpop.f32.mrf.mxu0  ;;  %v626_v0 = vpop.f32.mrf.mxu1 }
 0x119   : > { %v563_v1 = vadd.f32 %v1348_v47, %v562_v63  ;;  %v627_v2 = vadd.f32 %v1348_v47, %v626_v0 }
 0x11a   : > { %v564_v3 = vpop.f32.mrf.mxu0  ;;  %v628_v4 = vpop.f32.mrf.mxu1 }
 0x11b   : > { %v663_v7 = vmax.f32 %v563_v1, 0.0  ;;  %v679_v8 = vmax.f32 %v627_v2, 0.0 }
 0x11c   : > { %v567_v9 = vpop.f32.mrf.mxu0  ;;  %v631_v10 = vpop.f32.mrf.mxu1 }
 0x11d   : > { %v1061_v11 = vpack.c.bf16 %v663_v7, %v662_v5  ;;  %v1101_v12 = vpack.c.bf16 %v679_v8, %v678_v6  ;;  %v568_v15 = vadd.f32 %v1348_v47, %v567_v9  ;;  %v632_v16 = vadd.f32 %v1348_v47, %v631_v10 }
 0x11e   : > { %v569_v13 = vpop.f32.mrf.mxu0  ;;  %v633_v14 = vpop.f32.mrf.mxu1 }
 0x11f   : > { %1121 = vst [vmem:[%s1358_s18 + $0x20] sm:$0xff] %v1061_v11   ;;  %1129 = vst [vmem:[%s1358_s18 + $0x60] sm:$0xff] %v1101_v12   ;;  %v664_v23 = vmax.f32 %v568_v15, 0.0  ;;  %v680_v24 = vmax.f32 %v632_v16, 0.0 }
 0x120   : > { %v570_v17 = vpop.f32.mrf.mxu0  ;;  %v634_v18 = vpop.f32.mrf.mxu1 }
 0x121   : > { %v571_v19 = vadd.f32 %v1348_v47, %v570_v17  ;;  %v635_v20 = vadd.f32 %v1348_v47, %v634_v18 }
 0x122   : > { %v572_v21 = vpop.f32.mrf.mxu0  ;;  %v636_v22 = vpop.f32.mrf.mxu1 }
 0x123   : > { %v665_v25 = vmax.f32 %v571_v19, 0.0  ;;  %v681_v26 = vmax.f32 %v635_v20, 0.0 }
 0x124   : > { %v575_v27 = vpop.f32.mrf.mxu0  ;;  %v639_v28 = vpop.f32.mrf.mxu1 }
 0x125   : > { %v1066_v29 = vpack.c.bf16 %v665_v25, %v664_v23  ;;  %v1106_v30 = vpack.c.bf16 %v681_v26, %v680_v24  ;;  %v576_v33 = vadd.f32 %v1348_v47, %v575_v27  ;;  %v640_v34 = vadd.f32 %v1348_v47, %v639_v28 }
 0x126   : > { %v577_v31 = vpop.f32.mrf.mxu0  ;;  %v641_v32 = vpop.f32.mrf.mxu1 }
 0x127   : > { %1122 = vst [vmem:[%s1358_s18 + $0x28] sm:$0xff] %v1066_v29   ;;  %1130 = vst [vmem:[%s1358_s18 + $0x68] sm:$0xff] %v1106_v30   ;;  %v666_v41 = vmax.f32 %v576_v33, 0.0  ;;  %v682_v42 = vmax.f32 %v640_v34, 0.0 }
 0x128   : > { %v578_v35 = vpop.f32.mrf.mxu0  ;;  %v642_v36 = vpop.f32.mrf.mxu1 }
 0x129   : > { %v579_v37 = vadd.f32 %v1348_v47, %v578_v35  ;;  %v643_v38 = vadd.f32 %v1348_v47, %v642_v36 }
 0x12a   : > { %v580_v39 = vpop.f32.mrf.mxu0  ;;  %v644_v40 = vpop.f32.mrf.mxu1 }
 0x12b   : > { %v667_v43 = vmax.f32 %v579_v37, 0.0  ;;  %v683_v44 = vmax.f32 %v643_v38, 0.0 }
 0x12c   : > { %v583_v45 = vpop.f32.mrf.mxu0  ;;  %v647_v46 = vpop.f32.mrf.mxu1 }
 0x12d   : > { %v1071_v48 = vpack.c.bf16 %v667_v43, %v666_v41  ;;  %v1111_v49 = vpack.c.bf16 %v683_v44, %v682_v42  ;;  %v584_v52 = vadd.f32 %v1348_v47, %v583_v45  ;;  %v648_v53 = vadd.f32 %v1348_v47, %v647_v46 }
 0x12e   : > { %v585_v50 = vpop.f32.mrf.mxu0  ;;  %v649_v51 = vpop.f32.mrf.mxu1 }
 0x12f   : > { %1123 = vst [vmem:[%s1358_s18 + $0x30] sm:$0xff] %v1071_v48   ;;  %1131 = vst [vmem:[%s1358_s18 + $0x70] sm:$0xff] %v1111_v49   ;;  %v668_v60 = vmax.f32 %v584_v52, 0.0  ;;  %v684_v61 = vmax.f32 %v648_v53, 0.0 }
 0x130   : > { %v586_v54 = vpop.f32.mrf.mxu0  ;;  %v650_v55 = vpop.f32.mrf.mxu1 }
 0x131   : > { %v587_v56 = vadd.f32 %v1348_v47, %v586_v54  ;;  %v651_v57 = vadd.f32 %v1348_v47, %v650_v55 }
 0x132   : > { %v588_v58 = vpop.f32.mrf.mxu0  ;;  %v652_v59 = vpop.f32.mrf.mxu1 }
 0x133   : > { %v669_v62 = vmax.f32 %v587_v56, 0.0  ;;  %v685_v63 = vmax.f32 %v651_v57, 0.0 }
 0x135   : > { %v1076_v0 = vpack.c.bf16 %v669_v62, %v668_v60  ;;  %v1116_v1 = vpack.c.bf16 %v685_v63, %v684_v61 }
 0x137   : > { %1124 = vst [vmem:[%s1358_s18 + $0x38] sm:$0xff] %v1076_v0   ;;  %1132 = vst [vmem:[%s1358_s18 + $0x78] sm:$0xff] %v1116_v1  }
 0x138 PF: > { %s13_s12 = sadd.s32 1, %s1227_s12  }
 0x139   : > { %p10_p4 = scmp.ge.s32.totalorder %s13_s12, 10  }
 0x13b   :  { %12 = sbr.rel (!%p10_p4) target bundleno = 1 (0x1), region = 62 }

// kernel: visual_extractor_forward.5
= control target key start
LH: loop header
LB: loop body
LE: loop exit
PB: predicated region body
PF: predicated region fallthrough
CT: control target
= control target key end

     0   :  { %s1348_s6 = smov 0   ;;  %s1350_s7 = smov 0   ;;  %s1708_s0 = inlined_call_operand.vmem [shape: bf16[9,512,128], index: 0, kind: input, shape index: {}]   ;;  %s1709_s1 = inlined_call_operand.vmem [shape: bf16[512,128], index: 1, kind: output, shape index: {}]  }
   0x1   :  { %s1352_s8 = smov 0  }
   0x2 LB: > { %s1093_s9 = sadd.s32 4294967295, %s1336_s8   ;;  %s1365_s10 = sadd.s32 1, %s1336_s8   ;;  %s1336_s8 = sphi %s1352_s8, %s1712_s8   ;;  %s1332_s7 = sphi %s1350_s7, %s1711_s7   ;;  %s1328_s6 = sphi %s1348_s6, %s1710_s6  }
   0x3   : > { %s15_s11 = ssub.s32 %s1336_s8, %s1365_s10  ;;  %s18_s12 = sadd.s32 1, %s1332_s7 }
   0x4   : > { %p16_p0 = scmp.eq.s32.totalorder %s15_s11, 0  ;;  %p25_p1 = scmp.ne.s32.totalorder %s1332_s7, %s1328_s6 }
   0x5   : > { %p26_p2 = scmp.eq.s32.totalorder %s1336_s8, 0  ;;  %p1096_p4 = scmp.ge.s32.totalorder %s1336_s8, 4 }
   0x6   : > { %s1374_s13 = scalar_select %p16_p0, %s1332_s7, %s18_s12  }
   0x7   : > { %p27_p3 = por %p26_p2, %p25_p1  ;;  %77 = sbr.rel (%p1096_p4) target bundleno = 53 (0x35), region = 16 }
   0xc   : > { %80 = sbr.rel (!%p27_p3) target bundleno = 53 (0x35), region = 20  ;;  %s82_s14 = sand.u32 (%p27_p3), 1, %s1332_s7  }
   0xd   : > { %s1232_s15 = sshll.u32 (%p27_p3), %s1336_s8, 6  ;;  %s1288_s16 = smul.u32 (%p27_p3), 576, %s82_s14 }
   0xe   : > { %s1382_s19 = scalar_lea.vmem (%p27_p3), %s1708_s0, %s1232_s15 }
   0xf   : > { %v104_v0 = vld [vmem:[%s1382_s19] sm:$0xff] (%p27_p3)   ;;  %v108_v1 = vld [vmem:[%s1382_s19 + $0x8] sm:$0xff] (%p27_p3)   ;;  %v112_v2 = vld [vmem:[%s1382_s19 + $0x10] sm:$0xff] (%p27_p3)   ;;  %s1390_s20 = scalar_lea.vmem (%p27_p3), [#allocation2], %s1288_s16 }
  0x10   : > { %v116_v3 = vld [vmem:[%s1382_s19 + $0x18] sm:$0xff] (%p27_p3)   ;;  %v120_v4 = vld [vmem:[%s1382_s19 + $0x20] sm:$0xff] (%p27_p3)   ;;  %v124_v5 = vld [vmem:[%s1382_s19 + $0x28] sm:$0xff] (%p27_p3)   ;;  %105 = vst [vmem:[%s1390_s20] sm:$0xff] (%p27_p3), %v104_v0  }
  0x11   : > { %109 = vst [vmem:[%s1390_s20 + $0x8] sm:$0xff] %v108_v1   ;;  %113 = vst [vmem:[%s1390_s20 + $0x10] sm:$0xff] %v112_v2   ;;  %v128_v6 = vld [vmem:[%s1382_s19 + $0x30] sm:$0xff]   ;;  %v132_v7 = vld [vmem:[%s1382_s19 + $0x38] sm:$0xff]  }
  0x12   : > { %117 = vst [vmem:[%s1390_s20 + $0x18] sm:$0xff] %v116_v3   ;;  %121 = vst [vmem:[%s1390_s20 + $0x20] sm:$0xff] %v120_v4   ;;  %v136_v8 = vld [vmem:[%s1382_s19 + $0x100] sm:$0xff]   ;;  %v140_v9 = vld [vmem:[%s1382_s19 + $0x108] sm:$0xff]  }
  0x13   : > { %125 = vst [vmem:[%s1390_s20 + $0x28] sm:$0xff] %v124_v5   ;;  %129 = vst [vmem:[%s1390_s20 + $0x30] sm:$0xff] %v128_v6   ;;  %v144_v10 = vld [vmem:[%s1382_s19 + $0x110] sm:$0xff]   ;;  %v148_v11 = vld [vmem:[%s1382_s19 + $0x118] sm:$0xff]  }
  0x14   : > { %133 = vst [vmem:[%s1390_s20 + $0x38] sm:$0xff] %v132_v7   ;;  %137 = vst [vmem:[%s1390_s20 + $0x40] sm:$0xff] %v136_v8   ;;  %v152_v12 = vld [vmem:[%s1382_s19 + $0x120] sm:$0xff]   ;;  %v156_v13 = vld [vmem:[%s1382_s19 + $0x128] sm:$0xff]  }
  0x15   : > { %141 = vst [vmem:[%s1390_s20 + $0x48] sm:$0xff] %v140_v9   ;;  %145 = vst [vmem:[%s1390_s20 + $0x50] sm:$0xff] %v144_v10   ;;  %v160_v14 = vld [vmem:[%s1382_s19 + $0x130] sm:$0xff]   ;;  %v164_v15 = vld [vmem:[%s1382_s19 + $0x138] sm:$0xff]  }
  0x16   : > { %149 = vst [vmem:[%s1390_s20 + $0x58] sm:$0xff] %v148_v11   ;;  %153 = vst [vmem:[%s1390_s20 + $0x60] sm:$0xff] %v152_v12   ;;  %v168_v16 = vld [vmem:[%s1382_s19 + $0x200] sm:$0xff]   ;;  %v172_v17 = vld [vmem:[%s1382_s19 + $0x208] sm:$0xff]  }
  0x17   : > { %157 = vst [vmem:[%s1390_s20 + $0x68] sm:$0xff] %v156_v13   ;;  %161 = vst [vmem:[%s1390_s20 + $0x70] sm:$0xff] %v160_v14   ;;  %v176_v18 = vld [vmem:[%s1382_s19 + $0x210] sm:$0xff]   ;;  %v180_v19 = vld [vmem:[%s1382_s19 + $0x218] sm:$0xff]  }
  0x18   : > { %165 = vst [vmem:[%s1390_s20 + $0x78] sm:$0xff] %v164_v15   ;;  %169 = vst [vmem:[%s1390_s20 + $0x80] sm:$0xff] %v168_v16   ;;  %v184_v20 = vld [vmem:[%s1382_s19 + $0x220] sm:$0xff]   ;;  %v188_v21 = vld [vmem:[%s1382_s19 + $0x228] sm:$0xff]  }
  0x19   : > { %173 = vst [vmem:[%s1390_s20 + $0x88] sm:$0xff] %v172_v17   ;;  %177 = vst [vmem:[%s1390_s20 + $0x90] sm:$0xff] %v176_v18   ;;  %v192_v22 = vld [vmem:[%s1382_s19 + $0x230] sm:$0xff]   ;;  %v196_v23 = vld [vmem:[%s1382_s19 + $0x238] sm:$0xff]  }
  0x1a   : > { %181 = vst [vmem:[%s1390_s20 + $0x98] sm:$0xff] %v180_v19   ;;  %185 = vst [vmem:[%s1390_s20 + $0xa0] sm:$0xff] %v184_v20   ;;  %v200_v24 = vld [vmem:[%s1382_s19 + $0x300] sm:$0xff]   ;;  %v204_v25 = vld [vmem:[%s1382_s19 + $0x308] sm:$0xff]  }
  0x1b   : > { %189 = vst [vmem:[%s1390_s20 + $0xa8] sm:$0xff] %v188_v21   ;;  %193 = vst [vmem:[%s1390_s20 + $0xb0] sm:$0xff] %v192_v22   ;;  %v208_v26 = vld [vmem:[%s1382_s19 + $0x310] sm:$0xff]   ;;  %v212_v27 = vld [vmem:[%s1382_s19 + $0x318] sm:$0xff]  }
  0x1c   : > { %197 = vst [vmem:[%s1390_s20 + $0xb8] sm:$0xff] %v196_v23   ;;  %201 = vst [vmem:[%s1390_s20 + $0xc0] sm:$0xff] %v200_v24   ;;  %v216_v28 = vld [vmem:[%s1382_s19 + $0x320] sm:$0xff]   ;;  %v220_v29 = vld [vmem:[%s1382_s19 + $0x328] sm:$0xff]  }
  0x1d   : > { %205 = vst [vmem:[%s1390_s20 + $0xc8] sm:$0xff] %v204_v25   ;;  %209 = vst [vmem:[%s1390_s20 + $0xd0] sm:$0xff] %v208_v26   ;;  %v224_v30 = vld [vmem:[%s1382_s19 + $0x330] sm:$0xff]   ;;  %v228_v31 = vld [vmem:[%s1382_s19 + $0x338] sm:$0xff]  }
  0x1e   : > { %213 = vst [vmem:[%s1390_s20 + $0xd8] sm:$0xff] %v212_v27   ;;  %217 = vst [vmem:[%s1390_s20 + $0xe0] sm:$0xff] %v216_v28   ;;  %v232_v32 = vld [vmem:[%s1382_s19 + $0x400] sm:$0xff]   ;;  %v236_v33 = vld [vmem:[%s1382_s19 + $0x408] sm:$0xff]  }
  0x1f   : > { %221 = vst [vmem:[%s1390_s20 + $0xe8] sm:$0xff] %v220_v29   ;;  %225 = vst [vmem:[%s1390_s20 + $0xf0] sm:$0xff] %v224_v30   ;;  %v240_v34 = vld [vmem:[%s1382_s19 + $0x410] sm:$0xff]   ;;  %v244_v35 = vld [vmem:[%s1382_s19 + $0x418] sm:$0xff]  }
  0x20   : > { %229 = vst [vmem:[%s1390_s20 + $0xf8] sm:$0xff] %v228_v31   ;;  %233 = vst [vmem:[%s1390_s20 + $0x100] sm:$0xff] %v232_v32   ;;  %v248_v36 = vld [vmem:[%s1382_s19 + $0x420] sm:$0xff]   ;;  %v252_v37 = vld [vmem:[%s1382_s19 + $0x428] sm:$0xff]  }
  0x21   : > { %237 = vst [vmem:[%s1390_s20 + $0x108] sm:$0xff] %v236_v33   ;;  %241 = vst [vmem:[%s1390_s20 + $0x110] sm:$0xff] %v240_v34   ;;  %v256_v38 = vld [vmem:[%s1382_s19 + $0x430] sm:$0xff]   ;;  %v260_v39 = vld [vmem:[%s1382_s19 + $0x438] sm:$0xff]  }
  0x22   : > { %245 = vst [vmem:[%s1390_s20 + $0x118] sm:$0xff] %v244_v35   ;;  %249 = vst [vmem:[%s1390_s20 + $0x120] sm:$0xff] %v248_v36   ;;  %v264_v40 = vld [vmem:[%s1382_s19 + $0x500] sm:$0xff]   ;;  %v268_v41 = vld [vmem:[%s1382_s19 + $0x508] sm:$0xff]  }
  0x23   : > { %253 = vst [vmem:[%s1390_s20 + $0x128] sm:$0xff] %v252_v37   ;;  %257 = vst [vmem:[%s1390_s20 + $0x130] sm:$0xff] %v256_v38   ;;  %v272_v42 = vld [vmem:[%s1382_s19 + $0x510] sm:$0xff]   ;;  %v276_v43 = vld [vmem:[%s1382_s19 + $0x518] sm:$0xff]  }
  0x24   : > { %261 = vst [vmem:[%s1390_s20 + $0x138] sm:$0xff] %v260_v39   ;;  %265 = vst [vmem:[%s1390_s20 + $0x140] sm:$0xff] %v264_v40   ;;  %v280_v44 = vld [vmem:[%s1382_s19 + $0x520] sm:$0xff]   ;;  %v284_v45 = vld [vmem:[%s1382_s19 + $0x528] sm:$0xff]  }
  0x25   : > { %269 = vst [vmem:[%s1390_s20 + $0x148] sm:$0xff] %v268_v41   ;;  %273 = vst [vmem:[%s1390_s20 + $0x150] sm:$0xff] %v272_v42   ;;  %v288_v46 = vld [vmem:[%s1382_s19 + $0x530] sm:$0xff]   ;;  %v292_v47 = vld [vmem:[%s1382_s19 + $0x538] sm:$0xff]  }
  0x26   : > { %277 = vst [vmem:[%s1390_s20 + $0x158] sm:$0xff] %v276_v43   ;;  %281 = vst [vmem:[%s1390_s20 + $0x160] sm:$0xff] %v280_v44   ;;  %v296_v48 = vld [vmem:[%s1382_s19 + $0x600] sm:$0xff]   ;;  %v300_v49 = vld [vmem:[%s1382_s19 + $0x608] sm:$0xff]  }
  0x27   : > { %285 = vst [vmem:[%s1390_s20 + $0x168] sm:$0xff] %v284_v45   ;;  %289 = vst [vmem:[%s1390_s20 + $0x170] sm:$0xff] %v288_v46   ;;  %v304_v50 = vld [vmem:[%s1382_s19 + $0x610] sm:$0xff]   ;;  %v308_v51 = vld [vmem:[%s1382_s19 + $0x618] sm:$0xff]  }
  0x28   : > { %293 = vst [vmem:[%s1390_s20 + $0x178] sm:$0xff] %v292_v47   ;;  %297 = vst [vmem:[%s1390_s20 + $0x180] sm:$0xff] %v296_v48   ;;  %v312_v52 = vld [vmem:[%s1382_s19 + $0x620] sm:$0xff]   ;;  %v316_v53 = vld [vmem:[%s1382_s19 + $0x628] sm:$0xff]  }
  0x29   : > { %301 = vst [vmem:[%s1390_s20 + $0x188] sm:$0xff] %v300_v49   ;;  %305 = vst [vmem:[%s1390_s20 + $0x190] sm:$0xff] %v304_v50   ;;  %v320_v54 = vld [vmem:[%s1382_s19 + $0x630] sm:$0xff]   ;;  %v324_v55 = vld [vmem:[%s1382_s19 + $0x638] sm:$0xff]  }
  0x2a   : > { %309 = vst [vmem:[%s1390_s20 + $0x198] sm:$0xff] %v308_v51   ;;  %313 = vst [vmem:[%s1390_s20 + $0x1a0] sm:$0xff] %v312_v52   ;;  %v328_v56 = vld [vmem:[%s1382_s19 + $0x700] sm:$0xff]   ;;  %v332_v57 = vld [vmem:[%s1382_s19 + $0x708] sm:$0xff]  }
  0x2b   : > { %317 = vst [vmem:[%s1390_s20 + $0x1a8] sm:$0xff] %v316_v53   ;;  %321 = vst [vmem:[%s1390_s20 + $0x1b0] sm:$0xff] %v320_v54   ;;  %v336_v58 = vld [vmem:[%s1382_s19 + $0x710] sm:$0xff]   ;;  %v340_v59 = vld [vmem:[%s1382_s19 + $0x718] sm:$0xff]  }
  0x2c   : > { %325 = vst [vmem:[%s1390_s20 + $0x1b8] sm:$0xff] %v324_v55   ;;  %329 = vst [vmem:[%s1390_s20 + $0x1c0] sm:$0xff] %v328_v56   ;;  %v344_v60 = vld [vmem:[%s1382_s19 + $0x720] sm:$0xff]   ;;  %v348_v61 = vld [vmem:[%s1382_s19 + $0x728] sm:$0xff]  }
  0x2d   : > { %333 = vst [vmem:[%s1390_s20 + $0x1c8] sm:$0xff] %v332_v57   ;;  %337 = vst [vmem:[%s1390_s20 + $0x1d0] sm:$0xff] %v336_v58   ;;  %v352_v62 = vld [vmem:[%s1382_s19 + $0x730] sm:$0xff]   ;;  %v356_v63 = vld [vmem:[%s1382_s19 + $0x738] sm:$0xff]  }
  0x2e   : > { %341 = vst [vmem:[%s1390_s20 + $0x1d8] sm:$0xff] %v340_v59   ;;  %345 = vst [vmem:[%s1390_s20 + $0x1e0] sm:$0xff] %v344_v60   ;;  %v360_v0 = vld [vmem:[%s1382_s19 + $0x800] sm:$0xff]   ;;  %v364_v1 = vld [vmem:[%s1382_s19 + $0x808] sm:$0xff]  }
  0x2f   : > { %349 = vst [vmem:[%s1390_s20 + $0x1e8] sm:$0xff] %v348_v61   ;;  %353 = vst [vmem:[%s1390_s20 + $0x1f0] sm:$0xff] %v352_v62   ;;  %v368_v2 = vld [vmem:[%s1382_s19 + $0x810] sm:$0xff]   ;;  %v372_v3 = vld [vmem:[%s1382_s19 + $0x818] sm:$0xff]  }
  0x30   : > { %357 = vst [vmem:[%s1390_s20 + $0x1f8] sm:$0xff] %v356_v63   ;;  %361 = vst [vmem:[%s1390_s20 + $0x200] sm:$0xff] %v360_v0   ;;  %v376_v4 = vld [vmem:[%s1382_s19 + $0x820] sm:$0xff]   ;;  %v380_v5 = vld [vmem:[%s1382_s19 + $0x828] sm:$0xff]  }
  0x31   : > { %365 = vst [vmem:[%s1390_s20 + $0x208] sm:$0xff] %v364_v1   ;;  %369 = vst [vmem:[%s1390_s20 + $0x210] sm:$0xff] %v368_v2   ;;  %v384_v6 = vld [vmem:[%s1382_s19 + $0x830] sm:$0xff]   ;;  %v388_v7 = vld [vmem:[%s1382_s19 + $0x838] sm:$0xff]  }
  0x32   : > { %373 = vst [vmem:[%s1390_s20 + $0x218] sm:$0xff] %v372_v3   ;;  %377 = vst [vmem:[%s1390_s20 + $0x220] sm:$0xff] %v376_v4  }
  0x33   : > { %381 = vst [vmem:[%s1390_s20 + $0x228] sm:$0xff] %v380_v5   ;;  %385 = vst [vmem:[%s1390_s20 + $0x230] sm:$0xff] %v384_v6  }
  0x34   : > { %389 = vst [vmem:[%s1390_s20 + $0x238] sm:$0xff] %v388_v7  }
  0x35 PF: > { %p1099_p5 = scmp.ge.s32.totalorder %s1336_s8, 1  ;;  %p702_p6 = scmp.lt.s32.totalorder %s1336_s8, 5 }
  0x37   : > { %p703_p7 = pnand %p1099_p5, %p702_p6 }
  0x38   : > { %s709_s21 = sand.u32 (!%p703_p7), 1, %s1328_s6   ;;  %s1100_s24 = sshll.u32 (!%p703_p7), %s1093_s9, 4 }
  0x39   : > { %706 = sbr.rel (%p703_p7) target bundleno = 125 (0x7d), region = 61  ;;  %p730_p8 = scmp.lt.s32.totalorder (!%p703_p7), %s1100_s24, 63 }
  0x3a   : > { %s1289_s22 = smul.u32 (!%p703_p7), 576, %s709_s21 }
  0x3c   : > { %s1533_s23 = scalar_lea.vmem (!%p703_p7), [#allocation2], %s1289_s22 }
  0x3e   : > { %v735_v8 = vld [vmem:[%s1533_s23] sm:$0xf]  ;;  %v736_v9 = vld [vmem:[%s1533_s23 + $0x4] sm:$0xf]  ;;  %v737_v26 = vld [vmem:[%s1533_s23 + $0x8] sm:$0xf] }
  0x3f   : > { %v1102_v10 = vld [vmem:[%s1533_s23 + $0x40] sm:$0xf]  ;;  %v1103_v11 = vld [vmem:[%s1533_s23 + $0x44] sm:$0xf]  ;;  %v738_v27 = vld [vmem:[%s1533_s23 + $0xc] sm:$0xf] }
  0x40   : > { %v1118_v12 = vld [vmem:[%s1533_s23 + $0x80] sm:$0xf]  ;;  %v768_v13 = vmax.bf16 %v1102_v10, %v735_v8  ;;  %v769_v14 = vmax.bf16 %v1103_v11, %v736_v9  ;;  %v1119_v15 = vld [vmem:[%s1533_s23 + $0x84] sm:$0xf]  ;;  %v1104_v28 = vld [vmem:[%s1533_s23 + $0x48] sm:$0xf] }
  0x41   : > { %v1134_v16 = vld [vmem:[%s1533_s23 + $0xc0] sm:$0xf]  ;;  %v1135_v17 = vld [vmem:[%s1533_s23 + $0xc4] sm:$0xf]  ;;  %v1105_v29 = vld [vmem:[%s1533_s23 + $0x4c] sm:$0xf]  ;;  %v770_v33 = vmax.bf16 %v1104_v28, %v737_v26 }
  0x42   : > { %v801_v18 = vmax.bf16 %v1118_v12, %v768_v13  ;;  %v802_v19 = vmax.bf16 %v1119_v15, %v769_v14  ;;  %v1150_v20 = vld [vmem:[%s1533_s23 + $0x100] sm:$0xf]  ;;  %v1151_v21 = vld [vmem:[%s1533_s23 + $0x104] sm:$0xf]  ;;  %v771_v34 = vmax.bf16 %v1105_v29, %v738_v27  ;;  %v1120_v35 = vld [vmem:[%s1533_s23 + $0x88] sm:$0xf] }
  0x43   : > { %v1166_v24 = vld [vmem:[%s1533_s23 + $0x140] sm:$0xf]  ;;  %v1167_v25 = vld [vmem:[%s1533_s23 + $0x144] sm:$0xf]  ;;  %v1121_v36 = vld [vmem:[%s1533_s23 + $0x8c] sm:$0xf]  ;;  %v803_v44 = vmax.bf16 %v1120_v35, %v770_v33 }
  0x44   : > { %v834_v22 = vmax.bf16 %v1134_v16, %v801_v18  ;;  %v835_v23 = vmax.bf16 %v1135_v17, %v802_v19  ;;  %v1182_v32 = vld [vmem:[%s1533_s23 + $0x180] sm:$0xf]  ;;  %v1183_v37 = vld [vmem:[%s1533_s23 + $0x184] sm:$0xf]  ;;  %v1136_v38 = vld [vmem:[%s1533_s23 + $0xc8] sm:$0xf]  ;;  %v804_v45 = vmax.bf16 %v1121_v36, %v771_v34 }
  0x45   : > { %v1137_v39 = vld [vmem:[%s1533_s23 + $0xcc] sm:$0xf]  ;;  %s1714_s24 = smov (!%p730_p8, %s1100_s24), 63  ;;  %v1198_v42 = vld [vmem:[%s1533_s23 + $0x1c0] sm:$0xf]  ;;  %v836_v52 = vmax.bf16 %v1136_v38, %v803_v44 }
  0x46   : > { %v867_v30 = vmax.bf16 %v1150_v20, %v834_v22  ;;  %v868_v31 = vmax.bf16 %v1151_v21, %v835_v23  ;;  %v1199_v43 = vld [vmem:[%s1533_s23 + $0x1c4] sm:$0xf]  ;;  %v1214_v46 = vld [vmem:[%s1533_s23 + $0x200] sm:$0xf]  ;;  %v1152_v48 = vld [vmem:[%s1533_s23 + $0x108] sm:$0xf]  ;;  %v837_v53 = vmax.bf16 %v1137_v39, %v804_v45 }
  0x47   : > { %v1215_v47 = vld [vmem:[%s1533_s23 + $0x204] sm:$0xf]  ;;  %v1153_v49 = vld [vmem:[%s1533_s23 + $0x10c] sm:$0xf]  ;;  %v1168_v54 = vld [vmem:[%s1533_s23 + $0x148] sm:$0xf]  ;;  %v869_v62 = vmax.bf16 %v1152_v48, %v836_v52 }
  0x48   : > { %v900_v40 = vmax.bf16 %v1166_v24, %v867_v30  ;;  %v901_v41 = vmax.bf16 %v1167_v25, %v868_v31  ;;  %v1169_v55 = vld [vmem:[%s1533_s23 + $0x14c] sm:$0xf]  ;;  %v739_v56 = vld [vmem:[%s1533_s23 + $0x10] sm:$0xf]  ;;  %v740_v57 = vld [vmem:[%s1533_s23 + $0x14] sm:$0xf]  ;;  %v870_v63 = vmax.bf16 %v1153_v49, %v837_v53 }
  0x49   : > { %v1106_v58 = vld [vmem:[%s1533_s23 + $0x50] sm:$0xf]  ;;  %v1107_v59 = vld [vmem:[%s1533_s23 + $0x54] sm:$0xf]  ;;  %s1101_s25 = sshll.u32 %s1714_s24, 2  ;;  %v902_v9 = vmax.bf16 %v1168_v54, %v869_v62 }
  0x4a   : > { %v933_v50 = vmax.bf16 %v1182_v32, %v900_v40  ;;  %v934_v51 = vmax.bf16 %v1183_v37, %v901_v41  ;;  %v1122_v0 = vld [vmem:[%s1533_s23 + $0x90] sm:$0xf]  ;;  %v1123_v1 = vld [vmem:[%s1533_s23 + $0x94] sm:$0xf]  ;;  %v1184_v2 = vld [vmem:[%s1533_s23 + $0x188] sm:$0xf]  ;;  %v772_v5 = vmax.bf16 %v1106_v58, %v739_v56  ;;  %v773_v6 = vmax.bf16 %v1107_v59, %v740_v57  ;;  %s1586_s28 = scalar_lea.vmem %s1709_s1, %s1101_s25 }
  0x4b   : > { %v1185_v3 = vld [vmem:[%s1533_s23 + $0x18c] sm:$0xf]  ;;  %v1200_v4 = vld [vmem:[%s1533_s23 + $0x1c8] sm:$0xf]  ;;  %v903_v10 = vmax.bf16 %v1169_v55, %v870_v63  ;;  %v1138_v12 = vld [vmem:[%s1533_s23 + $0xd0] sm:$0xf]  ;;  %v935_v20 = vmax.bf16 %v1184_v2, %v902_v9 }
  0x4c   : > { %v966_v60 = vmax.bf16 %v1198_v42, %v933_v50  ;;  %v967_v61 = vmax.bf16 %v1199_v43, %v934_v51  ;;  %v1201_v11 = vld [vmem:[%s1533_s23 + $0x1cc] sm:$0xf]  ;;  %v1139_v13 = vld [vmem:[%s1533_s23 + $0xd4] sm:$0xf]  ;;  %v1216_v14 = vld [vmem:[%s1533_s23 + $0x208] sm:$0xf]  ;;  %v805_v16 = vmax.bf16 %v1122_v0, %v772_v5  ;;  %v806_v17 = vmax.bf16 %v1123_v1, %v773_v6 }
  0x4d   : > { %v1217_v15 = vld [vmem:[%s1533_s23 + $0x20c] sm:$0xf]  ;;  %v1154_v18 = vld [vmem:[%s1533_s23 + $0x110] sm:$0xf]  ;;  %v936_v21 = vmax.bf16 %v1185_v3, %v903_v10  ;;  %v1155_v22 = vld [vmem:[%s1533_s23 + $0x114] sm:$0xf]  ;;  %v968_v30 = vmax.bf16 %v1200_v4, %v935_v20 }
  0x4e   : > { %v999_v7 = vmax.bf16 %v1214_v46, %v966_v60  ;;  %v1000_v8 = vmax.bf16 %v1215_v47, %v967_v61  ;;  %v1170_v23 = vld [vmem:[%s1533_s23 + $0x150] sm:$0xf]  ;;  %v741_v24 = vld [vmem:[%s1533_s23 + $0x18] sm:$0xf]  ;;  %v838_v25 = vmax.bf16 %v1138_v12, %v805_v16  ;;  %v839_v26 = vmax.bf16 %v1139_v13, %v806_v17  ;;  %v742_v27 = vld [vmem:[%s1533_s23 + $0x1c] sm:$0xf] }
  0x4f   : > { %v1108_v28 = vld [vmem:[%s1533_s23 + $0x58] sm:$0xf]  ;;  %v1109_v29 = vld [vmem:[%s1533_s23 + $0x5c] sm:$0xf]  ;;  %v969_v31 = vmax.bf16 %v1201_v11, %v936_v21  ;;  %v1171_v32 = vld [vmem:[%s1533_s23 + $0x154] sm:$0xf]  ;;  %v1001_v41 = vmax.bf16 %v1216_v14, %v968_v30 }
  0x50   : > { %v1273_v19 = vcombine.low %v999_v7, %v1000_v8  ;;  %v774_v33 = vmax.bf16 %v1108_v28, %v741_v24  ;;  %v775_v34 = vmax.bf16 %v1109_v29, %v742_v27  ;;  %v1124_v35 = vld [vmem:[%s1533_s23 + $0x98] sm:$0xf]  ;;  %v1125_v36 = vld [vmem:[%s1533_s23 + $0x9c] sm:$0xf]  ;;  %v871_v37 = vmax.bf16 %v1154_v18, %v838_v25  ;;  %v1186_v43 = vld [vmem:[%s1533_s23 + $0x190] sm:$0xf] }
  0x51   : > { %v872_v38 = vmax.bf16 %v1155_v22, %v839_v26  ;;  %v1140_v39 = vld [vmem:[%s1533_s23 + $0xd8] sm:$0xf]  ;;  %v1141_v40 = vld [vmem:[%s1533_s23 + $0xdc] sm:$0xf]  ;;  %v1002_v42 = vmax.bf16 %v1217_v15, %v969_v31  ;;  %v1187_v44 = vld [vmem:[%s1533_s23 + $0x194] sm:$0xf] }
  0x52   : > { %1237 = vst [vmem:[%s1586_s28] sm:$0xff] %v1273_v19   ;;  %v1202_v45 = vld [vmem:[%s1533_s23 + $0x1d0] sm:$0xf]  ;;  %v807_v46 = vmax.bf16 %v1124_v35, %v774_v33  ;;  %v808_v47 = vmax.bf16 %v1125_v36, %v775_v34  ;;  %v904_v48 = vmax.bf16 %v1170_v23, %v871_v37  ;;  %v1203_v50 = vld [vmem:[%s1533_s23 + $0x1d4] sm:$0xf]  ;;  %v1156_v51 = vld [vmem:[%s1533_s23 + $0x118] sm:$0xf] }
  0x53   : > { %v905_v49 = vmax.bf16 %v1171_v32, %v872_v38  ;;  %v1157_v52 = vld [vmem:[%s1533_s23 + $0x11c] sm:$0xf]  ;;  %v1274_v53 = vcombine.low %v1001_v41, %v1002_v42  ;;  %v1218_v54 = vld [vmem:[%s1533_s23 + $0x210] sm:$0xf]  ;;  %v1219_v55 = vld [vmem:[%s1533_s23 + $0x214] sm:$0xf] }
  0x54   : > { %v840_v56 = vmax.bf16 %v1140_v39, %v807_v46  ;;  %v841_v57 = vmax.bf16 %v1141_v40, %v808_v47  ;;  %v1172_v58 = vld [vmem:[%s1533_s23 + $0x158] sm:$0xf]  ;;  %v1173_v59 = vld [vmem:[%s1533_s23 + $0x15c] sm:$0xf]  ;;  %v743_v60 = vld [vmem:[%s1533_s23 + $0x20] sm:$0xf]  ;;  %v937_v61 = vmax.bf16 %v1186_v43, %v904_v48 }
  0x55   : > { %v938_v62 = vmax.bf16 %v1187_v44, %v905_v49  ;;  %v744_v63 = vld [vmem:[%s1533_s23 + $0x24] sm:$0xf]  ;;  %v1110_v0 = vld [vmem:[%s1533_s23 + $0x60] sm:$0xf]  ;;  %1275 = vst [vmem:[%s1586_s28 + $0x8] sm:$0xff] %v1274_v53  }
  0x56   : > { %v1111_v1 = vld [vmem:[%s1533_s23 + $0x64] sm:$0xf]  ;;  %v873_v2 = vmax.bf16 %v1156_v51, %v840_v56  ;;  %v874_v3 = vmax.bf16 %v1157_v52, %v841_v57  ;;  %v1188_v4 = vld [vmem:[%s1533_s23 + $0x198] sm:$0xf]  ;;  %v776_v5 = vmax.bf16 %v1110_v0, %v743_v60  ;;  %v1126_v7 = vld [vmem:[%s1533_s23 + $0xa0] sm:$0xf]  ;;  %v970_v9 = vmax.bf16 %v1202_v45, %v937_v61 }
  0x57   : > { %v777_v6 = vmax.bf16 %v1111_v1, %v744_v63  ;;  %v1127_v8 = vld [vmem:[%s1533_s23 + $0xa4] sm:$0xf]  ;;  %v971_v10 = vmax.bf16 %v1203_v50, %v938_v62  ;;  %v1189_v11 = vld [vmem:[%s1533_s23 + $0x19c] sm:$0xf]  ;;  %v1142_v12 = vld [vmem:[%s1533_s23 + $0xe0] sm:$0xf] }
  0x58   : > { %v1143_v13 = vld [vmem:[%s1533_s23 + $0xe4] sm:$0xf]  ;;  %v906_v14 = vmax.bf16 %v1172_v58, %v873_v2  ;;  %v907_v15 = vmax.bf16 %v1173_v59, %v874_v3  ;;  %v1204_v16 = vld [vmem:[%s1533_s23 + $0x1d8] sm:$0xf]  ;;  %v1205_v17 = vld [vmem:[%s1533_s23 + $0x1dc] sm:$0xf]  ;;  %v809_v18 = vmax.bf16 %v1126_v7, %v776_v5  ;;  %v1003_v20 = vmax.bf16 %v1218_v54, %v970_v9 }
  0x59   : > { %v810_v19 = vmax.bf16 %v1127_v8, %v777_v6  ;;  %v1004_v21 = vmax.bf16 %v1219_v55, %v971_v10  ;;  %v1220_v22 = vld [vmem:[%s1533_s23 + $0x218] sm:$0xf]  ;;  %v1221_v23 = vld [vmem:[%s1533_s23 + $0x21c] sm:$0xf]  ;;  %v1158_v24 = vld [vmem:[%s1533_s23 + $0x120] sm:$0xf] }
  0x5a   : > { %v1159_v25 = vld [vmem:[%s1533_s23 + $0x124] sm:$0xf]  ;;  %v939_v26 = vmax.bf16 %v1188_v4, %v906_v14  ;;  %v940_v27 = vmax.bf16 %v1189_v11, %v907_v15  ;;  %v842_v28 = vmax.bf16 %v1142_v12, %v809_v18  ;;  %v1174_v30 = vld [vmem:[%s1533_s23 + $0x160] sm:$0xf]  ;;  %v745_v32 = vld [vmem:[%s1533_s23 + $0x28] sm:$0xf] }
  0x5b   : > { %v843_v29 = vmax.bf16 %v1143_v13, %v810_v19  ;;  %v1175_v31 = vld [vmem:[%s1533_s23 + $0x164] sm:$0xf]  ;;  %v1276_v33 = vcombine.low %v1003_v20, %v1004_v21  ;;  %v746_v34 = vld [vmem:[%s1533_s23 + $0x2c] sm:$0xf]  ;;  %v1112_v35 = vld [vmem:[%s1533_s23 + $0x68] sm:$0xf] }
  0x5c   : > { %v1113_v36 = vld [vmem:[%s1533_s23 + $0x6c] sm:$0xf]  ;;  %v972_v37 = vmax.bf16 %v1204_v16, %v939_v26  ;;  %v973_v38 = vmax.bf16 %v1205_v17, %v940_v27  ;;  %v875_v39 = vmax.bf16 %v1158_v24, %v842_v28  ;;  %v1128_v41 = vld [vmem:[%s1533_s23 + $0xa8] sm:$0xf]  ;;  %v1190_v43 = vld [vmem:[%s1533_s23 + $0x1a0] sm:$0xf]  ;;  %v778_v46 = vmax.bf16 %v1112_v35, %v745_v32 }
  0x5d   : > { %v876_v40 = vmax.bf16 %v1159_v25, %v843_v29  ;;  %v1129_v42 = vld [vmem:[%s1533_s23 + $0xac] sm:$0xf]  ;;  %1277 = vst [vmem:[%s1586_s28 + $0x10] sm:$0xff] %v1276_v33   ;;  %v1191_v44 = vld [vmem:[%s1533_s23 + $0x1a4] sm:$0xf]  ;;  %v779_v47 = vmax.bf16 %v1113_v36, %v746_v34 }
  0x5e   : > { %v1206_v45 = vld [vmem:[%s1533_s23 + $0x1e0] sm:$0xf]  ;;  %v1005_v48 = vmax.bf16 %v1220_v22, %v972_v37  ;;  %v1006_v49 = vmax.bf16 %v1221_v23, %v973_v38  ;;  %v908_v50 = vmax.bf16 %v1174_v30, %v875_v39  ;;  %v1207_v52 = vld [vmem:[%s1533_s23 + $0x1e4] sm:$0xf]  ;;  %v1144_v53 = vld [vmem:[%s1533_s23 + $0xe8] sm:$0xf]  ;;  %v811_v57 = vmax.bf16 %v1128_v41, %v778_v46 }
  0x5f   : > { %v909_v51 = vmax.bf16 %v1175_v31, %v876_v40  ;;  %v1145_v54 = vld [vmem:[%s1533_s23 + $0xec] sm:$0xf]  ;;  %v1222_v55 = vld [vmem:[%s1533_s23 + $0x220] sm:$0xf]  ;;  %v1223_v56 = vld [vmem:[%s1533_s23 + $0x224] sm:$0xf]  ;;  %v812_v58 = vmax.bf16 %v1129_v42, %v779_v47 }
  0x60   : > { %v1160_v59 = vld [vmem:[%s1533_s23 + $0x128] sm:$0xf]  ;;  %v1278_v60 = vcombine.low %v1005_v48, %v1006_v49  ;;  %v941_v61 = vmax.bf16 %v1190_v43, %v908_v50  ;;  %v1161_v63 = vld [vmem:[%s1533_s23 + $0x12c] sm:$0xf]  ;;  %v747_v1 = vld [vmem:[%s1533_s23 + $0x30] sm:$0xf]  ;;  %v844_v2 = vmax.bf16 %v1144_v53, %v811_v57 }
  0x61   : > { %v942_v62 = vmax.bf16 %v1191_v44, %v909_v51  ;;  %v1176_v0 = vld [vmem:[%s1533_s23 + $0x168] sm:$0xf]  ;;  %v845_v3 = vmax.bf16 %v1145_v54, %v812_v58  ;;  %v748_v4 = vld [vmem:[%s1533_s23 + $0x34] sm:$0xf]  ;;  %v1114_v5 = vld [vmem:[%s1533_s23 + $0x70] sm:$0xf] }
  0x62   : > { %v1115_v6 = vld [vmem:[%s1533_s23 + $0x74] sm:$0xf]  ;;  %1279 = vst [vmem:[%s1586_s28 + $0x18] sm:$0xff] %v1278_v60   ;;  %v974_v7 = vmax.bf16 %v1206_v45, %v941_v61  ;;  %v1177_v9 = vld [vmem:[%s1533_s23 + $0x16c] sm:$0xf]  ;;  %v780_v10 = vmax.bf16 %v1114_v5, %v747_v1  ;;  %v877_v14 = vmax.bf16 %v1160_v59, %v844_v2 }
  0x63   : > { %v975_v8 = vmax.bf16 %v1207_v52, %v942_v62  ;;  %v781_v11 = vmax.bf16 %v1115_v6, %v748_v4  ;;  %v1130_v12 = vld [vmem:[%s1533_s23 + $0xb0] sm:$0xf]  ;;  %v1131_v13 = vld [vmem:[%s1533_s23 + $0xb4] sm:$0xf]  ;;  %v878_v15 = vmax.bf16 %v1161_v63, %v845_v3  ;;  %v1192_v20 = vld [vmem:[%s1533_s23 + $0x1a8] sm:$0xf] }
  0x64   : > { %v1146_v16 = vld [vmem:[%s1533_s23 + $0xf0] sm:$0xf]  ;;  %v1147_v17 = vld [vmem:[%s1533_s23 + $0xf4] sm:$0xf]  ;;  %v1007_v18 = vmax.bf16 %v1222_v55, %v974_v7  ;;  %v1193_v21 = vld [vmem:[%s1533_s23 + $0x1ac] sm:$0xf]  ;;  %v813_v23 = vmax.bf16 %v1130_v12, %v780_v10  ;;  %v910_v25 = vmax.bf16 %v1176_v0, %v877_v14 }
  0x65   : > { %v1008_v19 = vmax.bf16 %v1223_v56, %v975_v8  ;;  %v1208_v22 = vld [vmem:[%s1533_s23 + $0x1e8] sm:$0xf]  ;;  %v814_v24 = vmax.bf16 %v1131_v13, %v781_v11  ;;  %v911_v26 = vmax.bf16 %v1177_v9, %v878_v15  ;;  %v1209_v27 = vld [vmem:[%s1533_s23 + $0x1ec] sm:$0xf]  ;;  %v1162_v28 = vld [vmem:[%s1533_s23 + $0x130] sm:$0xf] }
  0x66   : > { %v1163_v29 = vld [vmem:[%s1533_s23 + $0x134] sm:$0xf]  ;;  %v1224_v31 = vld [vmem:[%s1533_s23 + $0x228] sm:$0xf]  ;;  %v1225_v32 = vld [vmem:[%s1533_s23 + $0x22c] sm:$0xf]  ;;  %v846_v33 = vmax.bf16 %v1146_v16, %v813_v23  ;;  %v943_v38 = vmax.bf16 %v1192_v20, %v910_v25 }
  0x67   : > { %v1280_v30 = vcombine.low %v1007_v18, %v1008_v19  ;;  %v847_v34 = vmax.bf16 %v1147_v17, %v814_v24  ;;  %v1178_v35 = vld [vmem:[%s1533_s23 + $0x170] sm:$0xf]  ;;  %v1179_v36 = vld [vmem:[%s1533_s23 + $0x174] sm:$0xf]  ;;  %v749_v37 = vld [vmem:[%s1533_s23 + $0x38] sm:$0xf]  ;;  %v944_v39 = vmax.bf16 %v1193_v21, %v911_v26 }
  0x68   : > { %v750_v40 = vld [vmem:[%s1533_s23 + $0x3c] sm:$0xf]  ;;  %v1116_v41 = vld [vmem:[%s1533_s23 + $0x78] sm:$0xf]  ;;  %v879_v43 = vmax.bf16 %v1162_v28, %v846_v33  ;;  %v1194_v45 = vld [vmem:[%s1533_s23 + $0x1b0] sm:$0xf]  ;;  %v976_v50 = vmax.bf16 %v1208_v22, %v943_v38 }
  0x69   : > { %v1117_v42 = vld [vmem:[%s1533_s23 + $0x7c] sm:$0xf]  ;;  %1281 = vst [vmem:[%s1586_s28 + $0x20] sm:$0xff] %v1280_v30   ;;  %v880_v44 = vmax.bf16 %v1163_v29, %v847_v34  ;;  %v782_v46 = vmax.bf16 %v1116_v41, %v749_v37  ;;  %v1132_v48 = vld [vmem:[%s1533_s23 + $0xb8] sm:$0xf]  ;;  %v977_v51 = vmax.bf16 %v1209_v27, %v944_v39 }
  0x6a   : > { %v783_v47 = vmax.bf16 %v1117_v42, %v750_v40  ;;  %v1133_v49 = vld [vmem:[%s1533_s23 + $0xbc] sm:$0xf]  ;;  %v1195_v52 = vld [vmem:[%s1533_s23 + $0x1b4] sm:$0xf]  ;;  %v1148_v53 = vld [vmem:[%s1533_s23 + $0xf8] sm:$0xf]  ;;  %v912_v55 = vmax.bf16 %v1178_v35, %v879_v43  ;;  %v1009_v60 = vmax.bf16 %v1224_v31, %v976_v50 }
  0x6b   : > { %v1149_v54 = vld [vmem:[%s1533_s23 + $0xfc] sm:$0xf]  ;;  %v913_v56 = vmax.bf16 %v1179_v36, %v880_v44  ;;  %v1210_v57 = vld [vmem:[%s1533_s23 + $0x1f0] sm:$0xf]  ;;  %v815_v58 = vmax.bf16 %v1132_v48, %v782_v46  ;;  %v1010_v61 = vmax.bf16 %v1225_v32, %v977_v51  ;;  %v1211_v62 = vld [vmem:[%s1533_s23 + $0x1f4] sm:$0xf] }
  0x6c   : > { %v816_v59 = vmax.bf16 %v1133_v49, %v783_v47  ;;  %v1164_v63 = vld [vmem:[%s1533_s23 + $0x138] sm:$0xf]  ;;  %v1165_v0 = vld [vmem:[%s1533_s23 + $0x13c] sm:$0xf]  ;;  %v945_v1 = vmax.bf16 %v1194_v45, %v912_v55  ;;  %v1226_v3 = vld [vmem:[%s1533_s23 + $0x230] sm:$0xf] }
  0x6d   : > { %v946_v2 = vmax.bf16 %v1195_v52, %v913_v56  ;;  %v848_v4 = vmax.bf16 %v1148_v53, %v815_v58  ;;  %v1282_v6 = vcombine.low %v1009_v60, %v1010_v61  ;;  %v1227_v7 = vld [vmem:[%s1533_s23 + $0x234] sm:$0xf]  ;;  %v1180_v8 = vld [vmem:[%s1533_s23 + $0x178] sm:$0xf]  ;;  %v1181_v9 = vld [vmem:[%s1533_s23 + $0x17c] sm:$0xf] }
  0x6e   : > { %v849_v5 = vmax.bf16 %v1149_v54, %v816_v59  ;;  %v978_v10 = vmax.bf16 %v1210_v57, %v945_v1  ;;  %v1196_v14 = vld [vmem:[%s1533_s23 + $0x1b8] sm:$0xf]  ;;  %v1197_v15 = vld [vmem:[%s1533_s23 + $0x1bc] sm:$0xf] }
  0x6f   : > { %v979_v11 = vmax.bf16 %v1211_v62, %v946_v2  ;;  %v881_v12 = vmax.bf16 %v1164_v63, %v848_v4  ;;  %1283 = vst [vmem:[%s1586_s28 + $0x28] sm:$0xff] %v1282_v6   ;;  %v1212_v20 = vld [vmem:[%s1533_s23 + $0x1f8] sm:$0xf]  ;;  %v1213_v21 = vld [vmem:[%s1533_s23 + $0x1fc] sm:$0xf] }
  0x70   : > { %v882_v13 = vmax.bf16 %v1165_v0, %v849_v5  ;;  %v1011_v16 = vmax.bf16 %v1226_v3, %v978_v10  ;;  %v1228_v25 = vld [vmem:[%s1533_s23 + $0x238] sm:$0xf]  ;;  %v1229_v26 = vld [vmem:[%s1533_s23 + $0x23c] sm:$0xf] }
  0x71   : > { %v1012_v17 = vmax.bf16 %v1227_v7, %v979_v11  ;;  %v914_v18 = vmax.bf16 %v1180_v8, %v881_v12 }
  0x72   : > { %v915_v19 = vmax.bf16 %v1181_v9, %v882_v13 }
  0x73   : > { %v1284_v22 = vcombine.low %v1011_v16, %v1012_v17  ;;  %v947_v23 = vmax.bf16 %v1196_v14, %v914_v18 }
  0x74   : > { %v948_v24 = vmax.bf16 %v1197_v15, %v915_v19 }
  0x75   : > { %1285 = vst [vmem:[%s1586_s28 + $0x30] sm:$0xff] %v1284_v22   ;;  %v980_v27 = vmax.bf16 %v1212_v20, %v947_v23 }
  0x76   : > { %v981_v28 = vmax.bf16 %v1213_v21, %v948_v24 }
  0x77   : > { %v1013_v29 = vmax.bf16 %v1228_v25, %v980_v27 }
  0x78   : > { %v1014_v30 = vmax.bf16 %v1229_v26, %v981_v28 }
  0x7a   : > { %v1286_v31 = vcombine.low %v1013_v29, %v1014_v30 }
  0x7c   : > { %1287 = vst [vmem:[%s1586_s28 + $0x38] sm:$0xff] %v1286_v31  }
  0x7d PF: > { %p8_p9 = scmp.ge.s32.totalorder %s1365_s10, 6   ;;  %s1710_s6 = smov %s1332_s7 }
  0x7e   : > { %s1711_s7 = smov %s1374_s13  ;;  %s1712_s8 = smov %s1365_s10 }
  0x7f   :  { %10 = sbr.rel (!%p8_p9) target bundleno = 2 (0x2), region = 108 }

// kernel: visual_extractor_forward.6
= control target key start
LH: loop header
LB: loop body
LE: loop exit
PB: predicated region body
PF: predicated region fallthrough
CT: control target
= control target key end

     0   :  { %s4412_s12 = smov 0   ;;  %s4414_s13 = smov 0   ;;  %s5476_s0 = inlined_call_operand.vmem [shape: bf16[2,18,18,128], index: 0, kind: input, shape index: {}]   ;;  %s5477_s1 = inlined_call_operand.vmem [shape: bf16[9,128,128], index: 1, kind: input, shape index: {}]   ;;  %s5478_s2 = inlined_call_operand.vmem [shape: f32[1,128], index: 2, kind: input, shape index: {}]   ;;  %s5479_s3 = inlined_call_operand.vmem [shape: bf16[2,16,16,128], index: 3, kind: output, shape index: {}]  }
   0x1   :  { %s4416_s14 = smov 0   ;;  %s4418_s15 = smov 0  }
   0x2   :  { %s4420_s16 = smov 0  }
   0x3 LB: > { %s22_s17 = sadd.s32 1, %s4382_s14  ;;  %s25_s18 = sadd.s32 1, %s4386_s15  ;;  %s4390_s16 = sphi %s4420_s16, %s13_s16   ;;  %s4386_s15 = sphi %s4418_s15, %s5518_s15   ;;  %s4382_s14 = sphi %s4416_s14, %s5517_s14   ;;  %s4378_s13 = sphi %s4414_s13, %s5516_s13   ;;  %s4374_s12 = sphi %s4412_s12, %s5515_s12  }
   0x4   : > { %p23_p0 = scmp.ge.s32.totalorder %s22_s17, 2  ;;  %p3279_p1 = scmp.ge.s32.totalorder %s4390_s16, 1 }
   0x5   : > { %p151_p2 = scmp.lt.s32.totalorder %s4390_s16, 5 }
   0x6   : > { %s5520_s17 = smov (%p23_p0, %s22_s17), 0  ;;  %s5522_s18 = smov (!%p23_p0, %s25_s18), %s4386_s15 }
   0x7   : > { %p152_p3 = pnand %p3279_p1, %p151_p2  ;;  %p27_p4 = scmp.ge.s32.totalorder %s5522_s18, 2 }
   0x9   : > { %s5524_s18 = smov (%p27_p4, %s5522_s18), 0  ;;  %155 = sbr.rel (%p152_p3) target bundleno = 402 (0x192), region = 32 }
   0xe   : > { %v4256_v0 = vld [vmem:[%s5477_s1 + $0x78] sm:$0xff]   ;;  %p180_p5 = scmp.lt.s32.totalorder %s4378_s13, 1  ;;  %v4258_v2 = vld [vmem:[%s5477_s1 + $0x70] sm:$0xff]   ;;  %v4260_v4 = vld [vmem:[%s5477_s1 + $0x68] sm:$0xff]   ;;  %s3703_s9 = smul.u32 96, %s4374_s12  ;;  %vm847_vm3 = vcmask 1042432  }
   0xf   : > { %v4257_v1 = vld [vmem:[%s5477_s1 + $0x38] sm:$0xff]   ;;  %3911 = vmatprep.subr.bf16.mxu0 %v4256_v0  ;;  %v4259_v3 = vld [vmem:[%s5477_s1 + $0x30] sm:$0xff]   ;;  %v4261_v5 = vld [vmem:[%s5477_s1 + $0x28] sm:$0xff]   ;;  %vm241_vm0 = vsmask.f32 3328  ;;  %vm848_vm4 = vcmask 1046532  }
  0x10   : > { %s5526_s13 = smov (!%p180_p5, %s4378_s13), 1  ;;  %3943 = vmatprep.subr.bf16.mxu1 %v4257_v1  ;;  %3912 = vmatpush3.bf16.msra.mxu0 %v4256_v0  ;;  %v4262_v6 = vld [vmem:[%s5477_s1 + $0x60] sm:$0xff]   ;;  %v4264_v8 = vld [vmem:[%s5477_s1 + $0x58] sm:$0xff]   ;;  %v4266_v10 = vld [vmem:[%s5477_s1 + $0x50] sm:$0xff]   ;;  %vm242_vm1 = vsmask.f32 7440 }
  0x11   : > { %3944 = vmatpush3.bf16.msra.mxu1 %v4257_v1  ;;  %3913 = vmatprep.subr.bf16.mxu0 %v4258_v2  ;;  %s4215_s4 = smul.u32 216, %s5526_s13  ;;  %v4263_v7 = vld [vmem:[%s5477_s1 + $0x20] sm:$0xff]   ;;  %v4265_v9 = vld [vmem:[%s5477_s1 + $0x18] sm:$0xff]   ;;  %v4267_v11 = vld [vmem:[%s5477_s1 + $0x10] sm:$0xff]  }
  0x12   : > { %3945 = vmatprep.subr.bf16.mxu1 %v4259_v3  ;;  %v4268_v26 = vld [vmem:[%s5477_s1 + $0x48] sm:$0xff]   ;;  %v4270_v35 = vld [vmem:[%s5477_s1 + $0x40] sm:$0xff]   ;;  %vm4524_vm2 = vmor %vm241_vm0, %vm242_vm1 }
  0x13   : > { %s184_s19 = scalar_lea.vmem %s5476_s0, %s4215_s4  ;;  %v4269_v30 = vld [vmem:[%s5477_s1 + $0x8] sm:$0xff]   ;;  %v4271_v47 = vld [vmem:[%s5477_s1] sm:$0xff]   ;;  %v4274_v55 = vld [vmem:[%s5477_s1 + $0xb8] sm:$0xff]  }
  0x14   : > { %3914 = vmatpush3.bf16.msra.mxu0 %v4258_v2  ;;  %s4481_s24 = scalar_lea.vmem %s184_s19, %s3703_s9  ;;  %v4275_v61 = vld [vmem:[%s5477_s1 + $0xf8] sm:$0xff]   ;;  %vm4697_vm5 = vmor %vm847_vm3, %vm848_vm4  ;;  %s3283_s9 = sshll.u32 %s5526_s13, 5 }
  0x15   : > { %3946 = vmatpush3.bf16.msra.mxu1 %v4259_v3  ;;  %3915 = vmatprep.subr.bf16.mxu0 %v4260_v4  ;;  %v201_v12 = vld [vmem:[%s4481_s24] sm:$0xf]  ;;  %v4491_v13 = vld [vmem:[%s4481_s24 + $0x4] sm:$0xf]  ;;  %v4494_v14 = vld [vmem:[%s4481_s24 + $0x8] sm:$0x1] }
  0x16   : > { %3947 = vmatprep.subr.bf16.mxu1 %v4261_v5  ;;  %v245_v15 = vshrl.u32 %v201_v12, 16  ;;  %v248_v16 = vshll.u32 %v201_v12, 16  ;;  %v254_v17 = vshll.u32 %v4491_v13, 16  ;;  %v258_v18 = vshrl.u32 %v4491_v13, 16  ;;  %v4500_v20 = vld [vmem:[%s4481_s24 + $0xc] sm:$0xf] }
  0x17   : > { %v264_v19 = vshll.u32 %v4494_v14, 16  ;;  %v3320_v23 = vcombine.low %v201_v12, %v4491_v13  ;;  %v4504_v24 = vld [vmem:[%s4481_s24 + $0x10] sm:$0xf]  ;;  %v4507_v25 = vld [vmem:[%s4481_s24 + $0x14] sm:$0x1]  ;;  %v269_v29 = vshrl.u32 %v4500_v20, 16 }
  0x18   : > { %3916 = vmatpush3.bf16.msra.mxu0 %v4260_v4  ;;  %v247_v21 = vrot.slane %v245_v15, 4  ;;  %v250_v22 = vrot.slane %v248_v16, 5  ;;  %v256_v27 = vrot.slane %v254_v17, 5  ;;  %v260_v28 = vrot.slane %v258_v18, 4  ;;  %v4544_v56 = vld [vmem:[%s4481_s24 + $0x18] sm:$0xf] }
  0x19   : > { %3948 = vmatpush3.bf16.msra.mxu1 %v4261_v5  ;;  %3917 = vmatprep.subr.bf16.mxu0 %v4262_v6  ;;  %v272_v32 = vshll.u32 %v4500_v20, 16  ;;  %v278_v33 = vshll.u32 %v4504_v24, 16  ;;  %v282_v34 = vshrl.u32 %v4504_v24, 16  ;;  %v266_v38 = vrot.slane %v264_v19, 5  ;;  %v4547_v57 = vld [vmem:[%s4481_s24 + $0x1c] sm:$0xf] }
  0x1a   : > { %3949 = vmatprep.subr.bf16.mxu1 %v4263_v7  ;;  %v251_v31 = vor.u32 %v250_v22, %v247_v21  ;;  %3959 = vmatprep.mubr.bf16.mxu1 %v3320_v23  ;;  %v261_v37 = vor.u32 %v260_v28, %v256_v27  ;;  %v271_v39 = vrot.slane %v269_v29, 4  ;;  %v288_v40 = vshll.u32 %v4507_v25, 16  ;;  %v4553_v62 = vld [vmem:[%s4481_s24 + $0x20] sm:$0x1]  ;;  %v4561_v4 = vld [vmem:[%s4481_s24 + $0x24] sm:$0xf] }
  0x1b   : > { %v274_v42 = vrot.slane %v272_v32, 5  ;;  %v280_v43 = vrot.slane %v278_v33, 5  ;;  %v284_v44 = vrot.slane %v282_v34, 4  ;;  %v855_v46 = vrot.slane %v4494_v14, 5  ;;  %v4276_v12 = vld [vmem:[%s5477_s1 + $0xb0] sm:$0xff]  }
  0x1c   : > { %3918 = vmatpush3.bf16.msra.mxu0 %v4262_v6  ;;  %v252_v41 = vrot.slane %v251_v31, 4  ;;  %v262_v45 = vrot.slane %v261_v37, 4  ;;  %v290_v51 = vrot.slane %v288_v40, 5  ;;  %v862_v53 = vrot.slane %v4507_v25, 5  ;;  %v4277_v28 = vld [vmem:[%s5477_s1 + $0xf0] sm:$0xff]  }
  0x1d   : > { %3950 = vmatpush3.bf16.msra.mxu1 %v4263_v7  ;;  %3919 = vmatprep.subr.bf16.mxu0 %v4264_v8  ;;  %v275_v49 = vor.u32 %v274_v42, %v271_v39  ;;  %v285_v50 = vor.u32 %v284_v44, %v280_v43  ;;  %v3321_v54 = vcombine.low %v4500_v20, %v4504_v24  ;;  %v293_v63 = vshrl.u32 %v4544_v56, 16  ;;  %v4590_v40 = vld [vmem:[%s4481_s24 + $0x30] sm:$0xf]  ;;  %v4280_v44 = vld [vmem:[%s5477_s1 + $0xa8] sm:$0xff]  }
  0x1e   : > { %3951 = vmatprep.subr.bf16.mxu1 %v4265_v9  ;;  %v257_v48 = vsel %vm4524_vm2, %v252_v41, %v256_v27  ;;  %v267_v52 = vsel %vm4524_vm2, %v262_v45, %v266_v38  ;;  %v296_v0 = vshll.u32 %v4544_v56, 16  ;;  %v302_v1 = vshll.u32 %v4547_v57, 16  ;;  %v4600_v45 = vld [vmem:[%s4481_s24 + $0x34] sm:$0xf] }
  0x1f   : > { %v3304_v58 = vcombine.low %v257_v48, %v267_v52  ;;  %v276_v59 = vrot.slane %v275_v49, 4  ;;  %v286_v60 = vrot.slane %v285_v50, 4  ;;  %v306_v2 = vshrl.u32 %v4547_v57, 16 }
  0x20   : > { %3920 = vmatpush3.bf16.msra.mxu0 %v4264_v8  ;;  %v312_v3 = vshll.u32 %v4553_v62, 16  ;;  %v295_v7 = vrot.slane %v293_v63, 4  ;;  %v4568_v8 = vld [vmem:[%s4481_s24 + $0x28] sm:$0xf]  ;;  %v298_v15 = vrot.slane %v296_v0, 5  ;;  %v304_v16 = vrot.slane %v302_v1, 5 }
  0x21   : > { %3952 = vmatpush3.bf16.msra.mxu1 %v4265_v9  ;;  %3921 = vmatprep.subr.bf16.mxu0 %v4266_v10  ;;  %v281_v5 = vsel %vm4524_vm2, %v276_v59, %v280_v43  ;;  %v291_v6 = vsel %vm4524_vm2, %v286_v60, %v290_v51  ;;  %v4571_v9 = vld [vmem:[%s4481_s24 + $0x2c] sm:$0x1]  ;;  %v308_v17 = vrot.slane %v306_v2, 4  ;;  %v317_v19 = vshrl.u32 %v4561_v4, 16  ;;  %v4282_v0 = vld [vmem:[%s5477_s1 + $0xa0] sm:$0xff]  }
  0x22   : > { %3953 = vmatprep.subr.bf16.mxu1 %v4267_v11  ;;  %3927 = vmatprep.mubr.bf16.mxu0 %v3304_v58  ;;  %v314_v18 = vrot.slane %v312_v3, 5  ;;  %v320_v20 = vshll.u32 %v4561_v4, 16  ;;  %v326_v21 = vshll.u32 %v4568_v8, 16  ;;  %v299_v22 = vor.u32 %v298_v15, %v295_v7  ;;  %v4281_v51 = vld [vmem:[%s5477_s1 + $0xe8] sm:$0xff]  }
  0x23   : > { %v309_v23 = vor.u32 %v308_v17, %v304_v16  ;;  %v336_v27 = vshll.u32 %v4571_v9, 16  ;;  %v3322_v29 = vcombine.low %v4544_v56, %v4547_v57  ;;  %v3323_v39 = vcombine.low %v4561_v4, %v4568_v8  ;;  %v4627_v4 = vld [vmem:[%s4481_s24 + $0x44] sm:$0x1] }
  0x24   : > { %3922 = vmatpush3.bf16.msra.mxu0 %v4266_v10  ;;  %v852_v10 = vrot.slane %v4491_v13, 5  ;;  %v322_v31 = vrot.slane %v320_v20, 5  ;;  %v328_v32 = vrot.slane %v326_v21, 5  ;;  %v300_v33 = vrot.slane %v299_v22, 4 }
  0x25   : > { %3954 = vmatpush3.bf16.msra.mxu1 %v4267_v11  ;;  %3923 = vmatprep.subr.bf16.mxu0 %v4268_v26  ;;  %v3305_v11 = vcombine.low %v281_v5, %v291_v6  ;;  %v310_v34 = vrot.slane %v309_v23, 4  ;;  %v338_v37 = vrot.slane %v336_v27, 5  ;;  %v341_v48 = vshrl.u32 %v4590_v40, 16  ;;  %v4283_v6 = vld [vmem:[%s5477_s1 + $0xe0] sm:$0xff]  }
  0x26   : > { %3955 = vmatprep.subr.bf16.mxu1 %v4269_v30  ;;  %v305_v41 = vsel %vm4524_vm2, %v300_v33, %v304_v16  ;;  %v344_v52 = vshll.u32 %v4590_v40, 16  ;;  %v354_v59 = vshrl.u32 %v4600_v45, 16  ;;  %v3324_v3 = vcombine.low %v4590_v40, %v4600_v45 }
  0x27   : > { %v315_v42 = vsel %vm4524_vm2, %v310_v34, %v314_v18  ;;  %v343_v58 = vrot.slane %v341_v48, 4  ;;  %v384_v22 = vshll.u32 %v4627_v4, 16  ;;  %v880_v25 = vrot.slane %v4600_v45, 5 }
  0x28   : > { %3924 = vmatpush3.bf16.msra.mxu0 %v4268_v26  ;;  %v330_v26 = vshrl.u32 %v4568_v8, 16  ;;  %v3306_v49 = vcombine.low %v305_v41, %v315_v42  ;;  %v346_v1 = vrot.slane %v344_v52, 5  ;;  %v356_v7 = vrot.slane %v354_v59, 4  ;;  %v4656_v41 = vld [vmem:[%s4481_s24 + $0x50] sm:$0x1] }
  0x29   : > { %3956 = vmatpush3.bf16.msra.mxu1 %v4269_v30  ;;  %3925 = vmatprep.subr.bf16.mxu0 %v4270_v35  ;;  %v319_v30 = vrot.slane %v317_v19, 4 }
  0x2a   : > { %3957 = vmatprep.subr.bf16.mxu1 %v4271_v47  ;;  %v347_v16 = vor.u32 %v346_v1, %v343_v58 }
  0x2b   : > { %v323_v38 = vor.u32 %v322_v31, %v319_v30  ;;  %v386_v31 = vrot.slane %v384_v22, 5 }
  0x2c   : > { %3926 = vmatpush3.bf16.msra.mxu0 %v4270_v35  ;;  %v332_v35 = vrot.slane %v330_v26, 4  ;;  %v348_v23 = vrot.slane %v347_v16, 4 }
  0x2d   : > { %3958 = vmatpush3.bf16.msra.mxu1 %v4271_v47  ;;  %3975 = vmatprep.subr.bf16.mxu0 %v4274_v55  ;;  %v4603_v47 = vld [vmem:[%s4481_s24 + $0x38] sm:$0x1]  ;;  %v324_v50 = vrot.slane %v323_v38, 4  ;;  %v4651_v38 = vld [vmem:[%s4481_s24 + $0x4c] sm:$0xf] }
  0x2e   : > { %4007 = vmatprep.subr.bf16.mxu1 %v4275_v61  ;;  %v333_v43 = vor.u32 %v332_v35, %v328_v32  ;;  %v360_v60 = vshll.u32 %v4603_v47, 16  ;;  %v402_v52 = vshrl.u32 %v4651_v38, 16 }
  0x2f   : > { %3928 = vmatmul.mubr.bf16.vlgmr.msra.gmra.mxu0 %v3305_v11  ;;  %v329_v63 = vsel %vm4524_vm2, %v324_v50, %v328_v32  ;;  %v4287_v32 = vld [vmem:[%s5477_s1 + $0xd8] sm:$0xff]   ;;  %v4288_v50 = vld [vmem:[%s5477_s1 + $0x90] sm:$0xff]  }
  0x30   : > { %3960 = vmatmul.mubr.bf16.vlgmr.msra.gmra.mxu1 %v3321_v54  ;;  %3976 = vmatpush3.bf16.msra.mxu0 %v4274_v55  ;;  %v350_v54 = vshll.u32 %v4600_v45, 16  ;;  %v4612_v55 = vld [vmem:[%s4481_s24 + $0x3c] sm:$0xf]  ;;  %v334_v56 = vrot.slane %v333_v43, 4  ;;  %v362_v11 = vrot.slane %v360_v60, 5  ;;  %v408_v60 = vshll.u32 %v4656_v41, 16 }
  0x31   : > { %4008 = vmatpush3.bf16.msra.mxu1 %v4275_v61  ;;  %3977 = vmatprep.subr.bf16.mxu0 %v4276_v12  ;;  %v4617_v61 = vld [vmem:[%s4481_s24 + $0x40] sm:$0xf]  ;;  %v368_v17 = vshll.u32 %v4612_v55, 16 }
  0x32   : > { %4009 = vmatprep.subr.bf16.mxu1 %v4277_v28  ;;  %3963 = vmatprep.mubr.bf16.mxu1 %v3322_v29  ;;  %v352_v2 = vrot.slane %v350_v54, 5  ;;  %v339_v5 = vsel %vm4524_vm2, %v334_v56, %v338_v37  ;;  %v374_v18 = vshll.u32 %v4617_v61, 16  ;;  %v378_v21 = vshrl.u32 %v4617_v61, 16  ;;  %v213_v37 = vld [vmem:[%s4481_s24 + $0x48] sm:$0xf]  ;;  %v4289_v56 = vld [vmem:[%s5477_s1 + $0xd0] sm:$0xff]  }
  0x33   : > { %3931 = vmatprep.mubr.bf16.mxu0 %v3306_v49  ;;  %v3307_v15 = vcombine.low %v329_v63, %v339_v5  ;;  %v370_v26 = vrot.slane %v368_v17, 5  ;;  %v3325_v35 = vcombine.low %v4612_v55, %v4617_v61  ;;  %v389_v42 = vshrl.u32 %v213_v37, 16  ;;  %v4667_v54 = vld [vmem:[%s4481_s24 + $0x58] sm:$0xf]  ;;  %v4674_v63 = vld [vmem:[%s4481_s24 + $0x5c] sm:$0x1] }
  0x34   : > { %3978 = vmatpush3.bf16.msra.mxu0 %v4276_v12  ;;  %v365_v12 = vshrl.u32 %v4612_v55, 16  ;;  %v357_v19 = vor.u32 %v356_v7, %v352_v2  ;;  %v376_v27 = vrot.slane %v374_v18, 5  ;;  %v380_v30 = vrot.slane %v378_v21, 4  ;;  %v4292_v18 = vld [vmem:[%s5477_s1 + $0x88] sm:$0xff]  }
  0x35   : > { %4010 = vmatpush3.bf16.msra.mxu1 %v4277_v28  ;;  %3979 = vmatprep.subr.bf16.mxu0 %v4280_v44  ;;  %v4286_v28 = vld [vmem:[%s5477_s1 + $0x98] sm:$0xff]   ;;  %v353_v33 = vsel %vm4524_vm2, %v348_v23, %v352_v2  ;;  %v392_v43 = vshll.u32 %v213_v37, 16  ;;  %v391_v58 = vrot.slane %v389_v42, 4  ;;  %v410_v7 = vrot.slane %v408_v60, 5 }
  0x36   : > { %4011 = vmatprep.subr.bf16.mxu1 %v4281_v51  ;;  %v367_v20 = vrot.slane %v365_v12, 4  ;;  %v358_v29 = vrot.slane %v357_v19, 4  ;;  %v381_v40 = vor.u32 %v380_v30, %v376_v27  ;;  %v422_v17 = vshll.u32 %v4667_v54, 16 }
  0x37   : > { %3932 = vmatmul.mubr.bf16.gmra.mxu0 %v3307_v15  ;;  %v394_v59 = vrot.slane %v392_v43, 5  ;;  %v426_v21 = vshrl.u32 %v4667_v54, 16  ;;  %v432_v22 = vshll.u32 %v4674_v63, 16  ;;  %v887_v45 = vrot.slane %v4617_v61, 5 }
  0x38   : > { %3964 = vmatmul.mubr.bf16.gmra.mxu1 %v3323_v39  ;;  %3980 = vmatpush3.bf16.msra.mxu0 %v4280_v44  ;;  %v371_v34 = vor.u32 %v370_v26, %v367_v20  ;;  %v363_v39 = vsel %vm4524_vm2, %v358_v29, %v362_v11  ;;  %v4659_v44 = vld [vmem:[%s4481_s24 + $0x54] sm:$0xf]  ;;  %v382_v55 = vrot.slane %v381_v40, 4  ;;  %v4293_v29 = vld [vmem:[%s5477_s1 + $0xc8] sm:$0xff]   ;;  %v4294_v40 = vld [vmem:[%s5477_s1 + $0x80] sm:$0xff]  }
  0x39   : > { %4012 = vmatpush3.bf16.msra.mxu1 %v4281_v51  ;;  %3981 = vmatprep.subr.bf16.mxu0 %v4282_v0  ;;  %v3308_v48 = vcombine.low %v353_v33, %v363_v39  ;;  %v398_v51 = vshll.u32 %v4651_v38, 16  ;;  %v413_v11 = vshrl.u32 %v4659_v44, 16  ;;  %v416_v16 = vshll.u32 %v4659_v44, 16 }
  0x3a   : > { %4013 = vmatprep.subr.bf16.mxu1 %v4283_v6  ;;  %3967 = vmatprep.mubr.bf16.mxu1 %v3324_v3  ;;  %v372_v49 = vrot.slane %v371_v34, 4  ;;  %v404_v3 = vrot.slane %v402_v52, 4  ;;  %v387_v5 = vsel %vm4524_vm2, %v382_v55, %v386_v31  ;;  %v428_v30 = vrot.slane %v426_v21, 4  ;;  %v823_v31 = vld [vmem:[%s4481_s24] sm:$0xe]  ;;  %v4296_v52 = vld [vmem:[%s4481_s24 + $0xc] sm:$0xff]  }
  0x3b   : > { %3935 = vmatprep.mubr.bf16.mxu0 %v3308_v48  ;;  %v400_v2 = vrot.slane %v398_v51, 5  ;;  %v415_v20 = vrot.slane %v413_v11, 4  ;;  %v418_v26 = vrot.slane %v416_v16, 5  ;;  %v854_v33 = vrot.slane %v852_v10, 4  ;;  %v824_v55 = vld [vmem:[%s4481_s24 + $0xc] sm:$0xe] }
  0x3c   : > { %3982 = vmatpush3.bf16.msra.mxu0 %v4282_v0  ;;  %v377_v1 = vsel %vm4524_vm2, %v372_v49, %v376_v27  ;;  %v3326_v0 = vcombine.low %v213_v37, %v4651_v38  ;;  %v424_v27 = vrot.slane %v422_v17, 5  ;;  %v859_v34 = vrot.slane %v4504_v24, 5  ;;  %v4295_v24 = vld [vmem:[%s5477_s1 + $0xc0] sm:$0xff]  }
  0x3d   : > { %4014 = vmatpush3.bf16.msra.mxu1 %v4283_v6  ;;  %3983 = vmatprep.subr.bf16.mxu0 %v4286_v28  ;;  %v395_v6 = vor.u32 %v394_v59, %v391_v58  ;;  %v3309_v12 = vcombine.low %v377_v1, %v387_v5  ;;  %v405_v15 = vor.u32 %v404_v3, %v400_v2  ;;  %v3336_v42 = vrot.slane %v823_v31, 9  ;;  %v4299_v3 = vld [vmem:[%s5477_s1 + $0x178] sm:$0xff]   ;;  %v4307_v31 = vld [vmem:[%s5477_s1 + $0x160] sm:$0xff]  }
  0x3e   : > { %4015 = vmatprep.subr.bf16.mxu1 %v4287_v32  ;;  %v419_v37 = vor.u32 %v418_v26, %v415_v20  ;;  %v3327_v39 = vcombine.low %v4659_v44, %v4667_v54  ;;  %v429_v48 = vor.u32 %v428_v30, %v424_v27  ;;  %v434_v49 = vrot.slane %v432_v22, 5  ;;  %v827_v22 = vld [vmem:[%s4481_s24 + $0x30] sm:$0xe]  ;;  %v4304_v30 = vld [vmem:[%s5477_s1 + $0x128] sm:$0xff]  }
  0x3f   : > { %v396_v19 = vrot.slane %v395_v6, 4  ;;  %3936 = vmatmul.mubr.bf16.gmra.mxu0 %v3309_v12  ;;  %v406_v23 = vrot.slane %v405_v15, 4  ;;  %v861_v58 = vrot.slane %v859_v34, 4  ;;  %v3337_v13 = vrot.slane %v824_v55, 9  ;;  %v4297_v6 = vld [vmem:[%s4481_s24 + $0x18] sm:$0xff]   ;;  %v4302_v15 = vld [vmem:[%s4481_s24 + $0x24] sm:$0xff]  }
  0x40   : > { %3968 = vmatmul.mubr.bf16.gmra.mxu1 %v3325_v35  ;;  %3984 = vmatpush3.bf16.msra.mxu0 %v4286_v28  ;;  %v420_v51 = vrot.slane %v419_v37, 4  ;;  %v430_v44 = vrot.slane %v429_v48, 4  ;;  %v866_v1 = vrot.slane %v4547_v57, 5  ;;  %v869_v57 = vrot.slane %v4553_v62, 5  ;;  %v826_v62 = vld [vmem:[%s4481_s24 + $0x24] sm:$0xe] }
  0x41   : > { %4016 = vmatpush3.bf16.msra.mxu1 %v4287_v32  ;;  %3985 = vmatprep.subr.bf16.mxu0 %v4288_v50  ;;  %v401_v28 = vsel %vm4524_vm2, %v396_v19, %v400_v2  ;;  %v411_v35 = vsel %vm4524_vm2, %v406_v23, %v410_v7  ;;  %v825_v2 = vld [vmem:[%s4481_s24 + $0x18] sm:$0xe]  ;;  %v4301_v7 = vld [vmem:[%s5477_s1 + $0x170] sm:$0xff]   ;;  %v860_v11 = vsel %vm4697_vm5, %v3337_v13, %v859_v34  ;;  %v873_v16 = vrot.slane %v4568_v8, 5 }
  0x42   : > { %4017 = vmatprep.subr.bf16.mxu1 %v4289_v56  ;;  %3971 = vmatprep.mubr.bf16.mxu1 %v3326_v0  ;;  %v3310_v43 = vcombine.low %v401_v28, %v411_v35  ;;  %v425_v59 = vsel %vm4524_vm2, %v420_v51, %v424_v27  ;;  %v435_v60 = vsel %vm4524_vm2, %v430_v44, %v434_v49  ;;  %v3338_v0 = vrot.slane %v825_v2, 9  ;;  %v4303_v26 = vld [vmem:[%s4481_s24 + $0x30] sm:$0xff]   ;;  %v4305_v27 = vld [vmem:[%s5477_s1 + $0x168] sm:$0xff]  }
  0x43   : > { %v868_v5 = vrot.slane %v866_v1, 4  ;;  %v863_v12 = vsel %vm4697_vm5, %v861_v58, %v862_v53  ;;  %v4300_v53 = vld [vmem:[%s5477_s1 + $0x130] sm:$0xff]   ;;  %v876_v8 = vrot.slane %v4571_v9, 5  ;;  %v3339_v20 = vrot.slane %v826_v62, 9 }
  0x44   : > { %3986 = vmatpush3.bf16.msra.mxu0 %v4288_v50  ;;  %3939 = vmatprep.mubr.bf16.mxu0 %v3310_v43  ;;  %v853_v50 = vsel %vm4697_vm5, %v3336_v42, %v852_v10  ;;  %v3311_v10 = vcombine.low %v425_v59, %v435_v60  ;;  %v867_v17 = vsel %vm4697_vm5, %v3338_v0, %v866_v1  ;;  %v875_v21 = vrot.slane %v873_v16, 4  ;;  %v830_v44 = vld [vmem:[%s4481_s24 + $0x54] sm:$0xe]  ;;  %v4309_v60 = vld [vmem:[%s4481_s24 + $0x48] sm:$0xff]  }
  0x45   : > { %4018 = vmatpush3.bf16.msra.mxu1 %v4289_v56  ;;  %3987 = vmatprep.subr.bf16.mxu0 %v4292_v18  ;;  %v856_v56 = vsel %vm4697_vm5, %v854_v33, %v855_v46  ;;  %v4298_v46 = vld [vmem:[%s5477_s1 + $0x138] sm:$0xff]   ;;  %v3361_v19 = vcombine.low %v860_v11, %v863_v12  ;;  %v882_v28 = vrot.slane %v880_v25, 4  ;;  %v883_v9 = vrot.slane %v4603_v47, 5  ;;  %v3426_v0 = vld [vmem:[%s4481_s24 + $0xc] sm:$0xf] }
  0x46   : > { %4019 = vmatprep.subr.bf16.mxu1 %v4293_v29  ;;  %v3360_v14 = vcombine.low %v853_v50, %v856_v56  ;;  %v828_v33 = vld [vmem:[%s4481_s24 + $0x3c] sm:$0xe]  ;;  %v874_v61 = vsel %vm4697_vm5, %v3339_v20, %v873_v16  ;;  %v877_v34 = vsel %vm4697_vm5, %v875_v21, %v876_v8  ;;  %v894_v35 = vrot.slane %v4651_v38, 5  ;;  %v3428_v11 = vld [vmem:[%s4481_s24 + $0x14] sm:$0x1]  ;;  %v4317_v16 = vld [vmem:[%s5477_s1 + $0x148] sm:$0xff]  }
  0x47   : > { %3940 = vmatmul.mubr.bf16.gmra.mxu0 %v3311_v10  ;;  %v4308_v47 = vld [vmem:[%s4481_s24 + $0x3c] sm:$0xff]   ;;  %v889_v37 = vrot.slane %v887_v45, 4  ;;  %v884_v42 = vsel %vm4697_vm5, %v882_v28, %v883_v9  ;;  %v3341_v43 = vrot.slane %v828_v33, 9  ;;  %v897_v48 = vrot.slane %v4656_v41, 5  ;;  %v4316_v9 = vld [vmem:[%s5477_s1 + $0x108] sm:$0xff]  }
  0x48   : > { %3972 = vmatmul.mubr.bf16.gmra.mxu1 %v3327_v39  ;;  %3988 = vmatpush3.bf16.msra.mxu0 %v4292_v18  ;;  %v870_v18 = vsel %vm4697_vm5, %v868_v5, %v869_v57  ;;  %v890_v39 = vrot.slane %v4627_v4, 5  ;;  %v3363_v49 = vcombine.low %v874_v61, %v877_v34  ;;  %v896_v38 = vrot.slane %v894_v35, 4  ;;  %v4306_v4 = vld [vmem:[%s5477_s1 + $0x120] sm:$0xff]   ;;  %v4312_v5 = vld [vmem:[%s5477_s1 + $0x110] sm:$0xff]   ;;  %v3430_v28 = vld [vmem:[%s4481_s24 + $0x1c] sm:$0xf] }
  0x49   : > { %4020 = vmatpush3.bf16.msra.mxu1 %v4293_v29  ;;  %3989 = vmatprep.subr.bf16.mxu0 %v4294_v40  ;;  %v3362_v23 = vcombine.low %v867_v17, %v870_v18  ;;  %v3340_v29 = vrot.slane %v827_v22, 9  ;;  %v901_v51 = vrot.slane %v4667_v54, 5  ;;  %v904_v41 = vrot.slane %v4674_v63, 5  ;;  %v4311_v54 = vld [vmem:[%s5477_s1 + $0x158] sm:$0xff]   ;;  %v3431_v33 = vld [vmem:[%s4481_s24 + $0x20] sm:$0x1] }
  0x4a   : > { %4021 = vmatprep.subr.bf16.mxu1 %v4295_v24  ;;  %4023 = vmatprep.mubr.bf16.mxu1 %v4296_v52  ;;  %v3343_v56 = vrot.slane %v830_v44, 9  ;;  %v888_v58 = vsel %vm4697_vm5, %v3341_v43, %v887_v45  ;;  %v891_v59 = vsel %vm4697_vm5, %v889_v37, %v890_v39  ;;  %v898_v13 = vsel %vm4697_vm5, %v896_v38, %v897_v48  ;;  %v4310_v63 = vld [vmem:[%s5477_s1 + $0x118] sm:$0xff]  }
  0x4b   : > { %3991 = vmatprep.mubr.bf16.mxu0 %v3360_v14  ;;  %v903_v50 = vrot.slane %v901_v51, 4  ;;  %v3365_v2 = vcombine.low %v888_v58, %v891_v59  ;;  %v1387_v12 = vshrl.u32 %v3426_v0, 16  ;;  %v1406_v18 = vshll.u32 %v3428_v11, 16 }
  0x4c   : > { %3990 = vmatpush3.bf16.msra.mxu0 %v4294_v40  ;;  %v881_v40 = vsel %vm4697_vm5, %v3340_v29, %v880_v25  ;;  %v4809_v10 = vsel %vm4697_vm5, %v3343_v56, %v901_v51  ;;  %v3482_v25 = vld [vmem:[%s4481_s24 + $0xc] sm:$0xe]  ;;  %v1825_v22 = vrot.slane %v3428_v11, 5  ;;  %v1420_v39 = vshll.u32 %v3430_v28, 16  ;;  %v3434_v11 = vld [vmem:[%s4481_s24 + $0x2c] sm:$0x1] }
  0x4d   : > { %4022 = vmatpush3.bf16.msra.mxu1 %v4295_v24  ;;  %4039 = vmatprep.subr.bf16.mxu0 %v4298_v46  ;;  %v829_v24 = vld [vmem:[%s4481_s24 + $0x48] sm:$0xe]  ;;  %v3364_v55 = vcombine.low %v881_v40, %v884_v42  ;;  %v4813_v14 = vsel %vm4697_vm5, %v903_v50, %v904_v41  ;;  %v1389_v8 = vrot.slane %v1387_v12, 4  ;;  %v3490_v21 = vrot.slane %v3482_v25, 9  ;;  %v4319_v42 = vld [vmem:[%s5477_s1 + $0x140] sm:$0xff]  }
  0x4e   : > { %4071 = vmatprep.subr.bf16.mxu1 %v4299_v3  ;;  %v3342_v52 = vrot.slane %v829_v24, 9  ;;  %v1424_v40 = vshrl.u32 %v3430_v28, 16  ;;  %v1422_v51 = vrot.slane %v1420_v39, 5  ;;  %v1829_v41 = vrot.slane %v3430_v28, 5 }
  0x4f   : > { %3992 = vmatmul.mubr.bf16.vlgmr.msra.gmra.mxu0 %v3361_v19  ;;  %v1832_v59 = vrot.slane %v3431_v33, 5 }
  0x50   : > { %4024 = vmatmul.mubr.bf16.vlgmr.msra.gmra.mxu1 %v4297_v6  ;;  %4040 = vmatpush3.bf16.msra.mxu0 %v4298_v46  ;;  %v895_v1 = vsel %vm4697_vm5, %v3342_v52, %v894_v35  ;;  %v4313_v46 = vld [vmem:[%s5477_s1 + $0x150] sm:$0xff]   ;;  %v3367_v6 = vcombine.low %v4809_v10, %v4813_v14  ;;  %v1430_v52 = vshll.u32 %v3431_v33, 16  ;;  %v4320_v10 = vld [vmem:[%s5477_s1 + $0x1b8] sm:$0xff]  }
  0x51   : > { %4072 = vmatpush3.bf16.msra.mxu1 %v4299_v3  ;;  %4027 = vmatprep.mubr.bf16.mxu1 %v4302_v15  ;;  %v4314_v3 = vld [vmem:[%s4481_s24 + $0x54] sm:$0xff]   ;;  %v3366_v57 = vcombine.low %v895_v1, %v898_v13  ;;  %v1390_v15 = vshll.u32 %v3426_v0, 16  ;;  %v3432_v0 = vld [vmem:[%s4481_s24 + $0x24] sm:$0xf]  ;;  %v3485_v33 = vld [vmem:[%s4481_s24 + $0x30] sm:$0xe] }
  0x52   : > { %4073 = vmatprep.subr.bf16.mxu1 %v4301_v7  ;;  %4041 = vmatprep.subr.bf16.mxu0 %v4300_v53  ;;  %v1432_v58 = vrot.slane %v1430_v52, 5  ;;  %v1435_v12 = vshrl.u32 %v3432_v0, 16 }
  0x53   : > { %3995 = vmatprep.mubr.bf16.mxu0 %v3362_v23  ;;  %v1392_v20 = vrot.slane %v1390_v15, 5  ;;  %v3429_v23 = vld [vmem:[%s4481_s24 + $0x18] sm:$0xf]  ;;  %v1438_v15 = vshll.u32 %v3432_v0, 16 }
  0x54   : > { %4042 = vmatpush3.bf16.msra.mxu0 %v4300_v53  ;;  %v4315_v53 = vld [vmem:[%s4481_s24 + $0x60] sm:$0xff]   ;;  %v1411_v61 = vshrl.u32 %v3429_v23, 16  ;;  %v1414_v34 = vshll.u32 %v3429_v23, 16 }
  0x55   : > { %4074 = vmatpush3.bf16.msra.mxu1 %v4301_v7  ;;  %4043 = vmatprep.subr.bf16.mxu0 %v4304_v30  ;;  %v3427_v7 = vld [vmem:[%s4481_s24 + $0x10] sm:$0xf] }
  0x56   : > { %4075 = vmatprep.subr.bf16.mxu1 %v4305_v27  ;;  %v1396_v62 = vshll.u32 %v3427_v7, 16  ;;  %v1400_v17 = vshrl.u32 %v3427_v7, 16  ;;  %v1822_v19 = vrot.slane %v3427_v7, 5  ;;  %v1416_v24 = vrot.slane %v1414_v34, 5 }
  0x57   : > { %3996 = vmatmul.mubr.bf16.gmra.mxu0 %v3363_v49  ;;  %v1413_v49 = vrot.slane %v1411_v61, 4 }
  0x58   : > { %4028 = vmatmul.mubr.bf16.gmra.mxu1 %v4303_v26  ;;  %4044 = vmatpush3.bf16.msra.mxu0 %v4304_v30  ;;  %v1398_v26 = vrot.slane %v1396_v62, 5  ;;  %v1402_v45 = vrot.slane %v1400_v17, 4  ;;  %v1824_v29 = vrot.slane %v1822_v19, 4  ;;  %v1393_v30 = vor.u32 %v1392_v20, %v1389_v8 }
  0x59   : > { %4076 = vmatpush3.bf16.msra.mxu1 %v4305_v27  ;;  %4031 = vmatprep.mubr.bf16.mxu1 %v4308_v47  ;;  %v1408_v27 = vrot.slane %v1406_v18, 5  ;;  %v3483_v47 = vld [vmem:[%s4481_s24 + $0x18] sm:$0xe]  ;;  %v1417_v44 = vor.u32 %v1416_v24, %v1413_v49  ;;  %v3435_v18 = vld [vmem:[%s4481_s24 + $0x30] sm:$0xf]  ;;  %v1440_v8 = vrot.slane %v1438_v15, 5 }
  0x5a   : > { %4077 = vmatprep.subr.bf16.mxu1 %v4307_v31  ;;  %4045 = vmatprep.subr.bf16.mxu0 %v4306_v4  ;;  %v1403_v35 = vor.u32 %v1402_v45, %v1398_v26  ;;  %v1826_v37 = vsel %vm4697_vm5, %v1824_v29, %v1825_v22  ;;  %v1394_v43 = vrot.slane %v1393_v30, 4  ;;  %v3491_v50 = vrot.slane %v3483_v47, 9  ;;  %v4322_v29 = vld [vmem:[%s5477_s1 + $0x1b0] sm:$0xff]  }
  0x5b   : > { %3999 = vmatprep.mubr.bf16.mxu0 %v3364_v55  ;;  %v1454_v20 = vshll.u32 %v3434_v11, 16  ;;  %v1839_v30 = vrot.slane %v3434_v11, 5 }
  0x5c   : > { %4046 = vmatpush3.bf16.msra.mxu0 %v4306_v4  ;;  %v1404_v38 = vrot.slane %v1403_v35, 4  ;;  %v1426_v4 = vrot.slane %v1424_v40, 4  ;;  %v1399_v55 = vsel %vm4524_vm2, %v1394_v43, %v1398_v26  ;;  %v1830_v1 = vsel %vm4697_vm5, %v3491_v50, %v1829_v41 }
  0x5d   : > { %4078 = vmatpush3.bf16.msra.mxu1 %v4307_v31  ;;  %4047 = vmatprep.subr.bf16.mxu0 %v4310_v63  ;;  %v1823_v31 = vsel %vm4697_vm5, %v3490_v21, %v1822_v19  ;;  %v4323_v19 = vld [vmem:[%s5477_s1 + $0x1f0] sm:$0xff]   ;;  %v1462_v35 = vshll.u32 %v3435_v18, 16 }
  0x5e   : > { %4079 = vmatprep.subr.bf16.mxu1 %v4311_v54  ;;  %v3514_v48 = vcombine.low %v1823_v31, %v1826_v37  ;;  %v1427_v56 = vor.u32 %v1426_v4, %v1422_v51  ;;  %v3436_v21 = vld [vmem:[%s4481_s24 + $0x34] sm:$0xf]  ;;  %v1459_v31 = vshrl.u32 %v3435_v18, 16 }
  0x5f   : > { %4000 = vmatmul.mubr.bf16.gmra.mxu0 %v3365_v2  ;;  %v1468_v40 = vshll.u32 %v3436_v21, 16  ;;  %v1464_v49 = vrot.slane %v1462_v35, 5 }
  0x60   : > { %4032 = vmatmul.mubr.bf16.gmra.mxu1 %v4309_v60  ;;  %4048 = vmatpush3.bf16.msra.mxu0 %v4310_v63  ;;  %v4318_v60 = vld [vmem:[%s5477_s1 + $0x100] sm:$0xff]   ;;  %v1418_v63 = vrot.slane %v1417_v44, 4  ;;  %v1428_v2 = vrot.slane %v1427_v56, 4  ;;  %v1461_v39 = vrot.slane %v1459_v31, 4  ;;  %v3438_v56 = vld [vmem:[%s4481_s24 + $0x3c] sm:$0xf] }
  0x61   : > { %4080 = vmatpush3.bf16.msra.mxu1 %v4311_v54  ;;  %4035 = vmatprep.mubr.bf16.mxu1 %v4314_v3  ;;  %v1409_v54 = vsel %vm4524_vm2, %v1404_v38, %v1408_v27  ;;  %v4321_v3 = vld [vmem:[%s5477_s1 + $0x1f8] sm:$0xff]   ;;  %v4325_v38 = vld [vmem:[%s5477_s1 + $0x1e8] sm:$0xff]   ;;  %v1470_v52 = vrot.slane %v1468_v40, 5  ;;  %v1483_v0 = vshrl.u32 %v3438_v56, 16 }
  0x62   : > { %4081 = vmatprep.subr.bf16.mxu1 %v4313_v46  ;;  %4049 = vmatprep.subr.bf16.mxu0 %v4312_v5  ;;  %v3466_v13 = vcombine.low %v1399_v55, %v1409_v54  ;;  %v1433_v62 = vsel %vm4524_vm2, %v1428_v2, %v1432_v58  ;;  %v4880_v27 = vld [vmem:[%s4481_s24 + $0x38] sm:$0x1]  ;;  %v1465_v50 = vor.u32 %v1464_v49, %v1461_v39  ;;  %v3493_v54 = vrot.slane %v3485_v33, 9  ;;  %v3487_v31 = vld [vmem:[%s4481_s24 + $0x48] sm:$0xe] }
  0x63   : > { %4003 = vmatprep.mubr.bf16.mxu0 %v3366_v57  ;;  %v1423_v57 = vsel %vm4524_vm2, %v1418_v63, %v1422_v51  ;;  %v1478_v24 = vshll.u32 %v4880_v27, 16  ;;  %v4324_v63 = vld [vmem:[%s5477_s1 + $0x1a8] sm:$0xff]  }
  0x64   : > { %4050 = vmatpush3.bf16.msra.mxu0 %v4312_v5  ;;  %v3433_v5 = vld [vmem:[%s4481_s24 + $0x28] sm:$0xf]  ;;  %v3467_v25 = vcombine.low %v1423_v57, %v1433_v62  ;;  %v1466_v2 = vrot.slane %v1465_v50, 4 }
  0x65   : > { %4082 = vmatpush3.bf16.msra.mxu1 %v4313_v46  ;;  %4051 = vmatprep.subr.bf16.mxu0 %v4316_v9  ;;  %v1831_v46 = vrot.slane %v1829_v41, 4  ;;  %v1444_v14 = vshll.u32 %v3433_v5, 16  ;;  %v1836_v45 = vrot.slane %v3433_v5, 5  ;;  %v1480_v41 = vrot.slane %v1478_v24, 5 }
  0x66   : > { %4083 = vmatprep.subr.bf16.mxu1 %v4317_v16  ;;  %v1471_v62 = vsel %vm4524_vm2, %v1466_v2, %v1470_v52 }
  0x67   : > { %4004 = vmatmul.mubr.bf16.gmra.mxu0 %v3367_v6  ;;  %v1833_v7 = vsel %vm4697_vm5, %v1831_v46, %v1832_v59  ;;  %v1448_v6 = vshrl.u32 %v3433_v5, 16  ;;  %v1446_v22 = vrot.slane %v1444_v14, 5  ;;  %v1838_v47 = vrot.slane %v1836_v45, 4  ;;  %v3439_v46 = vld [vmem:[%s4481_s24 + $0x40] sm:$0xf] }
  0x68   : > { %4036 = vmatmul.mubr.bf16.gmra.mxu1 %v4315_v53  ;;  %4052 = vmatpush3.bf16.msra.mxu0 %v4316_v9  ;;  %v3515_v17 = vcombine.low %v1830_v1, %v1833_v7  ;;  %v1437_v53 = vrot.slane %v1435_v12, 4  ;;  %v1456_v9 = vrot.slane %v1454_v20, 5  ;;  %v4327_v1 = vld [vmem:[%s5477_s1 + $0x1e0] sm:$0xff]   ;;  %v1486_v5 = vshll.u32 %v3438_v56, 16  ;;  %v3442_v20 = vld [vmem:[%s4481_s24 + $0x4c] sm:$0xf] }
  0x69   : > { %4084 = vmatpush3.bf16.msra.mxu1 %v4317_v16  ;;  %4087 = vmatprep.mubr.bf16.mxu1 %v3514_v48  ;;  %v3484_v16 = vld [vmem:[%s4481_s24 + $0x24] sm:$0xe]  ;;  %v1450_v23 = vrot.slane %v1448_v6, 4  ;;  %v1840_v48 = vsel %vm4697_vm5, %v1838_v47, %v1839_v30  ;;  %v1492_v57 = vshll.u32 %v3439_v46, 16  ;;  %v1496_v15 = vshrl.u32 %v3439_v46, 16 }
  0x6a   : > { %4085 = vmatprep.subr.bf16.mxu1 %v4319_v42  ;;  %4053 = vmatprep.subr.bf16.mxu0 %v4318_v60  ;;  %v3492_v26 = vrot.slane %v3484_v16, 9  ;;  %v1441_v28 = vor.u32 %v1440_v8, %v1437_v53  ;;  %v3486_v16 = vld [vmem:[%s4481_s24 + $0x3c] sm:$0xe]  ;;  %v1488_v14 = vrot.slane %v1486_v5, 5  ;;  %v3441_v8 = vld [vmem:[%s4481_s24 + $0x48] sm:$0xf] }
  0x6b   : > { %4055 = vmatprep.mubr.bf16.mxu0 %v3466_v13  ;;  %v1451_v61 = vor.u32 %v1450_v23, %v1446_v22  ;;  %v1846_v13 = vrot.slane %v4880_v27, 5  ;;  %v1494_v6 = vrot.slane %v1492_v57, 5  ;;  %v4329_v27 = vld [vmem:[%s5477_s1 + $0x1d8] sm:$0xff]   ;;  %v1516_v47 = vshll.u32 %v3442_v20, 16  ;;  %v3444_v56 = vld [vmem:[%s4481_s24 + $0x54] sm:$0xf] }
  0x6c   : > { %4054 = vmatpush3.bf16.msra.mxu0 %v4318_v60  ;;  %v1837_v34 = vsel %vm4697_vm5, %v3492_v26, %v1836_v45  ;;  %v1442_v37 = vrot.slane %v1441_v28, 4  ;;  %v1843_v60 = vrot.slane %v3436_v21, 5  ;;  %v3494_v26 = vrot.slane %v3486_v16, 9  ;;  %v4923_v45 = vld [vmem:[%s4481_s24 + $0x50] sm:$0x1] }
  0x6d   : > { %4086 = vmatpush3.bf16.msra.mxu1 %v4319_v42  ;;  %4103 = vmatprep.subr.bf16.mxu0 %v4320_v10  ;;  %v1472_v42 = vshrl.u32 %v3436_v21, 16  ;;  %v1452_v43 = vrot.slane %v1451_v61, 4  ;;  %v3516_v4 = vcombine.low %v1837_v34, %v1840_v48  ;;  %v1507_v61 = vshrl.u32 %v3441_v8, 16  ;;  %v3488_v16 = vld [vmem:[%s4481_s24 + $0x54] sm:$0xe] }
  0x6e   : > { %4135 = vmatprep.subr.bf16.mxu1 %v4321_v3  ;;  %v1447_v51 = vsel %vm4524_vm2, %v1442_v37, %v1446_v22  ;;  %v1844_v11 = vsel %vm4697_vm5, %v3493_v54, %v1843_v60  ;;  %v1845_v12 = vrot.slane %v1843_v60, 4  ;;  %v1510_v34 = vshll.u32 %v3441_v8, 16  ;;  %v3447_v8 = vld [vmem:[%s4481_s24 + $0x60] sm:$0xf] }
  0x6f   : > { %4056 = vmatmul.mubr.bf16.vlgmr.msra.gmra.mxu0 %v3467_v25  ;;  %v1474_v55 = vrot.slane %v1472_v42, 4  ;;  %v1457_v44 = vsel %vm4524_vm2, %v1452_v43, %v1456_v9  ;;  %v1850_v9 = vrot.slane %v3439_v46, 5  ;;  %v1520_v40 = vshrl.u32 %v3442_v20, 16  ;;  %v4328_v42 = vld [vmem:[%s5477_s1 + $0x198] sm:$0xff]   ;;  %v4333_v46 = vld [vmem:[%s5477_s1 + $0x1c8] sm:$0xff]  }
  0x70   : > { %4088 = vmatmul.mubr.bf16.vlgmr.msra.gmra.mxu1 %v3515_v17  ;;  %4104 = vmatpush3.bf16.msra.mxu0 %v4320_v10  ;;  %v3468_v58 = vcombine.low %v1447_v51, %v1457_v44  ;;  %v4326_v17 = vld [vmem:[%s5477_s1 + $0x1a0] sm:$0xff]   ;;  %v1485_v10 = vrot.slane %v1483_v0, 4  ;;  %v1847_v25 = vsel %vm4697_vm5, %v1845_v12, %v1846_v13  ;;  %v1509_v48 = vrot.slane %v1507_v61, 4 }
  0x71   : > { %4136 = vmatpush3.bf16.msra.mxu1 %v4321_v3  ;;  %4105 = vmatprep.subr.bf16.mxu0 %v4322_v29  ;;  %v1475_v59 = vor.u32 %v1474_v55, %v1470_v52  ;;  %v3440_v3 = vld [vmem:[%s4481_s24 + $0x44] sm:$0x1]  ;;  %v3517_v22 = vcombine.low %v1844_v11, %v1847_v25  ;;  %v1851_v37 = vsel %vm4697_vm5, %v3494_v26, %v1850_v9  ;;  %v1852_v39 = vrot.slane %v1850_v9, 4 }
  0x72   : > { %4137 = vmatprep.subr.bf16.mxu1 %v4323_v19  ;;  %4091 = vmatprep.mubr.bf16.mxu1 %v3516_v4  ;;  %v1502_v53 = vshll.u32 %v3440_v3, 16  ;;  %v1489_v23 = vor.u32 %v1488_v14, %v1485_v10  ;;  %v1853_v30 = vrot.slane %v3440_v3, 5  ;;  %v1512_v49 = vrot.slane %v1510_v34, 5  ;;  %v3446_v3 = vld [vmem:[%s4481_s24 + $0x5c] sm:$0x1] }
  0x73   : > { %4059 = vmatprep.mubr.bf16.mxu0 %v3468_v58  ;;  %v1476_v7 = vrot.slane %v1475_v59, 4  ;;  %v1518_v24 = vrot.slane %v1516_v47, 5  ;;  %v1522_v52 = vrot.slane %v1520_v40, 4  ;;  %v1526_v55 = vshll.u32 %v4923_v45, 16  ;;  %v3445_v58 = vld [vmem:[%s4481_s24 + $0x58] sm:$0xf] }
  0x74   : > { %4106 = vmatpush3.bf16.msra.mxu0 %v4322_v29  ;;  %v1504_v28 = vrot.slane %v1502_v53, 5  ;;  %v1490_v33 = vrot.slane %v1489_v23, 4  ;;  %v1854_v4 = vsel %vm4697_vm5, %v1852_v39, %v1853_v30  ;;  %v3495_v54 = vrot.slane %v3487_v31, 9  ;;  %v3489_v31 = vld [vmem:[%s4481_s24 + $0x60] sm:$0xe] }
  0x75   : > { %4138 = vmatpush3.bf16.msra.mxu1 %v4323_v19  ;;  %v1481_v18 = vsel %vm4524_vm2, %v1476_v7, %v1480_v41  ;;  %4107 = vmatprep.subr.bf16.mxu0 %v4324_v63  ;;  %v1498_v19 = vrot.slane %v1496_v15, 4  ;;  %v3518_v50 = vcombine.low %v1851_v37, %v1854_v4  ;;  %v1513_v41 = vor.u32 %v1512_v49, %v1509_v48 }
  0x76   : > { %4139 = vmatprep.subr.bf16.mxu1 %v4325_v38  ;;  %v3469_v21 = vcombine.low %v1471_v62, %v1481_v18  ;;  %v1495_v43 = vsel %vm4524_vm2, %v1490_v33, %v1494_v6  ;;  %v1523_v59 = vor.u32 %v1522_v52, %v1518_v24  ;;  %v1528_v60 = vrot.slane %v1526_v55, 5 }
  0x77   : > { %v1499_v29 = vor.u32 %v1498_v19, %v1494_v6  ;;  %v1857_v13 = vrot.slane %v3442_v20, 5  ;;  %v1514_v2 = vrot.slane %v1513_v41, 4  ;;  %v1531_v0 = vshrl.u32 %v3444_v56, 16  ;;  %v4332_v6 = vld [vmem:[%s5477_s1 + $0x188] sm:$0xff]   ;;  %v3448_v20 = vld [vmem:[%s4481_s24 + $0x64] sm:$0xf] }
  0x78   : > { %4060 = vmatmul.mubr.bf16.gmra.mxu0 %v3469_v21  ;;  %4092 = vmatmul.mubr.bf16.gmra.mxu1 %v3517_v22  ;;  %v1534_v5 = vshll.u32 %v3444_v56, 16  ;;  %v1540_v57 = vshll.u32 %v3445_v58, 16  ;;  %v1524_v7 = vrot.slane %v1523_v59, 4  ;;  %v1544_v15 = vshrl.u32 %v3445_v58, 16 }
  0x79   : > { %4140 = vmatpush3.bf16.msra.mxu1 %v4325_v38  ;;  %4108 = vmatpush3.bf16.msra.mxu0 %v4324_v63  ;;  %v1500_v35 = vrot.slane %v1499_v29, 4  ;;  %v4331_v38 = vld [vmem:[%s5477_s1 + $0x1d0] sm:$0xff]   ;;  %v1860_v63 = vrot.slane %v4923_v45, 5  ;;  %v1858_v11 = vsel %vm4697_vm5, %v3495_v54, %v1857_v13  ;;  %v1859_v12 = vrot.slane %v1857_v13, 4  ;;  %v4969_v45 = vld [vmem:[%s4481_s24 + $0x68] sm:$0x1] }
  0x7a   : > { %4141 = vmatprep.subr.bf16.mxu1 %v4327_v1  ;;  %4109 = vmatprep.subr.bf16.mxu0 %v4326_v17  ;;  %v1519_v62 = vsel %vm4524_vm2, %v1514_v2, %v1518_v24  ;;  %v1536_v10 = vrot.slane %v1534_v5, 5  ;;  %v1542_v14 = vrot.slane %v1540_v57, 5  ;;  %v1529_v18 = vsel %vm4524_vm2, %v1524_v7, %v1528_v60  ;;  %v3580_v13 = vld [vmem:[%s4481_s24 + $0x18] sm:$0xf] }
  0x7b   : > { %v1505_v51 = vsel %vm4524_vm2, %v1500_v35, %v1504_v28  ;;  %4095 = vmatprep.mubr.bf16.mxu1 %v3518_v50  ;;  %v1861_v25 = vsel %vm4697_vm5, %v1859_v12, %v1860_v63  ;;  %v1546_v19 = vrot.slane %v1544_v15, 4  ;;  %v1550_v53 = vshll.u32 %v3446_v3, 16 }
  0x7c   : > { %v3470_v44 = vcombine.low %v1495_v43, %v1505_v51  ;;  %v3471_v21 = vcombine.low %v1519_v62, %v1529_v18  ;;  %v3519_v22 = vcombine.low %v1858_v11, %v1861_v25  ;;  %v3496_v26 = vrot.slane %v3488_v16, 9  ;;  %v4336_v11 = vld [vmem:[%s4481_s24 + $0x18] sm:$0xff]   ;;  %v5015_v18 = vld [vmem:[%s4481_s24 + $0x28] sm:$0xf] }
  0x7d   : > { %4142 = vmatpush3.bf16.msra.mxu1 %v4327_v1  ;;  %4110 = vmatpush3.bf16.msra.mxu0 %v4326_v17  ;;  %v4330_v1 = vld [vmem:[%s5477_s1 + $0x190] sm:$0xff]   ;;  %v1533_v17 = vrot.slane %v1531_v0, 4  ;;  %v1547_v29 = vor.u32 %v1546_v19, %v1542_v14  ;;  %v1552_v28 = vrot.slane %v1550_v53, 5  ;;  %v1864_v9 = vrot.slane %v3445_v58, 5 }
  0x7e   : > { %4143 = vmatprep.subr.bf16.mxu1 %v4329_v27  ;;  %4063 = vmatprep.mubr.bf16.mxu0 %v3470_v44  ;;  %v1867_v30 = vrot.slane %v3446_v3, 5  ;;  %v1555_v61 = vshrl.u32 %v3447_v8, 16  ;;  %v1558_v34 = vshll.u32 %v3447_v8, 16  ;;  %v1564_v47 = vshll.u32 %v3448_v20, 16 }
  0x7f   : > { %4111 = vmatprep.subr.bf16.mxu0 %v4328_v42  ;;  %v1537_v23 = vor.u32 %v1536_v10, %v1533_v17  ;;  %v1548_v35 = vrot.slane %v1547_v29, 4  ;;  %v1865_v37 = vsel %vm4697_vm5, %v3496_v26, %v1864_v9  ;;  %v1866_v39 = vrot.slane %v1864_v9, 4 }
  0x80   : > { %4064 = vmatmul.mubr.bf16.gmra.mxu0 %v3471_v21  ;;  %4096 = vmatmul.mubr.bf16.gmra.mxu1 %v3519_v22  ;;  %v1568_v40 = vshrl.u32 %v3448_v20, 16  ;;  %v1557_v48 = vrot.slane %v1555_v61, 4  ;;  %v1560_v49 = vrot.slane %v1558_v34, 5  ;;  %v1566_v24 = vrot.slane %v1564_v47, 5  ;;  %v4337_v61 = vld [vmem:[%s4481_s24 + $0x24] sm:$0xff]  }
  0x81   : > { %4144 = vmatpush3.bf16.msra.mxu1 %v4329_v27  ;;  %4112 = vmatpush3.bf16.msra.mxu0 %v4328_v42  ;;  %v4335_v27 = vld [vmem:[%s5477_s1 + $0x1c0] sm:$0xff]   ;;  %v1538_v33 = vrot.slane %v1537_v23, 4  ;;  %v1553_v51 = vsel %vm4524_vm2, %v1548_v35, %v1552_v28  ;;  %v1868_v4 = vsel %vm4697_vm5, %v1866_v39, %v1867_v30  ;;  %v1574_v55 = vshll.u32 %v4969_v45, 16 }
  0x82   : > { %4145 = vmatprep.subr.bf16.mxu1 %v4331_v38  ;;  %4113 = vmatprep.subr.bf16.mxu0 %v4330_v1  ;;  %v4334_v42 = vld [vmem:[%s5477_s1 + $0x180] sm:$0xff]   ;;  %v1570_v52 = vrot.slane %v1568_v40, 4  ;;  %v3520_v50 = vcombine.low %v1865_v37, %v1868_v4  ;;  %v1561_v41 = vor.u32 %v1560_v49, %v1557_v48  ;;  %v3497_v54 = vrot.slane %v3489_v31, 9  ;;  %v3586_v40 = vld [vmem:[%s4481_s24 + $0x30] sm:$0xf] }
  0x83   : > { %v1543_v43 = vsel %vm4524_vm2, %v1538_v33, %v1542_v14  ;;  %v1576_v58 = vrot.slane %v1574_v55, 5  ;;  %v1871_v59 = vrot.slane %v3448_v20, 5  ;;  %v1874_v60 = vrot.slane %v4969_v45, 5  ;;  %v5018_v20 = vld [vmem:[%s4481_s24 + $0x2c] sm:$0x1]  ;;  %v5036_v49 = vld [vmem:[%s5477_s1 + $0x230] sm:$0xff]  }
  0x84   : > { %v3472_v44 = vcombine.low %v1543_v43, %v1553_v51  ;;  %v1571_v56 = vor.u32 %v1570_v52, %v1566_v24  ;;  %4099 = vmatprep.mubr.bf16.mxu1 %v3520_v50  ;;  %v1562_v63 = vrot.slane %v1561_v41, 4  ;;  %v2357_v2 = vshrl.u32 %v3580_v13, 16 }
  0x85   : > { %4146 = vmatpush3.bf16.msra.mxu1 %v4331_v38  ;;  %4114 = vmatpush3.bf16.msra.mxu0 %v4330_v1  ;;  %v4985_v38 = vld [vmem:[%s5477_s1 + $0x238] sm:$0xff]   ;;  %v1872_v0 = vsel %vm4697_vm5, %v3497_v54, %v1871_v59  ;;  %v1873_v5 = vrot.slane %v1871_v59, 4  ;;  %v2360_v57 = vshll.u32 %v3580_v13, 16  ;;  %v2394_v29 = vshrl.u32 %v5015_v18, 16 }
  0x86   : > { %4147 = vmatprep.subr.bf16.mxu1 %v4333_v46  ;;  %4115 = vmatprep.subr.bf16.mxu0 %v4332_v6  ;;  %v4995_v1 = vld [vmem:[%s4481_s24 + $0x1c] sm:$0xf]  ;;  %v1572_v3 = vrot.slane %v1571_v56, 4  ;;  %v1567_v7 = vsel %vm4524_vm2, %v1562_v63, %v1566_v24  ;;  %v2359_v12 = vrot.slane %v2357_v2, 4  ;;  %v2400_v28 = vshll.u32 %v5018_v20, 16 }
  0x87   : > { %4067 = vmatprep.mubr.bf16.mxu0 %v3472_v44  ;;  %v2366_v15 = vshll.u32 %v4995_v1, 16  ;;  %v2370_v16 = vshrl.u32 %v4995_v1, 16  ;;  %v1875_v17 = vsel %vm4697_vm5, %v1873_v5, %v1874_v60  ;;  %v2362_v10 = vrot.slane %v2360_v57, 5  ;;  %v5039_v24 = vld [vmem:[%s4481_s24 + $0x38] sm:$0x1]  ;;  %v4340_v44 = vld [vmem:[%s4481_s24 + $0x30] sm:$0xff]  }
  0x88   : > { %v1577_v62 = vsel %vm4524_vm2, %v1572_v3, %v1576_v58  ;;  %v3521_v19 = vcombine.low %v1872_v0, %v1875_v17  ;;  %v2396_v47 = vrot.slane %v2394_v29, 4  ;;  %v2402_v35 = vrot.slane %v2400_v28, 5  ;;  %v3589_v60 = vld [vmem:[%s4481_s24 + $0x3c] sm:$0xf]  ;;  %v5049_v3 = vld [vmem:[%s4481_s24 + $0x40] sm:$0xf] }
  0x89   : > { %4148 = vmatpush3.bf16.msra.mxu1 %v4333_v46  ;;  %4116 = vmatpush3.bf16.msra.mxu0 %v4332_v6  ;;  %v4998_v46 = vld [vmem:[%s4481_s24 + $0x20] sm:$0x1]  ;;  %v3583_v6 = vld [vmem:[%s4481_s24 + $0x24] sm:$0xf]  ;;  %v3473_v25 = vcombine.low %v1567_v7, %v1577_v62  ;;  %v2368_v53 = vrot.slane %v2366_v15, 5  ;;  %v2372_v8 = vrot.slane %v2370_v16, 4  ;;  %v2363_v21 = vor.u32 %v2362_v10, %v2359_v12 }
  0x8a   : > { %4149 = vmatprep.subr.bf16.mxu1 %v4335_v27  ;;  %4117 = vmatprep.subr.bf16.mxu0 %v4334_v42  ;;  %v2376_v14 = vshll.u32 %v4998_v46, 16  ;;  %v2381_v23 = vshrl.u32 %v3583_v6, 16  ;;  %v2384_v26 = vshll.u32 %v3583_v6, 16  ;;  %v2405_v51 = vshrl.u32 %v3586_v40, 16  ;;  %v5052_v0 = vld [vmem:[%s4481_s24 + $0x44] sm:$0x1] }
  0x8b   : > { %4068 = vmatmul.mubr.bf16.gmra.mxu0 %v3473_v25  ;;  %4100 = vmatmul.mubr.bf16.gmra.mxu1 %v3521_v19  ;;  %v2373_v45 = vor.u32 %v2372_v8, %v2368_v53  ;;  %v2364_v9 = vrot.slane %v2363_v21, 4  ;;  %v2408_v4 = vshll.u32 %v3586_v40, 16  ;;  %v2424_v59 = vshll.u32 %v5039_v24, 16  ;;  %v5059_v12 = vld [vmem:[%s5477_s1 + $0x228] sm:$0xff]  }
  0x8c   : > { %v2378_v22 = vrot.slane %v2376_v14, 5  ;;  %4119 = vmatprep.mubr.bf16.mxu0 %v4336_v11  ;;  %v2383_v30 = vrot.slane %v2381_v23, 4  ;;  %v2386_v31 = vrot.slane %v2384_v26, 5  ;;  %v2407_v56 = vrot.slane %v2405_v51, 4  ;;  %v5073_v29 = vld [vmem:[%s4481_s24 + $0x4c] sm:$0xf] }
  0x8d   : > { %4150 = vmatpush3.bf16.msra.mxu1 %v4335_v27  ;;  %4118 = vmatpush3.bf16.msra.mxu0 %v4334_v42  ;;  %v2390_v27 = vshll.u32 %v5015_v18, 16  ;;  %v2374_v33 = vrot.slane %v2373_v45, 4  ;;  %v2369_v37 = vsel %vm4524_vm2, %v2364_v9, %v2368_v53  ;;  %v5029_v42 = vld [vmem:[%s4481_s24 + $0x34] sm:$0xf]  ;;  %v2410_v58 = vrot.slane %v2408_v4, 5  ;;  %v4341_v53 = vld [vmem:[%s4481_s24 + $0x3c] sm:$0xff]  }
  0x8e   : > { %4199 = vmatprep.subr.bf16.mxu1 %v4985_v38  ;;  %4167 = vmatprep.subr.bf16.mxu0 %v4985_v38  ;;  %v2387_v39 = vor.u32 %v2386_v31, %v2383_v30  ;;  %v2414_v50 = vshll.u32 %v5029_v42, 16  ;;  %v2418_v41 = vshrl.u32 %v5029_v42, 16  ;;  %v2426_v7 = vrot.slane %v2424_v59, 5  ;;  %v4344_v45 = vld [vmem:[%s4481_s24 + $0x48] sm:$0xff]   ;;  %v5085_v30 = vld [vmem:[%s4481_s24 + $0x50] sm:$0x1] }
  0x8f   : > { %v2392_v34 = vrot.slane %v2390_v27, 5  ;;  %v2379_v43 = vsel %vm4524_vm2, %v2374_v33, %v2378_v22  ;;  %v2411_v57 = vor.u32 %v2410_v58, %v2407_v56  ;;  %v2429_v11 = vshrl.u32 %v3589_v60, 16  ;;  %v3592_v27 = vld [vmem:[%s4481_s24 + $0x48] sm:$0xf]  ;;  %v5093_v51 = vld [vmem:[%s4481_s24 + $0x58] sm:$0xf] }
  0x90   : > { %v3620_v52 = vcombine.low %v2369_v37, %v2379_v43  ;;  %v2388_v55 = vrot.slane %v2387_v39, 4  ;;  %v2416_v63 = vrot.slane %v2414_v50, 5  ;;  %v2420_v2 = vrot.slane %v2418_v41, 4  ;;  %v3595_v37 = vld [vmem:[%s4481_s24 + $0x54] sm:$0xf] }
  0x91   : > { %v2397_v48 = vor.u32 %v2396_v47, %v2392_v34  ;;  %v2432_v62 = vshll.u32 %v3589_v60, 16  ;;  %v2438_v17 = vshll.u32 %v5049_v3, 16  ;;  %v2412_v10 = vrot.slane %v2411_v57, 4 }
  0x92   : > { %4151 = vmatprep.mubr.bf16.mxu1 %v3620_v52  ;;  %v2393_v13 = vsel %vm4524_vm2, %v2388_v55, %v2392_v34  ;;  %v2421_v16 = vor.u32 %v2420_v2, %v2416_v63  ;;  %v2431_v14 = vrot.slane %v2429_v11, 4  ;;  %v2442_v6 = vshrl.u32 %v5049_v3, 16  ;;  %v4346_v11 = vld [vmem:[%s5477_s1 + $0x218] sm:$0xff]  }
  0x93   : > { %v2398_v54 = vrot.slane %v2397_v48, 4  ;;  %4120 = vmatmul.mubr.bf16.vlgmr.msra.gmra.mxu0 %v4337_v61  ;;  %v2448_v25 = vshll.u32 %v5052_v0, 16  ;;  %v2434_v8 = vrot.slane %v2432_v62, 5  ;;  %v2440_v21 = vrot.slane %v2438_v17, 5 }
  0x94   : > { %4168 = vmatpush3.bf16.msra.mxu0 %v4985_v38  ;;  %4123 = vmatprep.mubr.bf16.mxu0 %v4340_v44  ;;  %v2422_v19 = vrot.slane %v2421_v16, 4  ;;  %v2417_v22 = vsel %vm4524_vm2, %v2412_v10, %v2416_v63  ;;  %v2444_v23 = vrot.slane %v2442_v6, 4  ;;  %v2453_v31 = vshrl.u32 %v3592_v27, 16  ;;  %v5097_v44 = vld [vmem:[%s4481_s24 + $0x5c] sm:$0x1] }
  0x95   : > { %v2403_v5 = vsel %vm4524_vm2, %v2398_v54, %v2402_v35  ;;  %4169 = vmatprep.subr.bf16.mxu0 %v5036_v49  ;;  %v2450_v26 = vrot.slane %v2448_v25, 5  ;;  %v2435_v9 = vor.u32 %v2434_v8, %v2431_v14  ;;  %v2456_v33 = vshll.u32 %v3592_v27, 16 }
  0x96   : > { %v3621_v15 = vcombine.low %v2393_v13, %v2403_v5  ;;  %v2427_v28 = vsel %vm4524_vm2, %v2422_v19, %v2426_v7  ;;  %v2445_v34 = vor.u32 %v2444_v23, %v2440_v21  ;;  %v2462_v47 = vshll.u32 %v5073_v29, 16  ;;  %v4345_v5 = vld [vmem:[%s4481_s24 + $0x54] sm:$0xff]   ;;  %v3598_v19 = vld [vmem:[%s4481_s24 + $0x60] sm:$0xf] }
  0x97   : > { %v3622_v61 = vcombine.low %v2417_v22, %v2427_v28  ;;  %v2466_v35 = vshrl.u32 %v5073_v29, 16  ;;  %v2436_v39 = vrot.slane %v2435_v9, 4  ;;  %v2455_v40 = vrot.slane %v2453_v31, 4  ;;  %v4348_v23 = vld [vmem:[%s4481_s24 + $0x60] sm:$0xff]  }
  0x98   : > { %4152 = vmatmul.mubr.bf16.vlgmr.msra.gmra.mxu1 %v3621_v15  ;;  %4170 = vmatpush3.bf16.msra.mxu0 %v5036_v49  ;;  %v2458_v43 = vrot.slane %v2456_v33, 5  ;;  %v2472_v48 = vshll.u32 %v5085_v30, 16  ;;  %v2446_v4 = vrot.slane %v2445_v34, 4  ;;  %v2464_v52 = vrot.slane %v2462_v47, 5 }
  0x99   : > { %4207 = vmatpush3.bf16.msra.mxu1 %v4985_v38  ;;  %v5082_v38 = vld [vmem:[%s5477_s1 + $0x220] sm:$0xff]   ;;  %4171 = vmatprep.subr.bf16.mxu0 %v5059_v12  ;;  %v2468_v55 = vrot.slane %v2466_v35, 4  ;;  %v2477_v50 = vshrl.u32 %v3595_v37, 16  ;;  %v2441_v41 = vsel %vm4524_vm2, %v2436_v39, %v2440_v21  ;;  %v2480_v58 = vshll.u32 %v3595_v37, 16  ;;  %v3601_v35 = vld [vmem:[%s4481_s24 + $0x6c] sm:$0xf] }
  0x9a   : > { %4200 = vmatprep.subr.bf16.mxu1 %v5036_v49  ;;  %4155 = vmatprep.mubr.bf16.mxu1 %v3622_v61  ;;  %v2459_v54 = vor.u32 %v2458_v43, %v2455_v40  ;;  %v2474_v56 = vrot.slane %v2472_v48, 5  ;;  %v2486_v13 = vshll.u32 %v5093_v51, 16  ;;  %v2490_v7 = vshrl.u32 %v5093_v51, 16  ;;  %v5147_v43 = vld [vmem:[%s4481_s24 + $0x70] sm:$0xf] }
  0x9b   : > { %4124 = vmatmul.mubr.bf16.gmra.mxu0 %v4341_v53  ;;  %v2469_v59 = vor.u32 %v2468_v55, %v2464_v52  ;;  %v2479_v60 = vrot.slane %v2477_v50, 4  ;;  %v2482_v57 = vrot.slane %v2480_v58, 5  ;;  %v2496_v62 = vshll.u32 %v5097_v44, 16  ;;  %v5126_v53 = vld [vmem:[%s4481_s24 + $0x64] sm:$0xf] }
  0x9c   : > { %4172 = vmatpush3.bf16.msra.mxu0 %v5059_v12  ;;  %4127 = vmatprep.mubr.bf16.mxu0 %v4344_v45  ;;  %v2460_v2 = vrot.slane %v2459_v54, 4  ;;  %v2488_v16 = vrot.slane %v2486_v13, 5  ;;  %v2827_v17 = vrot.slane %v5093_v51, 5  ;;  %v2492_v6 = vrot.slane %v2490_v7, 4  ;;  %v5150_v48 = vld [vmem:[%s4481_s24 + $0x74] sm:$0x1] }
  0x9d   : > { %4208 = vmatpush3.bf16.msra.mxu1 %v5036_v49  ;;  %v2451_v49 = vsel %vm4524_vm2, %v2446_v4, %v2450_v26  ;;  %4173 = vmatprep.subr.bf16.mxu0 %v5082_v38  ;;  %v2470_v15 = vrot.slane %v2469_v59, 4  ;;  %v2483_v14 = vor.u32 %v2482_v57, %v2479_v60  ;;  %v2830_v25 = vrot.slane %v5097_v44, 5  ;;  %v5137_v26 = vld [vmem:[%s4481_s24 + $0x68] sm:$0x1] }
  0x9e   : > { %4201 = vmatprep.subr.bf16.mxu1 %v5059_v12  ;;  %v3623_v63 = vcombine.low %v2441_v41, %v2451_v49  ;;  %v2465_v10 = vsel %vm4524_vm2, %v2460_v2, %v2464_v52  ;;  %v2498_v21 = vrot.slane %v2496_v62, 5  ;;  %v5133_v22 = vrot.slane %v2827_v17, 4 }
  0x9f   : > { %v2475_v8 = vsel %vm4524_vm2, %v2470_v15, %v2474_v56  ;;  %v2501_v45 = vshrl.u32 %v3598_v19, 16  ;;  %v2484_v28 = vrot.slane %v2483_v14, 4  ;;  %v2493_v9 = vor.u32 %v2492_v6, %v2488_v16  ;;  %v3640_v14 = vld [vmem:[%s4481_s24 + $0x48] sm:$0xe] }
  0xa0   : > { %4156 = vmatmul.mubr.bf16.gmra.mxu1 %v3623_v63  ;;  %4174 = vmatpush3.bf16.msra.mxu0 %v5082_v38  ;;  %v3624_v27 = vcombine.low %v2465_v10, %v2475_v8  ;;  %v2504_v31 = vshll.u32 %v3598_v19, 16  ;;  %v2510_v61 = vshll.u32 %v5126_v53, 16  ;;  %v2514_v34 = vshrl.u32 %v5126_v53, 16  ;;  %v3636_v63 = vld [vmem:[%s4481_s24 + $0x18] sm:$0xe] }
  0xa1   : > { %4209 = vmatpush3.bf16.msra.mxu1 %v5059_v12  ;;  %v5122_v12 = vld [vmem:[%s5477_s1 + $0x210] sm:$0xff]   ;;  %4175 = vmatprep.subr.bf16.mxu0 %v4346_v11  ;;  %v2503_v33 = vrot.slane %v2501_v45, 4  ;;  %v2520_v47 = vshll.u32 %v5137_v26, 16  ;;  %v2489_v37 = vsel %vm4524_vm2, %v2484_v28, %v2488_v16  ;;  %v2494_v39 = vrot.slane %v2493_v9, 4  ;;  %v3637_v45 = vld [vmem:[%s4481_s24 + $0x24] sm:$0xe] }
  0xa2   : > { %4202 = vmatprep.subr.bf16.mxu1 %v5082_v38  ;;  %4159 = vmatprep.mubr.bf16.mxu1 %v3624_v27  ;;  %v2506_v40 = vrot.slane %v2504_v31, 5  ;;  %v2512_v4 = vrot.slane %v2510_v61, 5  ;;  %v2516_v52 = vrot.slane %v2514_v34, 4  ;;  %v2525_v50 = vshrl.u32 %v3601_v35, 16  ;;  %v3641_v34 = vld [vmem:[%s4481_s24 + $0x54] sm:$0xe] }
  0xa3   : > { %4128 = vmatmul.mubr.bf16.gmra.mxu0 %v4345_v5  ;;  %v2522_v55 = vrot.slane %v2520_v47, 5  ;;  %v2499_v41 = vsel %vm4524_vm2, %v2494_v39, %v2498_v21  ;;  %v2528_v56 = vshll.u32 %v3601_v35, 16  ;;  %v2534_v58 = vshll.u32 %v5147_v43, 16  ;;  %v4349_v5 = vld [vmem:[%s4481_s24 + $0x6c] sm:$0xff]   ;;  %v4351_v21 = vld [vmem:[%s5477_s1 + $0x200] sm:$0xff]  }
  0xa4   : > { %4176 = vmatpush3.bf16.msra.mxu0 %v4346_v11  ;;  %4131 = vmatprep.mubr.bf16.mxu0 %v4348_v23  ;;  %v2507_v54 = vor.u32 %v2506_v40, %v2503_v33  ;;  %v3625_v49 = vcombine.low %v2489_v37, %v2499_v41  ;;  %v2517_v59 = vor.u32 %v2516_v52, %v2512_v4  ;;  %v2527_v60 = vrot.slane %v2525_v50, 4  ;;  %v3638_v39 = vld [vmem:[%s4481_s24 + $0x30] sm:$0xe] }
  0xa5   : > { %4210 = vmatpush3.bf16.msra.mxu1 %v5082_v38  ;;  %v5155_v38 = vld [vmem:[%s5477_s1 + $0x208] sm:$0xff]   ;;  %4177 = vmatprep.subr.bf16.mxu0 %v5122_v12  ;;  %v2538_v13 = vshrl.u32 %v5147_v43, 16  ;;  %v2530_v57 = vrot.slane %v2528_v56, 5  ;;  %v2536_v7 = vrot.slane %v2534_v58, 5  ;;  %v2544_v15 = vshll.u32 %v5150_v48, 16 }
  0xa6   : > { %4203 = vmatprep.subr.bf16.mxu1 %v4346_v11  ;;  %v2508_v2 = vrot.slane %v2507_v54, 4  ;;  %v2518_v16 = vrot.slane %v2517_v59, 4  ;;  %v3644_v62 = vrot.slane %v3636_v63, 9  ;;  %v2792_v10 = vrot.slane %v4995_v1, 5  ;;  %v3642_v59 = vld [vmem:[%s4481_s24 + $0x60] sm:$0xe] }
  0xa7   : > { %v2531_v19 = vor.u32 %v2530_v57, %v2527_v60  ;;  %v2546_v8 = vrot.slane %v2544_v15, 5  ;;  %v2795_v23 = vrot.slane %v4998_v46, 5  ;;  %v3648_v61 = vrot.slane %v3640_v14, 9  ;;  %v3643_v15 = vld [vmem:[%s4481_s24 + $0x6c] sm:$0xe] }
  0xa8   : > { %4160 = vmatmul.mubr.bf16.gmra.mxu1 %v3625_v49  ;;  %4178 = vmatpush3.bf16.msra.mxu0 %v5122_v12  ;;  %v2513_v6 = vsel %vm4524_vm2, %v2508_v2, %v2512_v4  ;;  %v2523_v1 = vsel %vm4524_vm2, %v2518_v16, %v2522_v55  ;;  %v2793_v28 = vsel %vm4697_vm5, %v3644_v62, %v2792_v10  ;;  %v2794_v9 = vrot.slane %v2792_v10, 4 }
  0xa9   : > { %4211 = vmatpush3.bf16.msra.mxu1 %v4346_v11  ;;  %v2540_v11 = vrot.slane %v2538_v13, 4  ;;  %4179 = vmatprep.subr.bf16.mxu0 %v5155_v38  ;;  %v3626_v31 = vcombine.low %v2513_v6, %v2523_v1  ;;  %v2532_v33 = vrot.slane %v2531_v19, 4  ;;  %v2820_v46 = vrot.slane %v5073_v29, 5 }
  0xaa   : > { %4204 = vmatprep.subr.bf16.mxu1 %v5122_v12  ;;  %v2823_v35 = vrot.slane %v5085_v30, 5  ;;  %v3645_v37 = vrot.slane %v3637_v45, 9  ;;  %v2799_v30 = vrot.slane %v5015_v18, 5  ;;  %v2802_v50 = vrot.slane %v5018_v20, 5  ;;  %v3639_v20 = vld [vmem:[%s4481_s24 + $0x3c] sm:$0xe] }
  0xab   : > { %v2541_v27 = vor.u32 %v2540_v11, %v2536_v7  ;;  %4132 = vmatmul.mubr.bf16.gmra.mxu0 %v4349_v5  ;;  %4163 = vmatprep.mubr.bf16.mxu1 %v3626_v31  ;;  %v2537_v40 = vsel %vm4524_vm2, %v2532_v33, %v2536_v7  ;;  %v2821_v29 = vsel %vm4697_vm5, %v3648_v61, %v2820_v46  ;;  %v2822_v52 = vrot.slane %v2820_v46, 4  ;;  %s3281_s24 = sshll.u32 %s4374_s12, 3 }
  0xac   : > { %4180 = vmatpush3.bf16.msra.mxu0 %v5155_v38  ;;  %v3649_v41 = vrot.slane %v3641_v34, 9  ;;  %v3646_v58 = vrot.slane %v3638_v39, 9  ;;  %v2806_v49 = vrot.slane %v5029_v42, 5  ;;  %v2801_v60 = vrot.slane %v2799_v30, 4  ;;  %p5356_p6 = scmp.lt.s32.totalorder %s3281_s24, 15 }
  0xad   : > { %4212 = vmatpush3.bf16.msra.mxu1 %v5122_v12  ;;  %v2542_v47 = vrot.slane %v2541_v27, 4  ;;  %v2796_v12 = vsel %vm4697_vm5, %v2794_v9, %v2795_v23  ;;  %4181 = vmatprep.subr.bf16.mxu0 %v4351_v21  ;;  %v2824_v56 = vsel %vm4697_vm5, %v2822_v52, %v2823_v35  ;;  %v2831_v18 = vsel %vm4697_vm5, %v5133_v22, %v2830_v25 }
  0xae   : > { %4205 = vmatprep.subr.bf16.mxu1 %v5155_v38  ;;  %v3668_v4 = vcombine.low %v2793_v28, %v2796_v12  ;;  %v3672_v36 = vcombine.low %v2821_v29, %v2824_v56  ;;  %v2828_v42 = vsel %vm4697_vm5, %v3649_v41, %v2827_v17  ;;  %v2807_v13 = vsel %vm4697_vm5, %v3646_v58, %v2806_v49  ;;  %s5528_s24 = smov (!%p5356_p6, %s3281_s24), 15 }
  0xaf   : > { %v2547_v55 = vsel %vm4524_vm2, %v2542_v47, %v2546_v8  ;;  %v2808_v63 = vrot.slane %v2806_v49, 4  ;;  %v2809_v2 = vrot.slane %v5039_v24, 5  ;;  %v2803_v44 = vsel %vm4697_vm5, %v2801_v60, %v2802_v50  ;;  %s3282_s12 = sshll.u32 %s5528_s24, 1 }
  0xb0   : > { %v3627_v54 = vcombine.low %v2537_v40, %v2547_v55  ;;  %4183 = vmatprep.mubr.bf16.mxu0 %v3668_v4  ;;  %4182 = vmatpush3.bf16.msra.mxu0 %v4351_v21  ;;  %v3650_v25 = vrot.slane %v3642_v59, 9  ;;  %v2834_v22 = vrot.slane %v5126_v53, 5  ;;  %v2837_v5 = vrot.slane %v5137_v26, 5  ;;  %s5416_s13 = sadd.s32 %s3283_s9, %s3282_s12 }
  0xb1   : > { %4213 = vmatpush3.bf16.msra.mxu1 %v5155_v38  ;;  %v2800_v38 = vsel %vm4697_vm5, %v3645_v37, %v2799_v30  ;;  %v2810_v17 = vsel %vm4697_vm5, %v2808_v63, %v2809_v2  ;;  %v3647_v57 = vrot.slane %v3639_v20, 9  ;;  %v2813_v7 = vrot.slane %v5049_v3, 5  ;;  %s3284_s19 = sshll.u32 %s5416_s13, 2 }
  0xb2   : > { %4206 = vmatprep.subr.bf16.mxu1 %v4351_v21  ;;  %4164 = vmatmul.mubr.bf16.gmra.mxu1 %v3627_v54  ;;  %v3669_v51 = vcombine.low %v2800_v38, %v2803_v44  ;;  %v3670_v16 = vcombine.low %v2807_v13, %v2810_v17  ;;  %v2835_v24 = vsel %vm4697_vm5, %v3650_v25, %v2834_v22  ;;  %v2836_v11 = vrot.slane %v2834_v22, 4  ;;  %s5436_s22 = scalar_lea.vmem %s5479_s3, %s3284_s19 }
  0xb3   : > { %4191 = vmatprep.mubr.bf16.mxu1 %v3672_v36  ;;  %v2816_v62 = vrot.slane %v5052_v0, 5  ;;  %v3673_v10 = vcombine.low %v2828_v42, %v2831_v18  ;;  %v2815_v53 = vrot.slane %v2813_v7, 4  ;;  %v2841_v26 = vrot.slane %v5147_v43, 5 }
  0xb4   : > { %4184 = vmatmul.mubr.bf16.vlgmr.msra.gmra.mxu0 %v3669_v51  ;;  %v2838_v14 = vsel %vm4697_vm5, %v2836_v11, %v2837_v5  ;;  %v2814_v3 = vsel %vm4697_vm5, %v3647_v57, %v2813_v7  ;;  %v3651_v6 = vrot.slane %v3643_v15, 9  ;;  %v2844_v19 = vrot.slane %v5150_v48, 5 }
  0xb5   : > { %4214 = vmatpush3.bf16.msra.mxu1 %v4351_v21  ;;  %4187 = vmatprep.mubr.bf16.mxu0 %v3670_v16  ;;  %v3674_v8 = vcombine.low %v2835_v24, %v2838_v14  ;;  %v2817_v21 = vsel %vm4697_vm5, %v2815_v53, %v2816_v62  ;;  %v2843_v0 = vrot.slane %v2841_v26, 4 }
  0xb6   : > { %v3671_v23 = vcombine.low %v2814_v3, %v2817_v21  ;;  %v2842_v43 = vsel %vm4697_vm5, %v3651_v6, %v2841_v26 }
  0xb7   : > { %v2845_v45 = vsel %vm4697_vm5, %v2843_v0, %v2844_v19 }
  0xb8   : > { %v3675_v1 = vcombine.low %v2842_v43, %v2845_v45 }
  0xba   : > { %4192 = vmatmul.mubr.bf16.vlgmr.msra.gmra.mxu1 %v3673_v10 }
  0xbb   : > { %4195 = vmatprep.mubr.bf16.mxu1 %v3674_v8 }
  0xbc   : > { %4188 = vmatmul.mubr.bf16.gmra.mxu0 %v3671_v23 }
  0xc2   : > { %4196 = vmatmul.mubr.bf16.gmra.mxu1 %v3675_v1 }
  0xef   : > { %v3929_v27 = vpop.f32.mrf.mxu0 }
  0xf0   : > { %v3961_v28 = vpop.f32.mrf.mxu1 }
  0xf1   : > { %v769_v48 = vadd.f32 %v3961_v28, %v3929_v27  ;;  %v567_v9 = vpop.f32.mrf.mxu0 }
  0xf2   : > { %v760_v31 = vpop.f32.mrf.mxu1 }
  0xf3   : > { %v761_v33 = vadd.f32 %v760_v31, %v567_v9  ;;  %v3930_v61 = vpop.f32.mrf.mxu0 }
  0xf4   : > { %v3962_v46 = vpop.f32.mrf.mxu1 }
  0xf5   : > { %v772_v34 = vadd.f32 %v3962_v46, %v3930_v61  ;;  %v570_v47 = vpop.f32.mrf.mxu0 }
  0xf6   : > { %v763_v12 = vpop.f32.mrf.mxu1 }
  0xf7   : > { %v764_v35 = vadd.f32 %v763_v12, %v570_v47  ;;  %v3933_v37 = vpop.f32.mrf.mxu0 }
  0xf8   : > { %v3965_v39 = vpop.f32.mrf.mxu1 }
  0xf9   : > { %v785_v40 = vadd.f32 %v3965_v39, %v3933_v37  ;;  %v583_v32 = vpop.f32.mrf.mxu0 }
  0xfa   : > { %v776_v4 = vpop.f32.mrf.mxu1 }
  0xfb   : > { %v777_v29 = vadd.f32 %v776_v4, %v583_v32  ;;  %v3934_v52 = vpop.f32.mrf.mxu0 }
  0xfc   : > { %v3966_v55 = vpop.f32.mrf.mxu1 }
  0xfd   : > { %v788_v30 = vadd.f32 %v3966_v55, %v3934_v52  ;;  %v586_v50 = vpop.f32.mrf.mxu0 }
  0xfe   : > { %v779_v41 = vpop.f32.mrf.mxu1 }
  0xff   : > { %v780_v54 = vadd.f32 %v779_v41, %v586_v50  ;;  %v3937_v58 = vpop.f32.mrf.mxu0 }
 0x100   : > { %v3969_v56 = vpop.f32.mrf.mxu1 }
 0x101   : > { %v801_v59 = vadd.f32 %v3969_v56, %v3937_v58  ;;  %v599_v36 = vpop.f32.mrf.mxu0 }
 0x102   : > { %v792_v49 = vpop.f32.mrf.mxu1 }
 0x103   : > { %v793_v60 = vadd.f32 %v792_v49, %v599_v36  ;;  %v3938_v18 = vpop.f32.mrf.mxu0 }
 0x104   : > { %v3970_v38 = vpop.f32.mrf.mxu1 }
 0x105   : > { %v804_v42 = vadd.f32 %v3970_v38, %v3938_v18  ;;  %v602_v13 = vpop.f32.mrf.mxu0 }
 0x106   : > { %v795_v20 = vpop.f32.mrf.mxu1 }
 0x107   : > { %v796_v2 = vadd.f32 %v795_v20, %v602_v13  ;;  %v3941_v25 = vpop.f32.mrf.mxu0 }
 0x108   : > { %v3973_v63 = vpop.f32.mrf.mxu1 }
 0x109   : > { %v817_v5 = vadd.f32 %v3973_v63, %v3941_v25  ;;  %v615_v51 = vpop.f32.mrf.mxu0 }
 0x10a   : > { %v808_v44 = vpop.f32.mrf.mxu1 }
 0x10b   : > { %v809_v57 = vadd.f32 %v808_v44, %v615_v51  ;;  %v3942_v7 = vpop.f32.mrf.mxu0 }
 0x10c   : > { %v3974_v22 = vpop.f32.mrf.mxu1 }
 0x10d   : > { %v820_v16 = vadd.f32 %v3974_v22, %v3942_v7  ;;  %v618_v24 = vpop.f32.mrf.mxu0 }
 0x10e   : > { %v811_v17 = vpop.f32.mrf.mxu1 }
 0x10f   : > { %v5241_v62 = vadd.f32 %v811_v17, %v618_v24  ;;  %v3993_v10 = vpop.f32.mrf.mxu0 }
 0x110   : > { %v4025_v15 = vpop.f32.mrf.mxu1  ;;  %v1102_v26 = vadd.f32 %v3993_v10, %v769_v48 }
 0x111   : > { %v1037_v14 = vpop.f32.mrf.mxu0 }
 0x112   : > { %v1283_v11 = vpop.f32.mrf.mxu1  ;;  %v5243_v6 = vadd.f32 %v4025_v15, %v1102_v26  ;;  %v1100_v19 = vadd.f32 %v1037_v14, %v761_v33 }
 0x113   : > { %v3994_v8 = vpop.f32.mrf.mxu0 }
 0x114   : > { %v4026_v53 = vpop.f32.mrf.mxu1  ;;  %v5245_v0 = vadd.f32 %v1283_v11, %v1100_v19  ;;  %v1103_v23 = vadd.f32 %v3994_v8, %v772_v34 }
 0x115   : > { %v1040_v43 = vpop.f32.mrf.mxu0 }
 0x116   : > { %v1286_v3 = vpop.f32.mrf.mxu1  ;;  %v5247_v1 = vadd.f32 %v4026_v53, %v1103_v23  ;;  %v1101_v27 = vadd.f32 %v1040_v43, %v764_v35 }
 0x117   : > { %v3997_v28 = vpop.f32.mrf.mxu0 }
 0x118   : > { %v4029_v21 = vpop.f32.mrf.mxu1  ;;  %v5249_v31 = vadd.f32 %v1286_v3, %v1101_v27  ;;  %v1106_v48 = vadd.f32 %v3997_v28, %v785_v40 }
 0x119   : > { %v1053_v61 = vpop.f32.mrf.mxu0 }
 0x11a   : > { %v1299_v45 = vpop.f32.mrf.mxu1  ;;  %v5251_v47 = vadd.f32 %v4029_v21, %v1106_v48  ;;  %v1104_v33 = vadd.f32 %v1053_v61, %v777_v29 }
 0x11b   : > { %v3998_v12 = vpop.f32.mrf.mxu0 }
 0x11c   : > { %v4030_v9 = vpop.f32.mrf.mxu1  ;;  %v5253_v39 = vadd.f32 %v1299_v45, %v1104_v33  ;;  %v1107_v34 = vadd.f32 %v3998_v12, %v788_v30 }
 0x11d   : > { %v1056_v32 = vpop.f32.mrf.mxu0 }
 0x11e   : > { %v1302_v46 = vpop.f32.mrf.mxu1  ;;  %v5255_v52 = vadd.f32 %v4030_v9, %v1107_v34  ;;  %v1105_v35 = vadd.f32 %v1056_v32, %v780_v54 }
 0x11f   : > { %v4001_v55 = vpop.f32.mrf.mxu0 }
 0x120   : > { %v4033_v37 = vpop.f32.mrf.mxu1  ;;  %v5257_v41 = vadd.f32 %v1302_v46, %v1105_v35  ;;  %v1110_v40 = vadd.f32 %v4001_v55, %v801_v59 }
 0x121   : > { %v1069_v56 = vpop.f32.mrf.mxu0 }
 0x122   : > { %v1315_v4 = vpop.f32.mrf.mxu1  ;;  %v5259_v49 = vadd.f32 %v4033_v37, %v1110_v40  ;;  %v1108_v29 = vadd.f32 %v1069_v56, %v793_v60 }
 0x123   : > { %v4002_v36 = vpop.f32.mrf.mxu0 }
 0x124   : > { %v4034_v50 = vpop.f32.mrf.mxu1  ;;  %v5261_v18 = vadd.f32 %v1315_v4, %v1108_v29  ;;  %v1111_v30 = vadd.f32 %v4002_v36, %v804_v42 }
 0x125   : > { %v1072_v20 = vpop.f32.mrf.mxu0 }
 0x126   : > { %v1318_v58 = vpop.f32.mrf.mxu1  ;;  %v5263_v63 = vadd.f32 %v4034_v50, %v1111_v30  ;;  %v1109_v54 = vadd.f32 %v1072_v20, %v796_v2 }
 0x127   : > { %v4005_v44 = vpop.f32.mrf.mxu0 }
 0x128   : > { %v4037_v38 = vpop.f32.mrf.mxu1  ;;  %v5265_v22 = vadd.f32 %v1318_v58, %v1109_v54  ;;  %v1114_v59 = vadd.f32 %v4005_v44, %v817_v5 }
 0x129   : > { %v1085_v51 = vpop.f32.mrf.mxu0 }
 0x12a   : > { %v1331_v13 = vpop.f32.mrf.mxu1  ;;  %v5267_v7 = vadd.f32 %v4037_v38, %v1114_v59  ;;  %v1112_v60 = vadd.f32 %v1085_v51, %v809_v57 }
 0x12b   : > { %v4006_v15 = vpop.f32.mrf.mxu0 }
 0x12c   : > { %v4038_v25 = vpop.f32.mrf.mxu1  ;;  %v5271_v11 = vadd.f32 %v1331_v13, %v1112_v60  ;;  %v1115_v42 = vadd.f32 %v4006_v15, %v820_v16 }
 0x12d   : > { %v1088_v10 = vpop.f32.mrf.mxu0 }
 0x12e   : > { %v1334_v17 = vpop.f32.mrf.mxu1  ;;  %v5275_v2 = vadd.f32 %v4038_v25, %v1115_v42  ;;  %v1113_v26 = vadd.f32 %v1088_v10, %v5241_v62 }
 0x12f   : > { %v4057_v14 = vpop.f32.mrf.mxu0 }
 0x130   : > { %v5269_v24 = vpop.f32.mrf.mxu1  ;;  %v5278_v5 = vadd.f32 %v1334_v17, %v1113_v26 }
 0x131   : > { %v1709_v19 = vpop.f32.mrf.mxu0 }
 0x132   : > { %v5273_v53 = vpop.f32.mrf.mxu1 }
 0x133   : > { %v4058_v57 = vpop.f32.mrf.mxu0 }
 0x134   : > { %v5280_v3 = vpop.f32.mrf.mxu1 }
 0x135   : > { %v1712_v21 = vpop.f32.mrf.mxu0 }
 0x136   : > { %v5282_v8 = vpop.f32.mrf.mxu1 }
 0x138   : > { %v4061_v23 = vpop.f32.mrf.mxu0  ;;  %v5284_v43 = vpop.f32.mrf.mxu1 }
 0x13a   : > { %v1725_v16 = vpop.f32.mrf.mxu0  ;;  %v5286_v45 = vpop.f32.mrf.mxu1 }
 0x13c   : > { %v4062_v27 = vpop.f32.mrf.mxu0  ;;  %v5288_v28 = vpop.f32.mrf.mxu1 }
 0x13e   : > { %v1728_v62 = vpop.f32.mrf.mxu0  ;;  %v5290_v9 = vpop.f32.mrf.mxu1 }
 0x140   : > { %v4065_v48 = vpop.f32.mrf.mxu0  ;;  %v5292_v61 = vpop.f32.mrf.mxu1 }
 0x142   : > { %v1741_v46 = vpop.f32.mrf.mxu0  ;;  %v5294_v33 = vpop.f32.mrf.mxu1 }
 0x144   : > { %v4066_v12 = vpop.f32.mrf.mxu0  ;;  %v5296_v37 = vpop.f32.mrf.mxu1 }
 0x146   : > { %v1744_v34 = vpop.f32.mrf.mxu0  ;;  %v5298_v32 = vpop.f32.mrf.mxu1 }
 0x14b   : > { %v4069_v4 = vpop.f32.mrf.mxu0  ;;  %v5300_v35 = vpop.f32.mrf.mxu1 }
 0x14d   : > { %v1757_v55 = vpop.f32.mrf.mxu0  ;;  %v5302_v50 = vpop.f32.mrf.mxu1 }
 0x14f   : > { %v4070_v40 = vpop.f32.mrf.mxu0  ;;  %v5304_v56 = vpop.f32.mrf.mxu1 }
 0x150   : > { %5484 = vst [vmem:[#allocation2_spill] sm:$0xff] %v5304_v56 }
 0x151   : > { %v1760_v58 = vpop.f32.mrf.mxu0  ;;  %v5306_v29 = vpop.f32.mrf.mxu1 }
 0x152   : > { %5485 = vst [vmem:[#allocation3_spill] sm:$0xff] %v5306_v29 }
 0x153   : > { %v4121_v36 = vpop.f32.mrf.mxu0 }
 0x155   : > { %v2253_v38 = vpop.f32.mrf.mxu0 }
 0x157   : > { %v4122_v20 = vpop.f32.mrf.mxu0 }
 0x158   : > { %v4153_v30 = vpop.f32.mrf.mxu1 }
 0x159   : > { %v2256_v54 = vpop.f32.mrf.mxu0 }
 0x15a   : > { %v5308_v13 = vpop.f32.mrf.mxu1 }
 0x15b   : > { %5486 = vst [vmem:[#allocation4_spill] sm:$0xff] %v5308_v13  ;;  %v4125_v59 = vpop.f32.mrf.mxu0 }
 0x15c   : > { %v5310_v44 = vpop.f32.mrf.mxu1 }
 0x15d   : > { %5487 = vst [vmem:[#allocation5_spill] sm:$0xff] %v5310_v44  ;;  %v5314_v51 = vpop.f32.mrf.mxu0 }
 0x15e   : > { %v5312_v25 = vpop.f32.mrf.mxu1  ;;  %5489 = vst [vmem:[#allocation7_spill] sm:$0xff] %v5314_v51 }
 0x15f   : > { %5488 = vst [vmem:[#allocation6_spill] sm:$0xff] %v5312_v25  ;;  %v5318_v60 = vpop.f32.mrf.mxu0 }
 0x160   : > { %v5316_v17 = vpop.f32.mrf.mxu1  ;;  %5491 = vst [vmem:[#allocation9_spill] sm:$0xff] %v5318_v60 }
 0x161   : > { %5490 = vst [vmem:[#allocation8_spill] sm:$0xff] %v5316_v17  ;;  %v5322_v42 = vpop.f32.mrf.mxu0  ;;  %v1774_v17 = vadd.f32 %v4057_v14, %v5243_v6 }
 0x162   : > { %v5320_v15 = vpop.f32.mrf.mxu1  ;;  %5493 = vst [vmem:[#allocation11_spill] sm:$0xff] %v5322_v42 }
 0x163   : > { %5492 = vst [vmem:[#allocation10_spill] sm:$0xff] %v5320_v15  ;;  %v4129_v26 = vpop.f32.mrf.mxu0  ;;  %v1772_v15 = vadd.f32 %v1709_v19, %v5245_v0  ;;  %v2072_v14 = vadd.f32 %v5269_v24, %v1774_v17  ;;  %v1782_v0 = vadd.f32 %v4065_v48, %v5259_v49  ;;  %v1783_v24 = vadd.f32 %v4066_v12, %v5263_v63 }
 0x164   : > { %v5324_v10 = vpop.f32.mrf.mxu1  ;;  %v1787_v63 = vadd.f32 %v4070_v40, %v5275_v2 }
 0x165   : > { %5494 = vst [vmem:[#allocation12_spill] sm:$0xff] %v5324_v10  ;;  %v2285_v44 = vpop.f32.mrf.mxu0  ;;  %v1775_v10 = vadd.f32 %v4058_v57, %v5247_v1  ;;  %v2070_v1 = vadd.f32 %v5273_v53, %v1772_v15  ;;  %v2318_v57 = vadd.f32 %v4121_v36, %v2072_v14  ;;  %v5502_v36 = vld [vmem:[#allocation4_spill] sm:$0xff] }
 0x166   : > { %v5326_v13 = vpop.f32.mrf.mxu1  ;;  %v5509_v14 = vld [vmem:[#allocation6_spill] sm:$0xff] }
 0x167   : > { %5495 = vst [vmem:[#allocation13_spill] sm:$0xff] %v5326_v13  ;;  %v5328_v29 = vpop.f32.mrf.mxu0  ;;  %v1773_v13 = vadd.f32 %v1712_v21, %v5249_v31  ;;  %v1777_v31 = vadd.f32 %v1728_v62, %v5257_v41  ;;  %v1781_v41 = vadd.f32 %v1744_v34, %v5265_v22  ;;  %v2744_v48 = vadd.f32 %v4153_v30, %v2318_v57 }
 0x168   : > { %5496 = vst [vmem:[#allocation14_spill] sm:$0xff] %v5328_v29  ;;  %v5330_v25 = vpop.f32.mrf.mxu1  ;;  %v1778_v29 = vadd.f32 %v4061_v23, %v5251_v47  ;;  %v1780_v47 = vadd.f32 %v1741_v46, %v5261_v18 }
 0x169   : > { %5497 = vst [vmem:[#allocation15_spill] sm:$0xff] %v5330_v25  ;;  %v5332_v51 = vpop.f32.mrf.mxu0  ;;  %v1779_v25 = vadd.f32 %v4062_v27, %v5255_v52  ;;  %v2073_v52 = vadd.f32 %v5280_v3, %v1775_v10  ;;  %v2071_v49 = vadd.f32 %v5282_v8, %v1773_v13  ;;  %v2080_v27 = vadd.f32 %v5292_v61, %v1782_v0 }
 0x16a   : > { %5498 = vst [vmem:[#allocation16_spill] sm:$0xff] %v5332_v51  ;;  %v5335_v60 = vpop.f32.mrf.mxu1  ;;  %v1776_v51 = vadd.f32 %v1725_v16, %v5253_v39  ;;  %v2076_v21 = vadd.f32 %v5284_v43, %v1778_v29  ;;  %v1786_v3 = vadd.f32 %v4069_v4, %v5267_v7  ;;  %v1784_v8 = vadd.f32 %v1757_v55, %v5271_v11  ;;  %v5500_v55 = vld [vmem:[#allocation2_spill] sm:$0xff] }
 0x16b   : > { %v5338_v42 = vpop.f32.mrf.mxu0  ;;  %v2077_v53 = vadd.f32 %v5288_v28, %v1779_v25  ;;  %v2075_v43 = vadd.f32 %v5290_v9, %v1777_v31  ;;  %v2078_v22 = vadd.f32 %v5294_v33, %v1780_v47  ;;  %v2316_v28 = vadd.f32 %v2253_v38, %v2070_v1  ;;  %v5510_v1 = vld [vmem:[#allocation8_spill] sm:$0xff] }
 0x16c   : > { %v5343_v56 = vpop.f32.mrf.mxu1  ;;  %v2074_v23 = vadd.f32 %v5286_v45, %v1776_v51  ;;  %v1785_v45 = vadd.f32 %v1760_v58, %v5278_v5  ;;  %v2081_v7 = vadd.f32 %v5296_v37, %v1783_v24  ;;  %v2319_v11 = vadd.f32 %v4122_v20, %v2073_v52  ;;  %v5501_v37 = vld [vmem:[#allocation3_spill] sm:$0xff]  ;;  %v5504_v20 = vld [vmem:[#allocation9_spill] sm:$0xff] }
 0x16d   : > { %v5348_v6 = vpop.f32.mrf.mxu0  ;;  %v2326_v61 = vadd.f32 %v4129_v26, %v2080_v27  ;;  %v2079_v2 = vadd.f32 %v5298_v32, %v1781_v41  ;;  %v2317_v46 = vadd.f32 %v2256_v54, %v2071_v49  ;;  %v2322_v12 = vadd.f32 %v4125_v59, %v2076_v21  ;;  %v5503_v32 = vld [vmem:[#allocation7_spill] sm:$0xff]  ;;  %v5511_v41 = vld [vmem:[#allocation10_spill] sm:$0xff] }
 0x16e   : > { %v5352_v19 = vpop.f32.mrf.mxu1  ;;  %v2324_v34 = vadd.f32 %v2285_v44, %v2078_v22  ;;  %v2084_v33 = vadd.f32 %v5300_v35, %v1786_v3  ;;  %v2082_v5 = vadd.f32 %v5302_v50, %v1784_v8  ;;  %v2085_v40 = vadd.f32 %v5500_v55, %v1787_v63  ;;  %v5407_v35 = vld [vmem:[%s5478_s2] ss:$0 sm:$0xff]  ;;  %v5505_v44 = vld [vmem:[#allocation5_spill] sm:$0xff]  ;;  %v5512_v3 = vld [vmem:[#allocation12_spill] sm:$0xff] }
 0x16f   : > { %v5363_v39 = vpop.f32.mrf.mxu0  ;;  %v2083_v29 = vadd.f32 %v5501_v37, %v1785_v45  ;;  %v2742_v38 = vadd.f32 %v5502_v36, %v2316_v28  ;;  %v2320_v30 = vadd.f32 %v5503_v32, %v2074_v23  ;;  %v2323_v13 = vadd.f32 %v5504_v20, %v2077_v53  ;;  %v5507_v17 = vld [vmem:[#allocation14_spill] sm:$0xff]  ;;  %v5513_v63 = vld [vmem:[#allocation11_spill] sm:$0xff] }
 0x170   : > { %v2745_v25 = vadd.f32 %v5505_v44, %v2319_v11  ;;  %v5506_v59 = vld [vmem:[#allocation15_spill] sm:$0xff]  ;;  %v2327_v15 = vadd.f32 %v5507_v17, %v2081_v7  ;;  %v2743_v0 = vadd.f32 %v5509_v14, %v2317_v46  ;;  %v2748_v31 = vadd.f32 %v5510_v1, %v2322_v12 }
 0x171   : > { %v5374_v16 = vpop.f32.mrf.mxu0  ;;  %v2752_v51 = vadd.f32 %v5506_v59, %v2326_v61  ;;  %v5508_v10 = vld [vmem:[#allocation16_spill] sm:$0xff]  ;;  %v2750_v47 = vadd.f32 %v5335_v60, %v2324_v34  ;;  %v2330_v57 = vadd.f32 %v5338_v42, %v2084_v33  ;;  %v2746_v27 = vadd.f32 %v5511_v41, %v2320_v30  ;;  %v5514_v59 = vld [vmem:[#allocation13_spill] sm:$0xff] }
 0x172   : > { %v5372_v18 = vpop.f32.mrf.mxu1  ;;  %v2325_v26 = vadd.f32 %v5508_v10, %v2079_v2  ;;  %v2749_v8 = vadd.f32 %v5512_v3, %v2323_v13  ;;  %v2321_v22 = vadd.f32 %v5513_v63, %v2075_v43  ;;  %v2328_v60 = vadd.f32 %v5348_v6, %v2082_v5 }
 0x173   : > { %v2753_v7 = vadd.f32 %v5343_v56, %v2327_v15  ;;  %v2331_v61 = vadd.f32 %v5363_v39, %v2085_v40  ;;  %v2756_v6 = vadd.f32 %v5372_v18, %v2330_v57 }
 0x174   : > { %v2727_v62 = vpop.f32.mrf.mxu1  ;;  %v4185_v9 = vpop.f32.mrf.mxu0 }
 0x175   : > { %v3042_v58 = vadd.f32 %v4185_v9, %v2744_v48  ;;  %v2751_v48 = vadd.f32 %v5352_v19, %v2325_v26  ;;  %v2754_v5 = vadd.f32 %v2727_v62, %v2328_v60  ;;  %v2329_v19 = vadd.f32 %v5374_v16, %v2083_v29 }
 0x176   : > { %v5391_v4 = vpop.f32.mrf.mxu1  ;;  %v2977_v50 = vpop.f32.mrf.mxu0 }
 0x177   : > { %v3040_v49 = vadd.f32 %v2977_v50, %v2742_v38  ;;  %v3065_v21 = vadd.f32 %v5407_v35, %v3042_v58  ;;  %v2757_v17 = vadd.f32 %v5391_v4, %v2331_v61 }
 0x178   : > { %v5402_v54 = vpop.f32.mrf.mxu1  ;;  %v4186_v24 = vpop.f32.mrf.mxu0 }
 0x179   : > { %v3043_v53 = vadd.f32 %v4186_v24, %v2745_v25  ;;  %v3063_v46 = vadd.f32 %v5407_v35, %v3040_v49  ;;  %v3081_v9 = vmax.f32 %v3065_v21, 0.0  ;;  %v2755_v21 = vadd.f32 %v5402_v54, %v2329_v19 }
 0x17a   : > { %v4193_v52 = vpop.f32.mrf.mxu1  ;;  %v2980_v28 = vpop.f32.mrf.mxu0 }
 0x17b   : > { %v3050_v23 = vadd.f32 %v4193_v52, %v2752_v51  ;;  %v3066_v42 = vadd.f32 %v5407_v35, %v3043_v53  ;;  %v3041_v43 = vadd.f32 %v2980_v28, %v2743_v0  ;;  %v3079_v32 = vmax.f32 %v3063_v46, 0.0 }
 0x17c   : > { %v3009_v45 = vpop.f32.mrf.mxu1  ;;  %v4189_v34 = vpop.f32.mrf.mxu0  ;;  %v2747_v51 = vadd.f32 %v5514_v59, %v2321_v22 }
 0x17d   : > { %v3048_v11 = vadd.f32 %v3009_v45, %v2750_v47  ;;  %v3073_v2 = vadd.f32 %v5407_v35, %v3050_v23  ;;  %v3082_v33 = vmax.f32 %v3066_v42, 0.0  ;;  %v3064_v39 = vadd.f32 %v5407_v35, %v3041_v43 }
 0x17e   : > { %v4194_v12 = vpop.f32.mrf.mxu1  ;;  %v3046_v40 = vadd.f32 %v4189_v34, %v2748_v31  ;;  %v2993_v58 = vpop.f32.mrf.mxu0 }
 0x17f   : > { %v3051_v56 = vadd.f32 %v4194_v12, %v2753_v7  ;;  %v3071_v37 = vadd.f32 %v5407_v35, %v3048_v11  ;;  %v3728_v18 = vpack.c.bf16 %v3082_v33, %v3081_v9  ;;  %v3089_v62 = vmax.f32 %v3073_v2, 0.0 }
 0x180   : > { %v3012_v55 = vpop.f32.mrf.mxu1  ;;  %v3080_v16 = vmax.f32 %v3064_v39, 0.0  ;;  %v3044_v30 = vadd.f32 %v2993_v58, %v2746_v27  ;;  %v4190_v20 = vpop.f32.mrf.mxu0  ;;  %v3069_v10 = vadd.f32 %v5407_v35, %v3046_v40 }
 0x181   : > { %v3074_v36 = vadd.f32 %v5407_v35, %v3051_v56  ;;  %v3049_v38 = vadd.f32 %v3012_v55, %v2751_v48  ;;  %3760 = vst [vmem:[%s5436_s22 + $0x8] sm:$0xff] %v3728_v18   ;;  %v3047_v25 = vadd.f32 %v4190_v20, %v2749_v8  ;;  %v3087_v0 = vmax.f32 %v3071_v37, 0.0 }
 0x182   : > { %v4197_v29 = vpop.f32.mrf.mxu1  ;;  %v3723_v15 = vpack.c.bf16 %v3080_v16, %v3079_v32  ;;  %v2996_v14 = vpop.f32.mrf.mxu0  ;;  %v3067_v52 = vadd.f32 %v5407_v35, %v3044_v30  ;;  %v3085_v41 = vmax.f32 %v3069_v10, 0.0 }
 0x183   : > { %v3090_v13 = vmax.f32 %v3074_v36, 0.0  ;;  %v3072_v50 = vadd.f32 %v5407_v35, %v3049_v38  ;;  %v3054_v44 = vadd.f32 %v4197_v29, %v2756_v6  ;;  %v3070_v49 = vadd.f32 %v5407_v35, %v3047_v25 }
 0x184   : > { %v3025_v26 = vpop.f32.mrf.mxu1  ;;  %3724 = vst [vmem:[%s5436_s22] sm:$0xff] %v3723_v15   ;;  %v3045_v57 = vadd.f32 %v2996_v14, %v2747_v51  ;;  %v3083_v60 = vmax.f32 %v3067_v52, 0.0 }
 0x185   : > { %v3748_v1 = vpack.c.bf16 %v3090_v13, %v3089_v62  ;;  %v3088_v31 = vmax.f32 %v3072_v50, 0.0  ;;  %v3052_v47 = vadd.f32 %v3025_v26, %v2754_v5  ;;  %v3077_v23 = vadd.f32 %v5407_v35, %v3054_v44 }
 0x186   : > { %v4198_v24 = vpop.f32.mrf.mxu1  ;;  %v3086_v27 = vmax.f32 %v3070_v49, 0.0  ;;  %v3068_v3 = vadd.f32 %v5407_v35, %v3045_v57 }
 0x187   : > { %3764 = vst [vmem:[%s5436_s22 + $0x28] sm:$0xff] %v3748_v1   ;;  %v3743_v4 = vpack.c.bf16 %v3088_v31, %v3087_v0  ;;  %v3055_v53 = vadd.f32 %v4198_v24, %v2757_v17  ;;  %v3075_v63 = vadd.f32 %v5407_v35, %v3052_v47  ;;  %v3093_v7 = vmax.f32 %v3077_v23, 0.0 }
 0x188   : > { %v3028_v8 = vpop.f32.mrf.mxu1  ;;  %v3738_v45 = vpack.c.bf16 %v3086_v27, %v3085_v41  ;;  %v3084_v28 = vmax.f32 %v3068_v3, 0.0 }
 0x189   : > { %3763 = vst [vmem:[%s5436_s22 + $0x20] sm:$0xff] %v3743_v4   ;;  %v3078_v22 = vadd.f32 %v5407_v35, %v3055_v53  ;;  %v3053_v54 = vadd.f32 %v3028_v8, %v2755_v21  ;;  %v3091_v61 = vmax.f32 %v3075_v63, 0.0 }
 0x18a   : > { %3762 = vst [vmem:[%s5436_s22 + $0x18] sm:$0xff] %v3738_v45   ;;  %v3733_v42 = vpack.c.bf16 %v3084_v28, %v3083_v60 }
 0x18b   : > { %v3094_v48 = vmax.f32 %v3078_v22, 0.0  ;;  %v3076_v11 = vadd.f32 %v5407_v35, %v3053_v54 }
 0x18c   : > { %3761 = vst [vmem:[%s5436_s22 + $0x10] sm:$0xff] %v3733_v42  }
 0x18d   : > { %v3758_v2 = vpack.c.bf16 %v3094_v48, %v3093_v7  ;;  %v3092_v46 = vmax.f32 %v3076_v11, 0.0 }
 0x18f   : > { %3766 = vst [vmem:[%s5436_s22 + $0x38] sm:$0xff] %v3758_v2   ;;  %v3753_v12 = vpack.c.bf16 %v3092_v46, %v3091_v61 }
 0x191   : > { %3765 = vst [vmem:[%s5436_s22 + $0x30] sm:$0xff] %v3753_v12  }
 0x192 PF: > { %s13_s16 = sadd.s32 1, %s4390_s16   ;;  %s5515_s12 = smov %s4382_s14 }
 0x193   : > { %p10_p7 = scmp.ge.s32.totalorder %s13_s16, 6   ;;  %s5516_s13 = smov %s4386_s15 }
 0x194   : > { %s5517_s14 = smov %s5520_s17  ;;  %s5518_s15 = smov %s5524_s18 }
 0x195   :  { %12 = sbr.rel (!%p10_p7) target bundleno = 3 (0x3), region = 73 }

// kernel: visual_extractor_forward.7
= control target key start
LH: loop header
LB: loop body
LE: loop exit
PB: predicated region body
PF: predicated region fallthrough
CT: control target
= control target key end

     0   :  { %s4595_s15 = smov 0   ;;  %s4597_s16 = smov 0   ;;  %s5775_s0 = inlined_call_operand.vmem [shape: bf16[2,18,18,128], index: 0, kind: input, shape index: {}]   ;;  %s5776_s1 = inlined_call_operand.vmem [shape: bf16[9,128,128], index: 1, kind: input, shape index: {}]   ;;  %s5777_s2 = inlined_call_operand.vmem [shape: f32[1,128], index: 2, kind: input, shape index: {}]   ;;  %s5778_s3 = inlined_call_operand.vmem [shape: bf16[2,16,16,128], index: 3, kind: input, shape index: {}]   ;;  %s5779_s4 = inlined_call_operand.vmem [shape: bf16[2,16,16,128], index: 4, kind: output, shape index: {}]  }
   0x1   :  { %s4599_s17 = smov 0   ;;  %s4601_s18 = smov 0  }
   0x2   :  { %s4603_s19 = smov 0  }
   0x3 LB: > { %s23_s20 = sadd.s32 1, %s4560_s17  ;;  %s26_s21 = sadd.s32 1, %s4564_s18  ;;  %s4568_s19 = sphi %s4603_s19, %s14_s19   ;;  %s4564_s18 = sphi %s4601_s18, %s5844_s18   ;;  %s4560_s17 = sphi %s4599_s17, %s5843_s17   ;;  %s4556_s16 = sphi %s4597_s16, %s5842_s16   ;;  %s4552_s15 = sphi %s4595_s15, %s5841_s15  }
   0x4   : > { %p24_p0 = scmp.ge.s32.totalorder %s23_s20, 2  ;;  %p3414_p1 = scmp.ge.s32.totalorder %s4568_s19, 1 }
   0x5   : > { %p194_p2 = scmp.lt.s32.totalorder %s4568_s19, 5 }
   0x6   : > { %s5846_s20 = smov (%p24_p0, %s23_s20), 0  ;;  %s5848_s21 = smov (!%p24_p0, %s26_s21), %s4564_s18 }
   0x7   : > { %p195_p3 = pnand %p3414_p1, %p194_p2  ;;  %p28_p4 = scmp.ge.s32.totalorder %s5848_s21, 2 }
   0x9   : > { %s5850_s21 = smov (%p28_p4, %s5848_s21), 0  ;;  %198 = sbr.rel (%p195_p3) target bundleno = 404 (0x194), region = 36 }
   0xe   : > { %v4434_v0 = vld [vmem:[%s5776_s1 + $0x78] sm:$0xff]   ;;  %p235_p5 = scmp.lt.s32.totalorder %s4556_s16, 1  ;;  %v4436_v2 = vld [vmem:[%s5776_s1 + $0x70] sm:$0xff]   ;;  %v4438_v4 = vld [vmem:[%s5776_s1 + $0x68] sm:$0xff]   ;;  %s3842_s13 = smul.u32 96, %s4552_s15  ;;  %vm913_vm3 = vcmask 1042432  }
   0xf   : > { %v4435_v1 = vld [vmem:[%s5776_s1 + $0x38] sm:$0xff]   ;;  %4089 = vmatprep.subr.bf16.mxu0 %v4434_v0  ;;  %v4437_v3 = vld [vmem:[%s5776_s1 + $0x30] sm:$0xff]   ;;  %v4439_v5 = vld [vmem:[%s5776_s1 + $0x28] sm:$0xff]   ;;  %vm307_vm0 = vsmask.f32 3328  ;;  %vm914_vm4 = vcmask 1046532  }
  0x10   : > { %s5852_s16 = smov (!%p235_p5, %s4556_s16), 1  ;;  %4121 = vmatprep.subr.bf16.mxu1 %v4435_v1  ;;  %4090 = vmatpush3.bf16.msra.mxu0 %v4434_v0  ;;  %v4440_v6 = vld [vmem:[%s5776_s1 + $0x60] sm:$0xff]   ;;  %v4442_v8 = vld [vmem:[%s5776_s1 + $0x58] sm:$0xff]   ;;  %v4444_v10 = vld [vmem:[%s5776_s1 + $0x50] sm:$0xff]   ;;  %vm308_vm1 = vsmask.f32 7440 }
  0x11   : > { %4122 = vmatpush3.bf16.msra.mxu1 %v4435_v1  ;;  %4091 = vmatprep.subr.bf16.mxu0 %v4436_v2  ;;  %s4393_s8 = smul.u32 216, %s5852_s16  ;;  %v4441_v7 = vld [vmem:[%s5776_s1 + $0x20] sm:$0xff]   ;;  %v4443_v9 = vld [vmem:[%s5776_s1 + $0x18] sm:$0xff]   ;;  %v4445_v11 = vld [vmem:[%s5776_s1 + $0x10] sm:$0xff]   ;;  %s3418_s26 = sshll.u32 %s5852_s16, 5 }
  0x12   : > { %4123 = vmatprep.subr.bf16.mxu1 %v4437_v3  ;;  %v4446_v26 = vld [vmem:[%s5776_s1 + $0x48] sm:$0xff]   ;;  %v4448_v35 = vld [vmem:[%s5776_s1 + $0x40] sm:$0xff]   ;;  %vm4707_vm2 = vmor %vm307_vm0, %vm308_vm1 }
  0x13   : > { %s239_s23 = scalar_lea.vmem %s5775_s0, %s4393_s8  ;;  %v4447_v30 = vld [vmem:[%s5776_s1 + $0x8] sm:$0xff]   ;;  %v4449_v47 = vld [vmem:[%s5776_s1] sm:$0xff]   ;;  %v4452_v55 = vld [vmem:[%s5776_s1 + $0xb8] sm:$0xff]  }
  0x14   : > { %4092 = vmatpush3.bf16.msra.mxu0 %v4436_v2  ;;  %s4664_s28 = scalar_lea.vmem %s239_s23, %s3842_s13  ;;  %v4453_v61 = vld [vmem:[%s5776_s1 + $0xf8] sm:$0xff]   ;;  %vm4880_vm5 = vmor %vm913_vm3, %vm914_vm4 }
  0x15   : > { %4124 = vmatpush3.bf16.msra.mxu1 %v4437_v3  ;;  %4093 = vmatprep.subr.bf16.mxu0 %v4438_v4  ;;  %v267_v12 = vld [vmem:[%s4664_s28] sm:$0xf]  ;;  %v4674_v13 = vld [vmem:[%s4664_s28 + $0x4] sm:$0xf]  ;;  %v4677_v14 = vld [vmem:[%s4664_s28 + $0x8] sm:$0x1] }
  0x16   : > { %4125 = vmatprep.subr.bf16.mxu1 %v4439_v5  ;;  %v311_v15 = vshrl.u32 %v267_v12, 16  ;;  %v314_v16 = vshll.u32 %v267_v12, 16  ;;  %v320_v17 = vshll.u32 %v4674_v13, 16  ;;  %v324_v18 = vshrl.u32 %v4674_v13, 16  ;;  %v4683_v20 = vld [vmem:[%s4664_s28 + $0xc] sm:$0xf] }
  0x17   : > { %v330_v19 = vshll.u32 %v4677_v14, 16  ;;  %v3459_v23 = vcombine.low %v267_v12, %v4674_v13  ;;  %v4687_v24 = vld [vmem:[%s4664_s28 + $0x10] sm:$0xf]  ;;  %v4690_v25 = vld [vmem:[%s4664_s28 + $0x14] sm:$0x1]  ;;  %v335_v29 = vshrl.u32 %v4683_v20, 16 }
  0x18   : > { %4094 = vmatpush3.bf16.msra.mxu0 %v4438_v4  ;;  %v313_v21 = vrot.slane %v311_v15, 4  ;;  %v316_v22 = vrot.slane %v314_v16, 5  ;;  %v322_v27 = vrot.slane %v320_v17, 5  ;;  %v326_v28 = vrot.slane %v324_v18, 4  ;;  %v4727_v56 = vld [vmem:[%s4664_s28 + $0x18] sm:$0xf] }
  0x19   : > { %4126 = vmatpush3.bf16.msra.mxu1 %v4439_v5  ;;  %4095 = vmatprep.subr.bf16.mxu0 %v4440_v6  ;;  %v338_v32 = vshll.u32 %v4683_v20, 16  ;;  %v344_v33 = vshll.u32 %v4687_v24, 16  ;;  %v348_v34 = vshrl.u32 %v4687_v24, 16  ;;  %v332_v38 = vrot.slane %v330_v19, 5  ;;  %v4730_v57 = vld [vmem:[%s4664_s28 + $0x1c] sm:$0xf] }
  0x1a   : > { %4127 = vmatprep.subr.bf16.mxu1 %v4441_v7  ;;  %v317_v31 = vor.u32 %v316_v22, %v313_v21  ;;  %4137 = vmatprep.mubr.bf16.mxu1 %v3459_v23  ;;  %v327_v37 = vor.u32 %v326_v28, %v322_v27  ;;  %v337_v39 = vrot.slane %v335_v29, 4  ;;  %v354_v40 = vshll.u32 %v4690_v25, 16  ;;  %v4736_v62 = vld [vmem:[%s4664_s28 + $0x20] sm:$0x1]  ;;  %v4744_v4 = vld [vmem:[%s4664_s28 + $0x24] sm:$0xf] }
  0x1b   : > { %v340_v42 = vrot.slane %v338_v32, 5  ;;  %v346_v43 = vrot.slane %v344_v33, 5  ;;  %v350_v44 = vrot.slane %v348_v34, 4  ;;  %v921_v46 = vrot.slane %v4677_v14, 5  ;;  %v4454_v12 = vld [vmem:[%s5776_s1 + $0xb0] sm:$0xff]  }
  0x1c   : > { %4096 = vmatpush3.bf16.msra.mxu0 %v4440_v6  ;;  %v318_v41 = vrot.slane %v317_v31, 4  ;;  %v328_v45 = vrot.slane %v327_v37, 4  ;;  %v356_v51 = vrot.slane %v354_v40, 5  ;;  %v928_v53 = vrot.slane %v4690_v25, 5  ;;  %v4455_v28 = vld [vmem:[%s5776_s1 + $0xf0] sm:$0xff]  }
  0x1d   : > { %4128 = vmatpush3.bf16.msra.mxu1 %v4441_v7  ;;  %4097 = vmatprep.subr.bf16.mxu0 %v4442_v8  ;;  %v341_v49 = vor.u32 %v340_v42, %v337_v39  ;;  %v351_v50 = vor.u32 %v350_v44, %v346_v43  ;;  %v3460_v54 = vcombine.low %v4683_v20, %v4687_v24  ;;  %v359_v63 = vshrl.u32 %v4727_v56, 16  ;;  %v4773_v40 = vld [vmem:[%s4664_s28 + $0x30] sm:$0xf]  ;;  %v4458_v44 = vld [vmem:[%s5776_s1 + $0xa8] sm:$0xff]  }
  0x1e   : > { %4129 = vmatprep.subr.bf16.mxu1 %v4443_v9  ;;  %v323_v48 = vsel %vm4707_vm2, %v318_v41, %v322_v27  ;;  %v333_v52 = vsel %vm4707_vm2, %v328_v45, %v332_v38  ;;  %v362_v0 = vshll.u32 %v4727_v56, 16  ;;  %v368_v1 = vshll.u32 %v4730_v57, 16  ;;  %v4783_v45 = vld [vmem:[%s4664_s28 + $0x34] sm:$0xf] }
  0x1f   : > { %v3443_v58 = vcombine.low %v323_v48, %v333_v52  ;;  %v342_v59 = vrot.slane %v341_v49, 4  ;;  %v352_v60 = vrot.slane %v351_v50, 4  ;;  %v372_v2 = vshrl.u32 %v4730_v57, 16 }
  0x20   : > { %4098 = vmatpush3.bf16.msra.mxu0 %v4442_v8  ;;  %v378_v3 = vshll.u32 %v4736_v62, 16  ;;  %v361_v7 = vrot.slane %v359_v63, 4  ;;  %v4751_v8 = vld [vmem:[%s4664_s28 + $0x28] sm:$0xf]  ;;  %v364_v15 = vrot.slane %v362_v0, 5  ;;  %v370_v16 = vrot.slane %v368_v1, 5 }
  0x21   : > { %4130 = vmatpush3.bf16.msra.mxu1 %v4443_v9  ;;  %4099 = vmatprep.subr.bf16.mxu0 %v4444_v10  ;;  %v347_v5 = vsel %vm4707_vm2, %v342_v59, %v346_v43  ;;  %v357_v6 = vsel %vm4707_vm2, %v352_v60, %v356_v51  ;;  %v4754_v9 = vld [vmem:[%s4664_s28 + $0x2c] sm:$0x1]  ;;  %v374_v17 = vrot.slane %v372_v2, 4  ;;  %v383_v19 = vshrl.u32 %v4744_v4, 16  ;;  %v4460_v0 = vld [vmem:[%s5776_s1 + $0xa0] sm:$0xff]  }
  0x22   : > { %4131 = vmatprep.subr.bf16.mxu1 %v4445_v11  ;;  %4105 = vmatprep.mubr.bf16.mxu0 %v3443_v58  ;;  %v380_v18 = vrot.slane %v378_v3, 5  ;;  %v386_v20 = vshll.u32 %v4744_v4, 16  ;;  %v392_v21 = vshll.u32 %v4751_v8, 16  ;;  %v365_v22 = vor.u32 %v364_v15, %v361_v7  ;;  %v4459_v51 = vld [vmem:[%s5776_s1 + $0xe8] sm:$0xff]  }
  0x23   : > { %v375_v23 = vor.u32 %v374_v17, %v370_v16  ;;  %v402_v27 = vshll.u32 %v4754_v9, 16  ;;  %v3461_v29 = vcombine.low %v4727_v56, %v4730_v57  ;;  %v3462_v39 = vcombine.low %v4744_v4, %v4751_v8  ;;  %v4810_v4 = vld [vmem:[%s4664_s28 + $0x44] sm:$0x1] }
  0x24   : > { %4100 = vmatpush3.bf16.msra.mxu0 %v4444_v10  ;;  %v918_v10 = vrot.slane %v4674_v13, 5  ;;  %v388_v31 = vrot.slane %v386_v20, 5  ;;  %v394_v32 = vrot.slane %v392_v21, 5  ;;  %v366_v33 = vrot.slane %v365_v22, 4 }
  0x25   : > { %4132 = vmatpush3.bf16.msra.mxu1 %v4445_v11  ;;  %4101 = vmatprep.subr.bf16.mxu0 %v4446_v26  ;;  %v3444_v11 = vcombine.low %v347_v5, %v357_v6  ;;  %v376_v34 = vrot.slane %v375_v23, 4  ;;  %v404_v37 = vrot.slane %v402_v27, 5  ;;  %v407_v48 = vshrl.u32 %v4773_v40, 16  ;;  %v4461_v6 = vld [vmem:[%s5776_s1 + $0xe0] sm:$0xff]  }
  0x26   : > { %4133 = vmatprep.subr.bf16.mxu1 %v4447_v30  ;;  %v371_v41 = vsel %vm4707_vm2, %v366_v33, %v370_v16  ;;  %v410_v52 = vshll.u32 %v4773_v40, 16  ;;  %v420_v59 = vshrl.u32 %v4783_v45, 16  ;;  %v3463_v3 = vcombine.low %v4773_v40, %v4783_v45 }
  0x27   : > { %v381_v42 = vsel %vm4707_vm2, %v376_v34, %v380_v18  ;;  %v409_v58 = vrot.slane %v407_v48, 4  ;;  %v450_v22 = vshll.u32 %v4810_v4, 16  ;;  %v946_v25 = vrot.slane %v4783_v45, 5 }
  0x28   : > { %4102 = vmatpush3.bf16.msra.mxu0 %v4446_v26  ;;  %v396_v26 = vshrl.u32 %v4751_v8, 16  ;;  %v3445_v49 = vcombine.low %v371_v41, %v381_v42  ;;  %v412_v1 = vrot.slane %v410_v52, 5  ;;  %v422_v7 = vrot.slane %v420_v59, 4  ;;  %v4839_v41 = vld [vmem:[%s4664_s28 + $0x50] sm:$0x1] }
  0x29   : > { %4134 = vmatpush3.bf16.msra.mxu1 %v4447_v30  ;;  %4103 = vmatprep.subr.bf16.mxu0 %v4448_v35  ;;  %v385_v30 = vrot.slane %v383_v19, 4 }
  0x2a   : > { %4135 = vmatprep.subr.bf16.mxu1 %v4449_v47  ;;  %v413_v16 = vor.u32 %v412_v1, %v409_v58 }
  0x2b   : > { %v389_v38 = vor.u32 %v388_v31, %v385_v30  ;;  %v452_v31 = vrot.slane %v450_v22, 5 }
  0x2c   : > { %4104 = vmatpush3.bf16.msra.mxu0 %v4448_v35  ;;  %v398_v35 = vrot.slane %v396_v26, 4  ;;  %v414_v23 = vrot.slane %v413_v16, 4 }
  0x2d   : > { %4136 = vmatpush3.bf16.msra.mxu1 %v4449_v47  ;;  %4153 = vmatprep.subr.bf16.mxu0 %v4452_v55  ;;  %v4786_v47 = vld [vmem:[%s4664_s28 + $0x38] sm:$0x1]  ;;  %v390_v50 = vrot.slane %v389_v38, 4  ;;  %v4834_v38 = vld [vmem:[%s4664_s28 + $0x4c] sm:$0xf] }
  0x2e   : > { %4185 = vmatprep.subr.bf16.mxu1 %v4453_v61  ;;  %v399_v43 = vor.u32 %v398_v35, %v394_v32  ;;  %v426_v60 = vshll.u32 %v4786_v47, 16  ;;  %v468_v52 = vshrl.u32 %v4834_v38, 16 }
  0x2f   : > { %4106 = vmatmul.mubr.bf16.vlgmr.msra.gmra.mxu0 %v3444_v11  ;;  %v395_v63 = vsel %vm4707_vm2, %v390_v50, %v394_v32  ;;  %v4465_v32 = vld [vmem:[%s5776_s1 + $0xd8] sm:$0xff]   ;;  %v4466_v50 = vld [vmem:[%s5776_s1 + $0x90] sm:$0xff]  }
  0x30   : > { %4138 = vmatmul.mubr.bf16.vlgmr.msra.gmra.mxu1 %v3460_v54  ;;  %4154 = vmatpush3.bf16.msra.mxu0 %v4452_v55  ;;  %v416_v54 = vshll.u32 %v4783_v45, 16  ;;  %v4795_v55 = vld [vmem:[%s4664_s28 + $0x3c] sm:$0xf]  ;;  %v400_v56 = vrot.slane %v399_v43, 4  ;;  %v428_v11 = vrot.slane %v426_v60, 5  ;;  %v474_v60 = vshll.u32 %v4839_v41, 16 }
  0x31   : > { %4186 = vmatpush3.bf16.msra.mxu1 %v4453_v61  ;;  %4155 = vmatprep.subr.bf16.mxu0 %v4454_v12  ;;  %v4800_v61 = vld [vmem:[%s4664_s28 + $0x40] sm:$0xf]  ;;  %v434_v17 = vshll.u32 %v4795_v55, 16 }
  0x32   : > { %4187 = vmatprep.subr.bf16.mxu1 %v4455_v28  ;;  %4141 = vmatprep.mubr.bf16.mxu1 %v3461_v29  ;;  %v418_v2 = vrot.slane %v416_v54, 5  ;;  %v405_v5 = vsel %vm4707_vm2, %v400_v56, %v404_v37  ;;  %v440_v18 = vshll.u32 %v4800_v61, 16  ;;  %v444_v21 = vshrl.u32 %v4800_v61, 16  ;;  %v279_v37 = vld [vmem:[%s4664_s28 + $0x48] sm:$0xf]  ;;  %v4467_v56 = vld [vmem:[%s5776_s1 + $0xd0] sm:$0xff]  }
  0x33   : > { %4109 = vmatprep.mubr.bf16.mxu0 %v3445_v49  ;;  %v3446_v15 = vcombine.low %v395_v63, %v405_v5  ;;  %v436_v26 = vrot.slane %v434_v17, 5  ;;  %v3464_v35 = vcombine.low %v4795_v55, %v4800_v61  ;;  %v455_v42 = vshrl.u32 %v279_v37, 16  ;;  %v4850_v54 = vld [vmem:[%s4664_s28 + $0x58] sm:$0xf]  ;;  %v4857_v63 = vld [vmem:[%s4664_s28 + $0x5c] sm:$0x1] }
  0x34   : > { %4156 = vmatpush3.bf16.msra.mxu0 %v4454_v12  ;;  %v431_v12 = vshrl.u32 %v4795_v55, 16  ;;  %v423_v19 = vor.u32 %v422_v7, %v418_v2  ;;  %v442_v27 = vrot.slane %v440_v18, 5  ;;  %v446_v30 = vrot.slane %v444_v21, 4  ;;  %v4470_v18 = vld [vmem:[%s5776_s1 + $0x88] sm:$0xff]  }
  0x35   : > { %4188 = vmatpush3.bf16.msra.mxu1 %v4455_v28  ;;  %4157 = vmatprep.subr.bf16.mxu0 %v4458_v44  ;;  %v4464_v28 = vld [vmem:[%s5776_s1 + $0x98] sm:$0xff]   ;;  %v419_v33 = vsel %vm4707_vm2, %v414_v23, %v418_v2  ;;  %v458_v43 = vshll.u32 %v279_v37, 16  ;;  %v457_v58 = vrot.slane %v455_v42, 4  ;;  %v476_v7 = vrot.slane %v474_v60, 5 }
  0x36   : > { %4189 = vmatprep.subr.bf16.mxu1 %v4459_v51  ;;  %v433_v20 = vrot.slane %v431_v12, 4  ;;  %v424_v29 = vrot.slane %v423_v19, 4  ;;  %v447_v40 = vor.u32 %v446_v30, %v442_v27  ;;  %v488_v17 = vshll.u32 %v4850_v54, 16 }
  0x37   : > { %4110 = vmatmul.mubr.bf16.gmra.mxu0 %v3446_v15  ;;  %v460_v59 = vrot.slane %v458_v43, 5  ;;  %v492_v21 = vshrl.u32 %v4850_v54, 16  ;;  %v498_v22 = vshll.u32 %v4857_v63, 16  ;;  %v953_v45 = vrot.slane %v4800_v61, 5 }
  0x38   : > { %4142 = vmatmul.mubr.bf16.gmra.mxu1 %v3462_v39  ;;  %4158 = vmatpush3.bf16.msra.mxu0 %v4458_v44  ;;  %v437_v34 = vor.u32 %v436_v26, %v433_v20  ;;  %v429_v39 = vsel %vm4707_vm2, %v424_v29, %v428_v11  ;;  %v4842_v44 = vld [vmem:[%s4664_s28 + $0x54] sm:$0xf]  ;;  %v448_v55 = vrot.slane %v447_v40, 4  ;;  %v4471_v29 = vld [vmem:[%s5776_s1 + $0xc8] sm:$0xff]   ;;  %v4472_v40 = vld [vmem:[%s5776_s1 + $0x80] sm:$0xff]  }
  0x39   : > { %4190 = vmatpush3.bf16.msra.mxu1 %v4459_v51  ;;  %4159 = vmatprep.subr.bf16.mxu0 %v4460_v0  ;;  %v3447_v48 = vcombine.low %v419_v33, %v429_v39  ;;  %v464_v51 = vshll.u32 %v4834_v38, 16  ;;  %v479_v11 = vshrl.u32 %v4842_v44, 16  ;;  %v482_v16 = vshll.u32 %v4842_v44, 16 }
  0x3a   : > { %4191 = vmatprep.subr.bf16.mxu1 %v4461_v6  ;;  %4145 = vmatprep.mubr.bf16.mxu1 %v3463_v3  ;;  %v438_v49 = vrot.slane %v437_v34, 4  ;;  %v470_v3 = vrot.slane %v468_v52, 4  ;;  %v453_v5 = vsel %vm4707_vm2, %v448_v55, %v452_v31  ;;  %v494_v30 = vrot.slane %v492_v21, 4  ;;  %v889_v31 = vld [vmem:[%s4664_s28] sm:$0xe]  ;;  %v4474_v52 = vld [vmem:[%s4664_s28 + $0xc] sm:$0xff]  }
  0x3b   : > { %4113 = vmatprep.mubr.bf16.mxu0 %v3447_v48  ;;  %v466_v2 = vrot.slane %v464_v51, 5  ;;  %v481_v20 = vrot.slane %v479_v11, 4  ;;  %v484_v26 = vrot.slane %v482_v16, 5  ;;  %v920_v33 = vrot.slane %v918_v10, 4  ;;  %v890_v55 = vld [vmem:[%s4664_s28 + $0xc] sm:$0xe] }
  0x3c   : > { %4160 = vmatpush3.bf16.msra.mxu0 %v4460_v0  ;;  %v443_v1 = vsel %vm4707_vm2, %v438_v49, %v442_v27  ;;  %v3465_v0 = vcombine.low %v279_v37, %v4834_v38  ;;  %v490_v27 = vrot.slane %v488_v17, 5  ;;  %v925_v34 = vrot.slane %v4687_v24, 5  ;;  %v4473_v24 = vld [vmem:[%s5776_s1 + $0xc0] sm:$0xff]  }
  0x3d   : > { %4192 = vmatpush3.bf16.msra.mxu1 %v4461_v6  ;;  %4161 = vmatprep.subr.bf16.mxu0 %v4464_v28  ;;  %v461_v6 = vor.u32 %v460_v59, %v457_v58  ;;  %v3448_v12 = vcombine.low %v443_v1, %v453_v5  ;;  %v471_v15 = vor.u32 %v470_v3, %v466_v2  ;;  %v3475_v42 = vrot.slane %v889_v31, 9  ;;  %v4477_v3 = vld [vmem:[%s5776_s1 + $0x178] sm:$0xff]   ;;  %v4485_v31 = vld [vmem:[%s5776_s1 + $0x160] sm:$0xff]  }
  0x3e   : > { %4193 = vmatprep.subr.bf16.mxu1 %v4465_v32  ;;  %v485_v37 = vor.u32 %v484_v26, %v481_v20  ;;  %v3466_v39 = vcombine.low %v4842_v44, %v4850_v54  ;;  %v495_v48 = vor.u32 %v494_v30, %v490_v27  ;;  %v500_v49 = vrot.slane %v498_v22, 5  ;;  %v893_v22 = vld [vmem:[%s4664_s28 + $0x30] sm:$0xe]  ;;  %v4482_v30 = vld [vmem:[%s5776_s1 + $0x128] sm:$0xff]  }
  0x3f   : > { %v462_v19 = vrot.slane %v461_v6, 4  ;;  %4114 = vmatmul.mubr.bf16.gmra.mxu0 %v3448_v12  ;;  %v472_v23 = vrot.slane %v471_v15, 4  ;;  %v927_v58 = vrot.slane %v925_v34, 4  ;;  %v3476_v13 = vrot.slane %v890_v55, 9  ;;  %v4475_v6 = vld [vmem:[%s4664_s28 + $0x18] sm:$0xff]   ;;  %v4480_v15 = vld [vmem:[%s4664_s28 + $0x24] sm:$0xff]  }
  0x40   : > { %4146 = vmatmul.mubr.bf16.gmra.mxu1 %v3464_v35  ;;  %4162 = vmatpush3.bf16.msra.mxu0 %v4464_v28  ;;  %v486_v51 = vrot.slane %v485_v37, 4  ;;  %v496_v44 = vrot.slane %v495_v48, 4  ;;  %v932_v1 = vrot.slane %v4730_v57, 5  ;;  %v935_v57 = vrot.slane %v4736_v62, 5  ;;  %v892_v62 = vld [vmem:[%s4664_s28 + $0x24] sm:$0xe] }
  0x41   : > { %4194 = vmatpush3.bf16.msra.mxu1 %v4465_v32  ;;  %4163 = vmatprep.subr.bf16.mxu0 %v4466_v50  ;;  %v467_v28 = vsel %vm4707_vm2, %v462_v19, %v466_v2  ;;  %v477_v35 = vsel %vm4707_vm2, %v472_v23, %v476_v7  ;;  %v891_v2 = vld [vmem:[%s4664_s28 + $0x18] sm:$0xe]  ;;  %v4479_v7 = vld [vmem:[%s5776_s1 + $0x170] sm:$0xff]   ;;  %v926_v11 = vsel %vm4880_vm5, %v3476_v13, %v925_v34  ;;  %v939_v16 = vrot.slane %v4751_v8, 5 }
  0x42   : > { %4195 = vmatprep.subr.bf16.mxu1 %v4467_v56  ;;  %4149 = vmatprep.mubr.bf16.mxu1 %v3465_v0  ;;  %v3449_v43 = vcombine.low %v467_v28, %v477_v35  ;;  %v491_v59 = vsel %vm4707_vm2, %v486_v51, %v490_v27  ;;  %v501_v60 = vsel %vm4707_vm2, %v496_v44, %v500_v49  ;;  %v3477_v0 = vrot.slane %v891_v2, 9  ;;  %v4481_v26 = vld [vmem:[%s4664_s28 + $0x30] sm:$0xff]   ;;  %v4483_v27 = vld [vmem:[%s5776_s1 + $0x168] sm:$0xff]  }
  0x43   : > { %v934_v5 = vrot.slane %v932_v1, 4  ;;  %v929_v12 = vsel %vm4880_vm5, %v927_v58, %v928_v53  ;;  %v4478_v53 = vld [vmem:[%s5776_s1 + $0x130] sm:$0xff]   ;;  %v942_v8 = vrot.slane %v4754_v9, 5  ;;  %v3478_v20 = vrot.slane %v892_v62, 9 }
  0x44   : > { %4164 = vmatpush3.bf16.msra.mxu0 %v4466_v50  ;;  %4117 = vmatprep.mubr.bf16.mxu0 %v3449_v43  ;;  %v919_v50 = vsel %vm4880_vm5, %v3475_v42, %v918_v10  ;;  %v3450_v10 = vcombine.low %v491_v59, %v501_v60  ;;  %v933_v17 = vsel %vm4880_vm5, %v3477_v0, %v932_v1  ;;  %v941_v21 = vrot.slane %v939_v16, 4  ;;  %v896_v44 = vld [vmem:[%s4664_s28 + $0x54] sm:$0xe]  ;;  %v4487_v60 = vld [vmem:[%s4664_s28 + $0x48] sm:$0xff]  }
  0x45   : > { %4196 = vmatpush3.bf16.msra.mxu1 %v4467_v56  ;;  %4165 = vmatprep.subr.bf16.mxu0 %v4470_v18  ;;  %v922_v56 = vsel %vm4880_vm5, %v920_v33, %v921_v46  ;;  %v4476_v46 = vld [vmem:[%s5776_s1 + $0x138] sm:$0xff]   ;;  %v3500_v19 = vcombine.low %v926_v11, %v929_v12  ;;  %v948_v28 = vrot.slane %v946_v25, 4  ;;  %v949_v9 = vrot.slane %v4786_v47, 5  ;;  %v3565_v0 = vld [vmem:[%s4664_s28 + $0xc] sm:$0xf] }
  0x46   : > { %4197 = vmatprep.subr.bf16.mxu1 %v4471_v29  ;;  %v3499_v14 = vcombine.low %v919_v50, %v922_v56  ;;  %v894_v33 = vld [vmem:[%s4664_s28 + $0x3c] sm:$0xe]  ;;  %v940_v61 = vsel %vm4880_vm5, %v3478_v20, %v939_v16  ;;  %v943_v34 = vsel %vm4880_vm5, %v941_v21, %v942_v8  ;;  %v960_v35 = vrot.slane %v4834_v38, 5  ;;  %v3567_v11 = vld [vmem:[%s4664_s28 + $0x14] sm:$0x1]  ;;  %v4495_v16 = vld [vmem:[%s5776_s1 + $0x148] sm:$0xff]  }
  0x47   : > { %4118 = vmatmul.mubr.bf16.gmra.mxu0 %v3450_v10  ;;  %v4486_v47 = vld [vmem:[%s4664_s28 + $0x3c] sm:$0xff]   ;;  %v955_v37 = vrot.slane %v953_v45, 4  ;;  %v950_v42 = vsel %vm4880_vm5, %v948_v28, %v949_v9  ;;  %v3480_v43 = vrot.slane %v894_v33, 9  ;;  %v963_v48 = vrot.slane %v4839_v41, 5  ;;  %v4494_v9 = vld [vmem:[%s5776_s1 + $0x108] sm:$0xff]  }
  0x48   : > { %4150 = vmatmul.mubr.bf16.gmra.mxu1 %v3466_v39  ;;  %4166 = vmatpush3.bf16.msra.mxu0 %v4470_v18  ;;  %v936_v18 = vsel %vm4880_vm5, %v934_v5, %v935_v57  ;;  %v956_v39 = vrot.slane %v4810_v4, 5  ;;  %v3502_v49 = vcombine.low %v940_v61, %v943_v34  ;;  %v962_v38 = vrot.slane %v960_v35, 4  ;;  %v4484_v4 = vld [vmem:[%s5776_s1 + $0x120] sm:$0xff]   ;;  %v4490_v5 = vld [vmem:[%s5776_s1 + $0x110] sm:$0xff]   ;;  %v3569_v28 = vld [vmem:[%s4664_s28 + $0x1c] sm:$0xf] }
  0x49   : > { %4198 = vmatpush3.bf16.msra.mxu1 %v4471_v29  ;;  %4167 = vmatprep.subr.bf16.mxu0 %v4472_v40  ;;  %v3501_v23 = vcombine.low %v933_v17, %v936_v18  ;;  %v3479_v29 = vrot.slane %v893_v22, 9  ;;  %v967_v51 = vrot.slane %v4850_v54, 5  ;;  %v970_v41 = vrot.slane %v4857_v63, 5  ;;  %v4489_v54 = vld [vmem:[%s5776_s1 + $0x158] sm:$0xff]   ;;  %v3570_v33 = vld [vmem:[%s4664_s28 + $0x20] sm:$0x1] }
  0x4a   : > { %4199 = vmatprep.subr.bf16.mxu1 %v4473_v24  ;;  %4201 = vmatprep.mubr.bf16.mxu1 %v4474_v52  ;;  %v3482_v56 = vrot.slane %v896_v44, 9  ;;  %v954_v58 = vsel %vm4880_vm5, %v3480_v43, %v953_v45  ;;  %v957_v59 = vsel %vm4880_vm5, %v955_v37, %v956_v39  ;;  %v964_v13 = vsel %vm4880_vm5, %v962_v38, %v963_v48  ;;  %v4488_v63 = vld [vmem:[%s5776_s1 + $0x118] sm:$0xff]  }
  0x4b   : > { %4169 = vmatprep.mubr.bf16.mxu0 %v3499_v14  ;;  %v969_v50 = vrot.slane %v967_v51, 4  ;;  %v3504_v2 = vcombine.low %v954_v58, %v957_v59  ;;  %v1453_v12 = vshrl.u32 %v3565_v0, 16  ;;  %v1472_v18 = vshll.u32 %v3567_v11, 16 }
  0x4c   : > { %4168 = vmatpush3.bf16.msra.mxu0 %v4472_v40  ;;  %v947_v40 = vsel %vm4880_vm5, %v3479_v29, %v946_v25  ;;  %v4992_v10 = vsel %vm4880_vm5, %v3482_v56, %v967_v51  ;;  %v3621_v25 = vld [vmem:[%s4664_s28 + $0xc] sm:$0xe]  ;;  %v1891_v22 = vrot.slane %v3567_v11, 5  ;;  %v1486_v39 = vshll.u32 %v3569_v28, 16  ;;  %v3573_v11 = vld [vmem:[%s4664_s28 + $0x2c] sm:$0x1] }
  0x4d   : > { %4200 = vmatpush3.bf16.msra.mxu1 %v4473_v24  ;;  %4217 = vmatprep.subr.bf16.mxu0 %v4476_v46  ;;  %v895_v24 = vld [vmem:[%s4664_s28 + $0x48] sm:$0xe]  ;;  %v3503_v55 = vcombine.low %v947_v40, %v950_v42  ;;  %v4996_v14 = vsel %vm4880_vm5, %v969_v50, %v970_v41  ;;  %v1455_v8 = vrot.slane %v1453_v12, 4  ;;  %v3629_v21 = vrot.slane %v3621_v25, 9  ;;  %v4497_v42 = vld [vmem:[%s5776_s1 + $0x140] sm:$0xff]  }
  0x4e   : > { %4249 = vmatprep.subr.bf16.mxu1 %v4477_v3  ;;  %v3481_v52 = vrot.slane %v895_v24, 9  ;;  %v1490_v40 = vshrl.u32 %v3569_v28, 16  ;;  %v1488_v51 = vrot.slane %v1486_v39, 5  ;;  %v1895_v41 = vrot.slane %v3569_v28, 5 }
  0x4f   : > { %4170 = vmatmul.mubr.bf16.vlgmr.msra.gmra.mxu0 %v3500_v19  ;;  %v1898_v59 = vrot.slane %v3570_v33, 5 }
  0x50   : > { %4202 = vmatmul.mubr.bf16.vlgmr.msra.gmra.mxu1 %v4475_v6  ;;  %4218 = vmatpush3.bf16.msra.mxu0 %v4476_v46  ;;  %v961_v1 = vsel %vm4880_vm5, %v3481_v52, %v960_v35  ;;  %v4491_v46 = vld [vmem:[%s5776_s1 + $0x150] sm:$0xff]   ;;  %v3506_v6 = vcombine.low %v4992_v10, %v4996_v14  ;;  %v1496_v52 = vshll.u32 %v3570_v33, 16  ;;  %v4498_v10 = vld [vmem:[%s5776_s1 + $0x1b8] sm:$0xff]  }
  0x51   : > { %4250 = vmatpush3.bf16.msra.mxu1 %v4477_v3  ;;  %4205 = vmatprep.mubr.bf16.mxu1 %v4480_v15  ;;  %v4492_v3 = vld [vmem:[%s4664_s28 + $0x54] sm:$0xff]   ;;  %v3505_v57 = vcombine.low %v961_v1, %v964_v13  ;;  %v1456_v15 = vshll.u32 %v3565_v0, 16  ;;  %v3571_v0 = vld [vmem:[%s4664_s28 + $0x24] sm:$0xf]  ;;  %v3624_v33 = vld [vmem:[%s4664_s28 + $0x30] sm:$0xe] }
  0x52   : > { %4251 = vmatprep.subr.bf16.mxu1 %v4479_v7  ;;  %4219 = vmatprep.subr.bf16.mxu0 %v4478_v53  ;;  %v1498_v58 = vrot.slane %v1496_v52, 5  ;;  %v1501_v12 = vshrl.u32 %v3571_v0, 16 }
  0x53   : > { %4173 = vmatprep.mubr.bf16.mxu0 %v3501_v23  ;;  %v1458_v20 = vrot.slane %v1456_v15, 5  ;;  %v3568_v23 = vld [vmem:[%s4664_s28 + $0x18] sm:$0xf]  ;;  %v1504_v15 = vshll.u32 %v3571_v0, 16 }
  0x54   : > { %4220 = vmatpush3.bf16.msra.mxu0 %v4478_v53  ;;  %v4493_v53 = vld [vmem:[%s4664_s28 + $0x60] sm:$0xff]   ;;  %v1477_v61 = vshrl.u32 %v3568_v23, 16  ;;  %v1480_v34 = vshll.u32 %v3568_v23, 16 }
  0x55   : > { %4252 = vmatpush3.bf16.msra.mxu1 %v4479_v7  ;;  %4221 = vmatprep.subr.bf16.mxu0 %v4482_v30  ;;  %v3566_v7 = vld [vmem:[%s4664_s28 + $0x10] sm:$0xf] }
  0x56   : > { %4253 = vmatprep.subr.bf16.mxu1 %v4483_v27  ;;  %v1462_v62 = vshll.u32 %v3566_v7, 16  ;;  %v1466_v17 = vshrl.u32 %v3566_v7, 16  ;;  %v1888_v19 = vrot.slane %v3566_v7, 5  ;;  %v1482_v24 = vrot.slane %v1480_v34, 5 }
  0x57   : > { %4174 = vmatmul.mubr.bf16.gmra.mxu0 %v3502_v49  ;;  %v1479_v49 = vrot.slane %v1477_v61, 4 }
  0x58   : > { %4206 = vmatmul.mubr.bf16.gmra.mxu1 %v4481_v26  ;;  %4222 = vmatpush3.bf16.msra.mxu0 %v4482_v30  ;;  %v1464_v26 = vrot.slane %v1462_v62, 5  ;;  %v1468_v45 = vrot.slane %v1466_v17, 4  ;;  %v1890_v29 = vrot.slane %v1888_v19, 4  ;;  %v1459_v30 = vor.u32 %v1458_v20, %v1455_v8 }
  0x59   : > { %4254 = vmatpush3.bf16.msra.mxu1 %v4483_v27  ;;  %4209 = vmatprep.mubr.bf16.mxu1 %v4486_v47  ;;  %v1474_v27 = vrot.slane %v1472_v18, 5  ;;  %v3622_v47 = vld [vmem:[%s4664_s28 + $0x18] sm:$0xe]  ;;  %v1483_v44 = vor.u32 %v1482_v24, %v1479_v49  ;;  %v3574_v18 = vld [vmem:[%s4664_s28 + $0x30] sm:$0xf]  ;;  %v1506_v8 = vrot.slane %v1504_v15, 5 }
  0x5a   : > { %4255 = vmatprep.subr.bf16.mxu1 %v4485_v31  ;;  %4223 = vmatprep.subr.bf16.mxu0 %v4484_v4  ;;  %v1469_v35 = vor.u32 %v1468_v45, %v1464_v26  ;;  %v1892_v37 = vsel %vm4880_vm5, %v1890_v29, %v1891_v22  ;;  %v1460_v43 = vrot.slane %v1459_v30, 4  ;;  %v3630_v50 = vrot.slane %v3622_v47, 9  ;;  %v4500_v29 = vld [vmem:[%s5776_s1 + $0x1b0] sm:$0xff]  }
  0x5b   : > { %4177 = vmatprep.mubr.bf16.mxu0 %v3503_v55  ;;  %v1520_v20 = vshll.u32 %v3573_v11, 16  ;;  %v1905_v30 = vrot.slane %v3573_v11, 5 }
  0x5c   : > { %4224 = vmatpush3.bf16.msra.mxu0 %v4484_v4  ;;  %v1470_v38 = vrot.slane %v1469_v35, 4  ;;  %v1492_v4 = vrot.slane %v1490_v40, 4  ;;  %v1465_v55 = vsel %vm4707_vm2, %v1460_v43, %v1464_v26  ;;  %v1896_v1 = vsel %vm4880_vm5, %v3630_v50, %v1895_v41 }
  0x5d   : > { %4256 = vmatpush3.bf16.msra.mxu1 %v4485_v31  ;;  %4225 = vmatprep.subr.bf16.mxu0 %v4488_v63  ;;  %v1889_v31 = vsel %vm4880_vm5, %v3629_v21, %v1888_v19  ;;  %v4501_v19 = vld [vmem:[%s5776_s1 + $0x1f0] sm:$0xff]   ;;  %v1528_v35 = vshll.u32 %v3574_v18, 16 }
  0x5e   : > { %4257 = vmatprep.subr.bf16.mxu1 %v4489_v54  ;;  %v3653_v48 = vcombine.low %v1889_v31, %v1892_v37  ;;  %v1493_v56 = vor.u32 %v1492_v4, %v1488_v51  ;;  %v3575_v21 = vld [vmem:[%s4664_s28 + $0x34] sm:$0xf]  ;;  %v1525_v31 = vshrl.u32 %v3574_v18, 16 }
  0x5f   : > { %4178 = vmatmul.mubr.bf16.gmra.mxu0 %v3504_v2  ;;  %v1534_v40 = vshll.u32 %v3575_v21, 16  ;;  %v1530_v49 = vrot.slane %v1528_v35, 5 }
  0x60   : > { %4210 = vmatmul.mubr.bf16.gmra.mxu1 %v4487_v60  ;;  %4226 = vmatpush3.bf16.msra.mxu0 %v4488_v63  ;;  %v4496_v60 = vld [vmem:[%s5776_s1 + $0x100] sm:$0xff]   ;;  %v1484_v63 = vrot.slane %v1483_v44, 4  ;;  %v1494_v2 = vrot.slane %v1493_v56, 4  ;;  %v1527_v39 = vrot.slane %v1525_v31, 4  ;;  %v3577_v56 = vld [vmem:[%s4664_s28 + $0x3c] sm:$0xf] }
  0x61   : > { %4258 = vmatpush3.bf16.msra.mxu1 %v4489_v54  ;;  %4213 = vmatprep.mubr.bf16.mxu1 %v4492_v3  ;;  %v1475_v54 = vsel %vm4707_vm2, %v1470_v38, %v1474_v27  ;;  %v4499_v3 = vld [vmem:[%s5776_s1 + $0x1f8] sm:$0xff]   ;;  %v4503_v38 = vld [vmem:[%s5776_s1 + $0x1e8] sm:$0xff]   ;;  %v1536_v52 = vrot.slane %v1534_v40, 5  ;;  %v1549_v0 = vshrl.u32 %v3577_v56, 16 }
  0x62   : > { %4259 = vmatprep.subr.bf16.mxu1 %v4491_v46  ;;  %4227 = vmatprep.subr.bf16.mxu0 %v4490_v5  ;;  %v3605_v13 = vcombine.low %v1465_v55, %v1475_v54  ;;  %v1499_v62 = vsel %vm4707_vm2, %v1494_v2, %v1498_v58  ;;  %v5063_v27 = vld [vmem:[%s4664_s28 + $0x38] sm:$0x1]  ;;  %v1531_v50 = vor.u32 %v1530_v49, %v1527_v39  ;;  %v3632_v54 = vrot.slane %v3624_v33, 9  ;;  %v3626_v31 = vld [vmem:[%s4664_s28 + $0x48] sm:$0xe] }
  0x63   : > { %4181 = vmatprep.mubr.bf16.mxu0 %v3505_v57  ;;  %v1489_v57 = vsel %vm4707_vm2, %v1484_v63, %v1488_v51  ;;  %v1544_v24 = vshll.u32 %v5063_v27, 16  ;;  %v4502_v63 = vld [vmem:[%s5776_s1 + $0x1a8] sm:$0xff]  }
  0x64   : > { %4228 = vmatpush3.bf16.msra.mxu0 %v4490_v5  ;;  %v3572_v5 = vld [vmem:[%s4664_s28 + $0x28] sm:$0xf]  ;;  %v3606_v25 = vcombine.low %v1489_v57, %v1499_v62  ;;  %v1532_v2 = vrot.slane %v1531_v50, 4 }
  0x65   : > { %4260 = vmatpush3.bf16.msra.mxu1 %v4491_v46  ;;  %4229 = vmatprep.subr.bf16.mxu0 %v4494_v9  ;;  %v1897_v46 = vrot.slane %v1895_v41, 4  ;;  %v1510_v14 = vshll.u32 %v3572_v5, 16  ;;  %v1902_v45 = vrot.slane %v3572_v5, 5  ;;  %v1546_v41 = vrot.slane %v1544_v24, 5 }
  0x66   : > { %4261 = vmatprep.subr.bf16.mxu1 %v4495_v16  ;;  %v1537_v62 = vsel %vm4707_vm2, %v1532_v2, %v1536_v52 }
  0x67   : > { %4182 = vmatmul.mubr.bf16.gmra.mxu0 %v3506_v6  ;;  %v1899_v7 = vsel %vm4880_vm5, %v1897_v46, %v1898_v59  ;;  %v1514_v6 = vshrl.u32 %v3572_v5, 16  ;;  %v1512_v22 = vrot.slane %v1510_v14, 5  ;;  %v1904_v47 = vrot.slane %v1902_v45, 4  ;;  %v3578_v46 = vld [vmem:[%s4664_s28 + $0x40] sm:$0xf] }
  0x68   : > { %4214 = vmatmul.mubr.bf16.gmra.mxu1 %v4493_v53  ;;  %4230 = vmatpush3.bf16.msra.mxu0 %v4494_v9  ;;  %v3654_v17 = vcombine.low %v1896_v1, %v1899_v7  ;;  %v1503_v53 = vrot.slane %v1501_v12, 4  ;;  %v1522_v9 = vrot.slane %v1520_v20, 5  ;;  %v4505_v1 = vld [vmem:[%s5776_s1 + $0x1e0] sm:$0xff]   ;;  %v1552_v5 = vshll.u32 %v3577_v56, 16  ;;  %v3581_v20 = vld [vmem:[%s4664_s28 + $0x4c] sm:$0xf] }
  0x69   : > { %4262 = vmatpush3.bf16.msra.mxu1 %v4495_v16  ;;  %4265 = vmatprep.mubr.bf16.mxu1 %v3653_v48  ;;  %v3623_v16 = vld [vmem:[%s4664_s28 + $0x24] sm:$0xe]  ;;  %v1516_v23 = vrot.slane %v1514_v6, 4  ;;  %v1906_v48 = vsel %vm4880_vm5, %v1904_v47, %v1905_v30  ;;  %v1558_v57 = vshll.u32 %v3578_v46, 16  ;;  %v1562_v15 = vshrl.u32 %v3578_v46, 16 }
  0x6a   : > { %4263 = vmatprep.subr.bf16.mxu1 %v4497_v42  ;;  %4231 = vmatprep.subr.bf16.mxu0 %v4496_v60  ;;  %v3631_v26 = vrot.slane %v3623_v16, 9  ;;  %v1507_v28 = vor.u32 %v1506_v8, %v1503_v53  ;;  %v3625_v16 = vld [vmem:[%s4664_s28 + $0x3c] sm:$0xe]  ;;  %v1554_v14 = vrot.slane %v1552_v5, 5  ;;  %v3580_v8 = vld [vmem:[%s4664_s28 + $0x48] sm:$0xf] }
  0x6b   : > { %4233 = vmatprep.mubr.bf16.mxu0 %v3605_v13  ;;  %v1517_v61 = vor.u32 %v1516_v23, %v1512_v22  ;;  %v1912_v13 = vrot.slane %v5063_v27, 5  ;;  %v1560_v6 = vrot.slane %v1558_v57, 5  ;;  %v4507_v27 = vld [vmem:[%s5776_s1 + $0x1d8] sm:$0xff]   ;;  %v1582_v47 = vshll.u32 %v3581_v20, 16  ;;  %v3583_v56 = vld [vmem:[%s4664_s28 + $0x54] sm:$0xf] }
  0x6c   : > { %4232 = vmatpush3.bf16.msra.mxu0 %v4496_v60  ;;  %v1903_v34 = vsel %vm4880_vm5, %v3631_v26, %v1902_v45  ;;  %v1508_v37 = vrot.slane %v1507_v28, 4  ;;  %v1909_v60 = vrot.slane %v3575_v21, 5  ;;  %v3633_v26 = vrot.slane %v3625_v16, 9  ;;  %v5106_v45 = vld [vmem:[%s4664_s28 + $0x50] sm:$0x1] }
  0x6d   : > { %4264 = vmatpush3.bf16.msra.mxu1 %v4497_v42  ;;  %4281 = vmatprep.subr.bf16.mxu0 %v4498_v10  ;;  %v1538_v42 = vshrl.u32 %v3575_v21, 16  ;;  %v1518_v43 = vrot.slane %v1517_v61, 4  ;;  %v3655_v4 = vcombine.low %v1903_v34, %v1906_v48  ;;  %v1573_v61 = vshrl.u32 %v3580_v8, 16  ;;  %v3627_v16 = vld [vmem:[%s4664_s28 + $0x54] sm:$0xe] }
  0x6e   : > { %4313 = vmatprep.subr.bf16.mxu1 %v4499_v3  ;;  %v1513_v51 = vsel %vm4707_vm2, %v1508_v37, %v1512_v22  ;;  %v1910_v11 = vsel %vm4880_vm5, %v3632_v54, %v1909_v60  ;;  %v1911_v12 = vrot.slane %v1909_v60, 4  ;;  %v1576_v34 = vshll.u32 %v3580_v8, 16  ;;  %v3586_v8 = vld [vmem:[%s4664_s28 + $0x60] sm:$0xf] }
  0x6f   : > { %4234 = vmatmul.mubr.bf16.vlgmr.msra.gmra.mxu0 %v3606_v25  ;;  %v1540_v55 = vrot.slane %v1538_v42, 4  ;;  %v1523_v44 = vsel %vm4707_vm2, %v1518_v43, %v1522_v9  ;;  %v1916_v9 = vrot.slane %v3578_v46, 5  ;;  %v1586_v40 = vshrl.u32 %v3581_v20, 16  ;;  %v4506_v42 = vld [vmem:[%s5776_s1 + $0x198] sm:$0xff]   ;;  %v4511_v46 = vld [vmem:[%s5776_s1 + $0x1c8] sm:$0xff]  }
  0x70   : > { %4266 = vmatmul.mubr.bf16.vlgmr.msra.gmra.mxu1 %v3654_v17  ;;  %4282 = vmatpush3.bf16.msra.mxu0 %v4498_v10  ;;  %v3607_v58 = vcombine.low %v1513_v51, %v1523_v44  ;;  %v4504_v17 = vld [vmem:[%s5776_s1 + $0x1a0] sm:$0xff]   ;;  %v1551_v10 = vrot.slane %v1549_v0, 4  ;;  %v1913_v25 = vsel %vm4880_vm5, %v1911_v12, %v1912_v13  ;;  %v1575_v48 = vrot.slane %v1573_v61, 4 }
  0x71   : > { %4314 = vmatpush3.bf16.msra.mxu1 %v4499_v3  ;;  %4283 = vmatprep.subr.bf16.mxu0 %v4500_v29  ;;  %v1541_v59 = vor.u32 %v1540_v55, %v1536_v52  ;;  %v3579_v3 = vld [vmem:[%s4664_s28 + $0x44] sm:$0x1]  ;;  %v3656_v22 = vcombine.low %v1910_v11, %v1913_v25  ;;  %v1917_v37 = vsel %vm4880_vm5, %v3633_v26, %v1916_v9  ;;  %v1918_v39 = vrot.slane %v1916_v9, 4 }
  0x72   : > { %4315 = vmatprep.subr.bf16.mxu1 %v4501_v19  ;;  %4269 = vmatprep.mubr.bf16.mxu1 %v3655_v4  ;;  %v1568_v53 = vshll.u32 %v3579_v3, 16  ;;  %v1555_v23 = vor.u32 %v1554_v14, %v1551_v10  ;;  %v1919_v30 = vrot.slane %v3579_v3, 5  ;;  %v1578_v49 = vrot.slane %v1576_v34, 5  ;;  %v3585_v3 = vld [vmem:[%s4664_s28 + $0x5c] sm:$0x1] }
  0x73   : > { %4237 = vmatprep.mubr.bf16.mxu0 %v3607_v58  ;;  %v1542_v7 = vrot.slane %v1541_v59, 4  ;;  %v1584_v24 = vrot.slane %v1582_v47, 5  ;;  %v1588_v52 = vrot.slane %v1586_v40, 4  ;;  %v1592_v55 = vshll.u32 %v5106_v45, 16  ;;  %v3584_v58 = vld [vmem:[%s4664_s28 + $0x58] sm:$0xf] }
  0x74   : > { %4284 = vmatpush3.bf16.msra.mxu0 %v4500_v29  ;;  %v1570_v28 = vrot.slane %v1568_v53, 5  ;;  %v1556_v33 = vrot.slane %v1555_v23, 4  ;;  %v1920_v4 = vsel %vm4880_vm5, %v1918_v39, %v1919_v30  ;;  %v3634_v54 = vrot.slane %v3626_v31, 9  ;;  %v3628_v31 = vld [vmem:[%s4664_s28 + $0x60] sm:$0xe] }
  0x75   : > { %4316 = vmatpush3.bf16.msra.mxu1 %v4501_v19  ;;  %v1547_v18 = vsel %vm4707_vm2, %v1542_v7, %v1546_v41  ;;  %4285 = vmatprep.subr.bf16.mxu0 %v4502_v63  ;;  %v1564_v19 = vrot.slane %v1562_v15, 4  ;;  %v3657_v50 = vcombine.low %v1917_v37, %v1920_v4  ;;  %v1579_v41 = vor.u32 %v1578_v49, %v1575_v48 }
  0x76   : > { %4317 = vmatprep.subr.bf16.mxu1 %v4503_v38  ;;  %v3608_v21 = vcombine.low %v1537_v62, %v1547_v18  ;;  %v1561_v43 = vsel %vm4707_vm2, %v1556_v33, %v1560_v6  ;;  %v1589_v59 = vor.u32 %v1588_v52, %v1584_v24  ;;  %v1594_v60 = vrot.slane %v1592_v55, 5 }
  0x77   : > { %v1565_v29 = vor.u32 %v1564_v19, %v1560_v6  ;;  %v1923_v13 = vrot.slane %v3581_v20, 5  ;;  %v1580_v2 = vrot.slane %v1579_v41, 4  ;;  %v1597_v0 = vshrl.u32 %v3583_v56, 16  ;;  %v4510_v6 = vld [vmem:[%s5776_s1 + $0x188] sm:$0xff]   ;;  %v3587_v20 = vld [vmem:[%s4664_s28 + $0x64] sm:$0xf] }
  0x78   : > { %4238 = vmatmul.mubr.bf16.gmra.mxu0 %v3608_v21  ;;  %4270 = vmatmul.mubr.bf16.gmra.mxu1 %v3656_v22  ;;  %v1600_v5 = vshll.u32 %v3583_v56, 16  ;;  %v1606_v57 = vshll.u32 %v3584_v58, 16  ;;  %v1590_v7 = vrot.slane %v1589_v59, 4  ;;  %v1610_v15 = vshrl.u32 %v3584_v58, 16 }
  0x79   : > { %4318 = vmatpush3.bf16.msra.mxu1 %v4503_v38  ;;  %4286 = vmatpush3.bf16.msra.mxu0 %v4502_v63  ;;  %v1566_v35 = vrot.slane %v1565_v29, 4  ;;  %v4509_v38 = vld [vmem:[%s5776_s1 + $0x1d0] sm:$0xff]   ;;  %v1926_v63 = vrot.slane %v5106_v45, 5  ;;  %v1924_v11 = vsel %vm4880_vm5, %v3634_v54, %v1923_v13  ;;  %v1925_v12 = vrot.slane %v1923_v13, 4  ;;  %v5152_v45 = vld [vmem:[%s4664_s28 + $0x68] sm:$0x1] }
  0x7a   : > { %4319 = vmatprep.subr.bf16.mxu1 %v4505_v1  ;;  %4287 = vmatprep.subr.bf16.mxu0 %v4504_v17  ;;  %v1585_v62 = vsel %vm4707_vm2, %v1580_v2, %v1584_v24  ;;  %v1602_v10 = vrot.slane %v1600_v5, 5  ;;  %v1608_v14 = vrot.slane %v1606_v57, 5  ;;  %v1595_v18 = vsel %vm4707_vm2, %v1590_v7, %v1594_v60  ;;  %v3719_v13 = vld [vmem:[%s4664_s28 + $0x18] sm:$0xf] }
  0x7b   : > { %v1571_v51 = vsel %vm4707_vm2, %v1566_v35, %v1570_v28  ;;  %4273 = vmatprep.mubr.bf16.mxu1 %v3657_v50  ;;  %v1927_v25 = vsel %vm4880_vm5, %v1925_v12, %v1926_v63  ;;  %v1612_v19 = vrot.slane %v1610_v15, 4  ;;  %v1616_v53 = vshll.u32 %v3585_v3, 16 }
  0x7c   : > { %v3609_v44 = vcombine.low %v1561_v43, %v1571_v51  ;;  %v3610_v21 = vcombine.low %v1585_v62, %v1595_v18  ;;  %v3658_v22 = vcombine.low %v1924_v11, %v1927_v25  ;;  %v3635_v26 = vrot.slane %v3627_v16, 9  ;;  %v4514_v11 = vld [vmem:[%s4664_s28 + $0x18] sm:$0xff]   ;;  %v5198_v18 = vld [vmem:[%s4664_s28 + $0x28] sm:$0xf] }
  0x7d   : > { %4320 = vmatpush3.bf16.msra.mxu1 %v4505_v1  ;;  %4288 = vmatpush3.bf16.msra.mxu0 %v4504_v17  ;;  %v4508_v1 = vld [vmem:[%s5776_s1 + $0x190] sm:$0xff]   ;;  %v1599_v17 = vrot.slane %v1597_v0, 4  ;;  %v1613_v29 = vor.u32 %v1612_v19, %v1608_v14  ;;  %v1618_v28 = vrot.slane %v1616_v53, 5  ;;  %v1930_v9 = vrot.slane %v3584_v58, 5 }
  0x7e   : > { %4321 = vmatprep.subr.bf16.mxu1 %v4507_v27  ;;  %4241 = vmatprep.mubr.bf16.mxu0 %v3609_v44  ;;  %v1933_v30 = vrot.slane %v3585_v3, 5  ;;  %v1621_v61 = vshrl.u32 %v3586_v8, 16  ;;  %v1624_v34 = vshll.u32 %v3586_v8, 16  ;;  %v1630_v47 = vshll.u32 %v3587_v20, 16 }
  0x7f   : > { %4289 = vmatprep.subr.bf16.mxu0 %v4506_v42  ;;  %v1603_v23 = vor.u32 %v1602_v10, %v1599_v17  ;;  %v1614_v35 = vrot.slane %v1613_v29, 4  ;;  %v1931_v37 = vsel %vm4880_vm5, %v3635_v26, %v1930_v9  ;;  %v1932_v39 = vrot.slane %v1930_v9, 4 }
  0x80   : > { %4242 = vmatmul.mubr.bf16.gmra.mxu0 %v3610_v21  ;;  %4274 = vmatmul.mubr.bf16.gmra.mxu1 %v3658_v22  ;;  %v1634_v40 = vshrl.u32 %v3587_v20, 16  ;;  %v1623_v48 = vrot.slane %v1621_v61, 4  ;;  %v1626_v49 = vrot.slane %v1624_v34, 5  ;;  %v1632_v24 = vrot.slane %v1630_v47, 5  ;;  %v4515_v61 = vld [vmem:[%s4664_s28 + $0x24] sm:$0xff]  }
  0x81   : > { %4322 = vmatpush3.bf16.msra.mxu1 %v4507_v27  ;;  %4290 = vmatpush3.bf16.msra.mxu0 %v4506_v42  ;;  %v4513_v27 = vld [vmem:[%s5776_s1 + $0x1c0] sm:$0xff]   ;;  %v1604_v33 = vrot.slane %v1603_v23, 4  ;;  %v1619_v51 = vsel %vm4707_vm2, %v1614_v35, %v1618_v28  ;;  %v1934_v4 = vsel %vm4880_vm5, %v1932_v39, %v1933_v30  ;;  %v1640_v55 = vshll.u32 %v5152_v45, 16 }
  0x82   : > { %4323 = vmatprep.subr.bf16.mxu1 %v4509_v38  ;;  %4291 = vmatprep.subr.bf16.mxu0 %v4508_v1  ;;  %v4512_v42 = vld [vmem:[%s5776_s1 + $0x180] sm:$0xff]   ;;  %v1636_v52 = vrot.slane %v1634_v40, 4  ;;  %v3659_v50 = vcombine.low %v1931_v37, %v1934_v4  ;;  %v1627_v41 = vor.u32 %v1626_v49, %v1623_v48  ;;  %v3636_v54 = vrot.slane %v3628_v31, 9  ;;  %v3725_v40 = vld [vmem:[%s4664_s28 + $0x30] sm:$0xf] }
  0x83   : > { %v1609_v43 = vsel %vm4707_vm2, %v1604_v33, %v1608_v14  ;;  %v1642_v58 = vrot.slane %v1640_v55, 5  ;;  %v1937_v59 = vrot.slane %v3587_v20, 5  ;;  %v1940_v60 = vrot.slane %v5152_v45, 5  ;;  %v5201_v20 = vld [vmem:[%s4664_s28 + $0x2c] sm:$0x1]  ;;  %v5219_v49 = vld [vmem:[%s5776_s1 + $0x230] sm:$0xff]  }
  0x84   : > { %v3611_v44 = vcombine.low %v1609_v43, %v1619_v51  ;;  %v1637_v56 = vor.u32 %v1636_v52, %v1632_v24  ;;  %4277 = vmatprep.mubr.bf16.mxu1 %v3659_v50  ;;  %v1628_v63 = vrot.slane %v1627_v41, 4  ;;  %v2423_v2 = vshrl.u32 %v3719_v13, 16 }
  0x85   : > { %4324 = vmatpush3.bf16.msra.mxu1 %v4509_v38  ;;  %4292 = vmatpush3.bf16.msra.mxu0 %v4508_v1  ;;  %v5168_v38 = vld [vmem:[%s5776_s1 + $0x238] sm:$0xff]   ;;  %v1938_v0 = vsel %vm4880_vm5, %v3636_v54, %v1937_v59  ;;  %v1939_v5 = vrot.slane %v1937_v59, 4  ;;  %v2426_v57 = vshll.u32 %v3719_v13, 16  ;;  %v2460_v29 = vshrl.u32 %v5198_v18, 16 }
  0x86   : > { %4325 = vmatprep.subr.bf16.mxu1 %v4511_v46  ;;  %4293 = vmatprep.subr.bf16.mxu0 %v4510_v6  ;;  %v5178_v1 = vld [vmem:[%s4664_s28 + $0x1c] sm:$0xf]  ;;  %v1638_v3 = vrot.slane %v1637_v56, 4  ;;  %v1633_v7 = vsel %vm4707_vm2, %v1628_v63, %v1632_v24  ;;  %v2425_v12 = vrot.slane %v2423_v2, 4  ;;  %v2466_v28 = vshll.u32 %v5201_v20, 16 }
  0x87   : > { %4245 = vmatprep.mubr.bf16.mxu0 %v3611_v44  ;;  %v2432_v15 = vshll.u32 %v5178_v1, 16  ;;  %v2436_v16 = vshrl.u32 %v5178_v1, 16  ;;  %v1941_v17 = vsel %vm4880_vm5, %v1939_v5, %v1940_v60  ;;  %v2428_v10 = vrot.slane %v2426_v57, 5  ;;  %v5222_v24 = vld [vmem:[%s4664_s28 + $0x38] sm:$0x1]  ;;  %v4518_v44 = vld [vmem:[%s4664_s28 + $0x30] sm:$0xff]  }
  0x88   : > { %v1643_v62 = vsel %vm4707_vm2, %v1638_v3, %v1642_v58  ;;  %v3660_v19 = vcombine.low %v1938_v0, %v1941_v17  ;;  %v2462_v47 = vrot.slane %v2460_v29, 4  ;;  %v2468_v35 = vrot.slane %v2466_v28, 5  ;;  %v3728_v60 = vld [vmem:[%s4664_s28 + $0x3c] sm:$0xf]  ;;  %v5232_v3 = vld [vmem:[%s4664_s28 + $0x40] sm:$0xf] }
  0x89   : > { %4326 = vmatpush3.bf16.msra.mxu1 %v4511_v46  ;;  %4294 = vmatpush3.bf16.msra.mxu0 %v4510_v6  ;;  %v5181_v46 = vld [vmem:[%s4664_s28 + $0x20] sm:$0x1]  ;;  %v3722_v6 = vld [vmem:[%s4664_s28 + $0x24] sm:$0xf]  ;;  %v3612_v25 = vcombine.low %v1633_v7, %v1643_v62  ;;  %v2434_v53 = vrot.slane %v2432_v15, 5  ;;  %v2438_v8 = vrot.slane %v2436_v16, 4  ;;  %v2429_v21 = vor.u32 %v2428_v10, %v2425_v12 }
  0x8a   : > { %4327 = vmatprep.subr.bf16.mxu1 %v4513_v27  ;;  %4295 = vmatprep.subr.bf16.mxu0 %v4512_v42  ;;  %v2442_v14 = vshll.u32 %v5181_v46, 16  ;;  %v2447_v23 = vshrl.u32 %v3722_v6, 16  ;;  %v2450_v26 = vshll.u32 %v3722_v6, 16  ;;  %v2471_v51 = vshrl.u32 %v3725_v40, 16  ;;  %v5235_v0 = vld [vmem:[%s4664_s28 + $0x44] sm:$0x1] }
  0x8b   : > { %4246 = vmatmul.mubr.bf16.gmra.mxu0 %v3612_v25  ;;  %4278 = vmatmul.mubr.bf16.gmra.mxu1 %v3660_v19  ;;  %v2439_v45 = vor.u32 %v2438_v8, %v2434_v53  ;;  %v2430_v9 = vrot.slane %v2429_v21, 4  ;;  %v2474_v4 = vshll.u32 %v3725_v40, 16  ;;  %v2490_v59 = vshll.u32 %v5222_v24, 16  ;;  %v5242_v12 = vld [vmem:[%s5776_s1 + $0x228] sm:$0xff]  }
  0x8c   : > { %v2444_v22 = vrot.slane %v2442_v14, 5  ;;  %4297 = vmatprep.mubr.bf16.mxu0 %v4514_v11  ;;  %v2449_v30 = vrot.slane %v2447_v23, 4  ;;  %v2452_v31 = vrot.slane %v2450_v26, 5  ;;  %v2473_v56 = vrot.slane %v2471_v51, 4  ;;  %v5256_v29 = vld [vmem:[%s4664_s28 + $0x4c] sm:$0xf] }
  0x8d   : > { %4328 = vmatpush3.bf16.msra.mxu1 %v4513_v27  ;;  %4296 = vmatpush3.bf16.msra.mxu0 %v4512_v42  ;;  %v2456_v27 = vshll.u32 %v5198_v18, 16  ;;  %v2440_v33 = vrot.slane %v2439_v45, 4  ;;  %v2435_v37 = vsel %vm4707_vm2, %v2430_v9, %v2434_v53  ;;  %v5212_v42 = vld [vmem:[%s4664_s28 + $0x34] sm:$0xf]  ;;  %v2476_v58 = vrot.slane %v2474_v4, 5  ;;  %v4519_v53 = vld [vmem:[%s4664_s28 + $0x3c] sm:$0xff]  }
  0x8e   : > { %4377 = vmatprep.subr.bf16.mxu1 %v5168_v38  ;;  %4345 = vmatprep.subr.bf16.mxu0 %v5168_v38  ;;  %v2453_v39 = vor.u32 %v2452_v31, %v2449_v30  ;;  %v2480_v50 = vshll.u32 %v5212_v42, 16  ;;  %v2484_v41 = vshrl.u32 %v5212_v42, 16  ;;  %v2492_v7 = vrot.slane %v2490_v59, 5  ;;  %v4522_v45 = vld [vmem:[%s4664_s28 + $0x48] sm:$0xff]   ;;  %v5268_v30 = vld [vmem:[%s4664_s28 + $0x50] sm:$0x1] }
  0x8f   : > { %v2458_v34 = vrot.slane %v2456_v27, 5  ;;  %v2445_v43 = vsel %vm4707_vm2, %v2440_v33, %v2444_v22  ;;  %v2477_v57 = vor.u32 %v2476_v58, %v2473_v56  ;;  %v2495_v11 = vshrl.u32 %v3728_v60, 16  ;;  %v3731_v27 = vld [vmem:[%s4664_s28 + $0x48] sm:$0xf]  ;;  %v5276_v51 = vld [vmem:[%s4664_s28 + $0x58] sm:$0xf] }
  0x90   : > { %v3759_v52 = vcombine.low %v2435_v37, %v2445_v43  ;;  %v2454_v55 = vrot.slane %v2453_v39, 4  ;;  %v2482_v63 = vrot.slane %v2480_v50, 5  ;;  %v2486_v2 = vrot.slane %v2484_v41, 4  ;;  %v3734_v37 = vld [vmem:[%s4664_s28 + $0x54] sm:$0xf] }
  0x91   : > { %v2463_v48 = vor.u32 %v2462_v47, %v2458_v34  ;;  %v2498_v62 = vshll.u32 %v3728_v60, 16  ;;  %v2504_v17 = vshll.u32 %v5232_v3, 16  ;;  %v2478_v10 = vrot.slane %v2477_v57, 4 }
  0x92   : > { %4329 = vmatprep.mubr.bf16.mxu1 %v3759_v52  ;;  %v2459_v13 = vsel %vm4707_vm2, %v2454_v55, %v2458_v34  ;;  %v2487_v16 = vor.u32 %v2486_v2, %v2482_v63  ;;  %v2497_v14 = vrot.slane %v2495_v11, 4  ;;  %v2508_v6 = vshrl.u32 %v5232_v3, 16  ;;  %v4524_v11 = vld [vmem:[%s5776_s1 + $0x218] sm:$0xff]  }
  0x93   : > { %v2464_v54 = vrot.slane %v2463_v48, 4  ;;  %4298 = vmatmul.mubr.bf16.vlgmr.msra.gmra.mxu0 %v4515_v61  ;;  %v2514_v25 = vshll.u32 %v5235_v0, 16  ;;  %v2500_v8 = vrot.slane %v2498_v62, 5  ;;  %v2506_v21 = vrot.slane %v2504_v17, 5 }
  0x94   : > { %4346 = vmatpush3.bf16.msra.mxu0 %v5168_v38  ;;  %4301 = vmatprep.mubr.bf16.mxu0 %v4518_v44  ;;  %v2488_v19 = vrot.slane %v2487_v16, 4  ;;  %v2483_v22 = vsel %vm4707_vm2, %v2478_v10, %v2482_v63  ;;  %v2510_v23 = vrot.slane %v2508_v6, 4  ;;  %v2519_v31 = vshrl.u32 %v3731_v27, 16  ;;  %v5280_v44 = vld [vmem:[%s4664_s28 + $0x5c] sm:$0x1] }
  0x95   : > { %v2469_v5 = vsel %vm4707_vm2, %v2464_v54, %v2468_v35  ;;  %4347 = vmatprep.subr.bf16.mxu0 %v5219_v49  ;;  %v2516_v26 = vrot.slane %v2514_v25, 5  ;;  %v2501_v9 = vor.u32 %v2500_v8, %v2497_v14  ;;  %v2522_v33 = vshll.u32 %v3731_v27, 16 }
  0x96   : > { %v3760_v15 = vcombine.low %v2459_v13, %v2469_v5  ;;  %v2493_v28 = vsel %vm4707_vm2, %v2488_v19, %v2492_v7  ;;  %v2511_v34 = vor.u32 %v2510_v23, %v2506_v21  ;;  %v2528_v47 = vshll.u32 %v5256_v29, 16  ;;  %v4523_v5 = vld [vmem:[%s4664_s28 + $0x54] sm:$0xff]   ;;  %v3737_v19 = vld [vmem:[%s4664_s28 + $0x60] sm:$0xf] }
  0x97   : > { %v3761_v61 = vcombine.low %v2483_v22, %v2493_v28  ;;  %v2532_v35 = vshrl.u32 %v5256_v29, 16  ;;  %v2502_v39 = vrot.slane %v2501_v9, 4  ;;  %v2521_v40 = vrot.slane %v2519_v31, 4  ;;  %v4526_v23 = vld [vmem:[%s4664_s28 + $0x60] sm:$0xff]  }
  0x98   : > { %4330 = vmatmul.mubr.bf16.vlgmr.msra.gmra.mxu1 %v3760_v15  ;;  %4348 = vmatpush3.bf16.msra.mxu0 %v5219_v49  ;;  %v2524_v43 = vrot.slane %v2522_v33, 5  ;;  %v2538_v48 = vshll.u32 %v5268_v30, 16  ;;  %v2512_v4 = vrot.slane %v2511_v34, 4  ;;  %v2530_v52 = vrot.slane %v2528_v47, 5 }
  0x99   : > { %4385 = vmatpush3.bf16.msra.mxu1 %v5168_v38  ;;  %v5265_v38 = vld [vmem:[%s5776_s1 + $0x220] sm:$0xff]   ;;  %4349 = vmatprep.subr.bf16.mxu0 %v5242_v12  ;;  %v2534_v55 = vrot.slane %v2532_v35, 4  ;;  %v2543_v50 = vshrl.u32 %v3734_v37, 16  ;;  %v2507_v41 = vsel %vm4707_vm2, %v2502_v39, %v2506_v21  ;;  %v2546_v58 = vshll.u32 %v3734_v37, 16  ;;  %v3740_v35 = vld [vmem:[%s4664_s28 + $0x6c] sm:$0xf] }
  0x9a   : > { %4378 = vmatprep.subr.bf16.mxu1 %v5219_v49  ;;  %4333 = vmatprep.mubr.bf16.mxu1 %v3761_v61  ;;  %v2525_v54 = vor.u32 %v2524_v43, %v2521_v40  ;;  %v2540_v56 = vrot.slane %v2538_v48, 5  ;;  %v2552_v13 = vshll.u32 %v5276_v51, 16  ;;  %v2556_v7 = vshrl.u32 %v5276_v51, 16  ;;  %v5330_v43 = vld [vmem:[%s4664_s28 + $0x70] sm:$0xf] }
  0x9b   : > { %4302 = vmatmul.mubr.bf16.gmra.mxu0 %v4519_v53  ;;  %v2535_v59 = vor.u32 %v2534_v55, %v2530_v52  ;;  %v2545_v60 = vrot.slane %v2543_v50, 4  ;;  %v2548_v57 = vrot.slane %v2546_v58, 5  ;;  %v2562_v62 = vshll.u32 %v5280_v44, 16  ;;  %v5309_v53 = vld [vmem:[%s4664_s28 + $0x64] sm:$0xf] }
  0x9c   : > { %4350 = vmatpush3.bf16.msra.mxu0 %v5242_v12  ;;  %4305 = vmatprep.mubr.bf16.mxu0 %v4522_v45  ;;  %v2526_v2 = vrot.slane %v2525_v54, 4  ;;  %v2554_v16 = vrot.slane %v2552_v13, 5  ;;  %v2893_v17 = vrot.slane %v5276_v51, 5  ;;  %v2558_v6 = vrot.slane %v2556_v7, 4  ;;  %v5333_v48 = vld [vmem:[%s4664_s28 + $0x74] sm:$0x1] }
  0x9d   : > { %4386 = vmatpush3.bf16.msra.mxu1 %v5219_v49  ;;  %v2517_v49 = vsel %vm4707_vm2, %v2512_v4, %v2516_v26  ;;  %4351 = vmatprep.subr.bf16.mxu0 %v5265_v38  ;;  %v2536_v15 = vrot.slane %v2535_v59, 4  ;;  %v2549_v14 = vor.u32 %v2548_v57, %v2545_v60  ;;  %v2896_v25 = vrot.slane %v5280_v44, 5  ;;  %v5320_v26 = vld [vmem:[%s4664_s28 + $0x68] sm:$0x1] }
  0x9e   : > { %4379 = vmatprep.subr.bf16.mxu1 %v5242_v12  ;;  %v3762_v63 = vcombine.low %v2507_v41, %v2517_v49  ;;  %v2531_v10 = vsel %vm4707_vm2, %v2526_v2, %v2530_v52  ;;  %v2564_v21 = vrot.slane %v2562_v62, 5  ;;  %v5316_v22 = vrot.slane %v2893_v17, 4 }
  0x9f   : > { %v2541_v8 = vsel %vm4707_vm2, %v2536_v15, %v2540_v56  ;;  %v2567_v45 = vshrl.u32 %v3737_v19, 16  ;;  %v2550_v28 = vrot.slane %v2549_v14, 4  ;;  %v2559_v9 = vor.u32 %v2558_v6, %v2554_v16  ;;  %v3779_v14 = vld [vmem:[%s4664_s28 + $0x48] sm:$0xe] }
  0xa0   : > { %4334 = vmatmul.mubr.bf16.gmra.mxu1 %v3762_v63  ;;  %4352 = vmatpush3.bf16.msra.mxu0 %v5265_v38  ;;  %v3763_v27 = vcombine.low %v2531_v10, %v2541_v8  ;;  %v2570_v31 = vshll.u32 %v3737_v19, 16  ;;  %v2576_v61 = vshll.u32 %v5309_v53, 16  ;;  %v2580_v34 = vshrl.u32 %v5309_v53, 16  ;;  %v3775_v63 = vld [vmem:[%s4664_s28 + $0x18] sm:$0xe] }
  0xa1   : > { %4387 = vmatpush3.bf16.msra.mxu1 %v5242_v12  ;;  %v5305_v12 = vld [vmem:[%s5776_s1 + $0x210] sm:$0xff]   ;;  %4353 = vmatprep.subr.bf16.mxu0 %v4524_v11  ;;  %v2569_v33 = vrot.slane %v2567_v45, 4  ;;  %v2586_v47 = vshll.u32 %v5320_v26, 16  ;;  %v2555_v37 = vsel %vm4707_vm2, %v2550_v28, %v2554_v16  ;;  %v2560_v39 = vrot.slane %v2559_v9, 4  ;;  %v3776_v45 = vld [vmem:[%s4664_s28 + $0x24] sm:$0xe] }
  0xa2   : > { %4380 = vmatprep.subr.bf16.mxu1 %v5265_v38  ;;  %4337 = vmatprep.mubr.bf16.mxu1 %v3763_v27  ;;  %v2572_v40 = vrot.slane %v2570_v31, 5  ;;  %v2578_v4 = vrot.slane %v2576_v61, 5  ;;  %v2582_v52 = vrot.slane %v2580_v34, 4  ;;  %v2591_v50 = vshrl.u32 %v3740_v35, 16  ;;  %v3780_v34 = vld [vmem:[%s4664_s28 + $0x54] sm:$0xe] }
  0xa3   : > { %4306 = vmatmul.mubr.bf16.gmra.mxu0 %v4523_v5  ;;  %v2588_v55 = vrot.slane %v2586_v47, 5  ;;  %v2565_v41 = vsel %vm4707_vm2, %v2560_v39, %v2564_v21  ;;  %v2594_v56 = vshll.u32 %v3740_v35, 16  ;;  %v2600_v58 = vshll.u32 %v5330_v43, 16  ;;  %v4527_v5 = vld [vmem:[%s4664_s28 + $0x6c] sm:$0xff]   ;;  %v4529_v21 = vld [vmem:[%s5776_s1 + $0x200] sm:$0xff]  }
  0xa4   : > { %4354 = vmatpush3.bf16.msra.mxu0 %v4524_v11  ;;  %4309 = vmatprep.mubr.bf16.mxu0 %v4526_v23  ;;  %v2573_v54 = vor.u32 %v2572_v40, %v2569_v33  ;;  %v3764_v49 = vcombine.low %v2555_v37, %v2565_v41  ;;  %v2583_v59 = vor.u32 %v2582_v52, %v2578_v4  ;;  %v2593_v60 = vrot.slane %v2591_v50, 4  ;;  %v3777_v39 = vld [vmem:[%s4664_s28 + $0x30] sm:$0xe] }
  0xa5   : > { %4388 = vmatpush3.bf16.msra.mxu1 %v5265_v38  ;;  %v5338_v38 = vld [vmem:[%s5776_s1 + $0x208] sm:$0xff]   ;;  %4355 = vmatprep.subr.bf16.mxu0 %v5305_v12  ;;  %v2604_v13 = vshrl.u32 %v5330_v43, 16  ;;  %v2596_v57 = vrot.slane %v2594_v56, 5  ;;  %v2602_v7 = vrot.slane %v2600_v58, 5  ;;  %v2610_v15 = vshll.u32 %v5333_v48, 16 }
  0xa6   : > { %4381 = vmatprep.subr.bf16.mxu1 %v4524_v11  ;;  %v2574_v2 = vrot.slane %v2573_v54, 4  ;;  %v2584_v16 = vrot.slane %v2583_v59, 4  ;;  %v3783_v62 = vrot.slane %v3775_v63, 9  ;;  %v2858_v10 = vrot.slane %v5178_v1, 5  ;;  %v3781_v59 = vld [vmem:[%s4664_s28 + $0x60] sm:$0xe] }
  0xa7   : > { %v2597_v19 = vor.u32 %v2596_v57, %v2593_v60  ;;  %v2612_v8 = vrot.slane %v2610_v15, 5  ;;  %v2861_v23 = vrot.slane %v5181_v46, 5  ;;  %v3787_v61 = vrot.slane %v3779_v14, 9  ;;  %v3782_v15 = vld [vmem:[%s4664_s28 + $0x6c] sm:$0xe] }
  0xa8   : > { %4338 = vmatmul.mubr.bf16.gmra.mxu1 %v3764_v49  ;;  %4356 = vmatpush3.bf16.msra.mxu0 %v5305_v12  ;;  %v2579_v6 = vsel %vm4707_vm2, %v2574_v2, %v2578_v4  ;;  %v2589_v1 = vsel %vm4707_vm2, %v2584_v16, %v2588_v55  ;;  %v2859_v28 = vsel %vm4880_vm5, %v3783_v62, %v2858_v10  ;;  %v2860_v9 = vrot.slane %v2858_v10, 4 }
  0xa9   : > { %4389 = vmatpush3.bf16.msra.mxu1 %v4524_v11  ;;  %v2606_v11 = vrot.slane %v2604_v13, 4  ;;  %4357 = vmatprep.subr.bf16.mxu0 %v5338_v38  ;;  %v3765_v31 = vcombine.low %v2579_v6, %v2589_v1  ;;  %v2598_v33 = vrot.slane %v2597_v19, 4  ;;  %v2886_v46 = vrot.slane %v5256_v29, 5 }
  0xaa   : > { %4382 = vmatprep.subr.bf16.mxu1 %v5305_v12  ;;  %v2889_v35 = vrot.slane %v5268_v30, 5  ;;  %v3784_v37 = vrot.slane %v3776_v45, 9  ;;  %v2865_v30 = vrot.slane %v5198_v18, 5  ;;  %v2868_v50 = vrot.slane %v5201_v20, 5  ;;  %v3778_v20 = vld [vmem:[%s4664_s28 + $0x3c] sm:$0xe] }
  0xab   : > { %v2607_v27 = vor.u32 %v2606_v11, %v2602_v7  ;;  %4310 = vmatmul.mubr.bf16.gmra.mxu0 %v4527_v5  ;;  %4341 = vmatprep.mubr.bf16.mxu1 %v3765_v31  ;;  %v2603_v40 = vsel %vm4707_vm2, %v2598_v33, %v2602_v7  ;;  %v2887_v29 = vsel %vm4880_vm5, %v3787_v61, %v2886_v46  ;;  %v2888_v52 = vrot.slane %v2886_v46, 4  ;;  %s3416_s28 = sshll.u32 %s4552_s15, 3 }
  0xac   : > { %4358 = vmatpush3.bf16.msra.mxu0 %v5338_v38  ;;  %v3788_v41 = vrot.slane %v3780_v34, 9  ;;  %v3785_v58 = vrot.slane %v3777_v39, 9  ;;  %v2872_v49 = vrot.slane %v5212_v42, 5  ;;  %v2867_v60 = vrot.slane %v2865_v30, 4  ;;  %p243_p6 = scmp.lt.s32.totalorder %s3416_s28, 15 }
  0xad   : > { %4390 = vmatpush3.bf16.msra.mxu1 %v5305_v12  ;;  %v2608_v47 = vrot.slane %v2607_v27, 4  ;;  %v2862_v12 = vsel %vm4880_vm5, %v2860_v9, %v2861_v23  ;;  %4359 = vmatprep.subr.bf16.mxu0 %v4529_v21  ;;  %v2890_v56 = vsel %vm4880_vm5, %v2888_v52, %v2889_v35  ;;  %v2897_v18 = vsel %vm4880_vm5, %v5316_v22, %v2896_v25 }
  0xae   : > { %4383 = vmatprep.subr.bf16.mxu1 %v5338_v38  ;;  %v3807_v4 = vcombine.low %v2859_v28, %v2862_v12  ;;  %v3811_v36 = vcombine.low %v2887_v29, %v2890_v56  ;;  %v2894_v42 = vsel %vm4880_vm5, %v3788_v41, %v2893_v17  ;;  %v2873_v13 = vsel %vm4880_vm5, %v3785_v58, %v2872_v49  ;;  %s5854_s28 = smov (!%p243_p6, %s3416_s28), 15 }
  0xaf   : > { %v2613_v55 = vsel %vm4707_vm2, %v2608_v47, %v2612_v8  ;;  %v2874_v63 = vrot.slane %v2872_v49, 4  ;;  %v2875_v2 = vrot.slane %v5222_v24, 5  ;;  %v2869_v44 = vsel %vm4880_vm5, %v2867_v60, %v2868_v50  ;;  %s3417_s15 = sshll.u32 %s5854_s28, 1 }
  0xb0   : > { %v3766_v54 = vcombine.low %v2603_v40, %v2613_v55  ;;  %4361 = vmatprep.mubr.bf16.mxu0 %v3807_v4  ;;  %4360 = vmatpush3.bf16.msra.mxu0 %v4529_v21  ;;  %v3789_v25 = vrot.slane %v3781_v59, 9  ;;  %v2900_v22 = vrot.slane %v5309_v53, 5  ;;  %v2903_v5 = vrot.slane %v5320_v26, 5  ;;  %s5543_s27 = sadd.s32 %s3418_s26, %s3417_s15 }
  0xb1   : > { %4391 = vmatpush3.bf16.msra.mxu1 %v5338_v38  ;;  %v2866_v38 = vsel %vm4880_vm5, %v3784_v37, %v2865_v30  ;;  %v2876_v17 = vsel %vm4880_vm5, %v2874_v63, %v2875_v2  ;;  %v3786_v57 = vrot.slane %v3778_v20, 9  ;;  %v2879_v7 = vrot.slane %v5232_v3, 5  ;;  %s3419_s29 = sshll.u32 %s5543_s27, 2 }
  0xb2   : > { %4384 = vmatprep.subr.bf16.mxu1 %v4529_v21  ;;  %4342 = vmatmul.mubr.bf16.gmra.mxu1 %v3766_v54  ;;  %v3808_v51 = vcombine.low %v2866_v38, %v2869_v44  ;;  %v3809_v16 = vcombine.low %v2873_v13, %v2876_v17  ;;  %v2901_v24 = vsel %vm4880_vm5, %v3789_v25, %v2900_v22  ;;  %v2902_v11 = vrot.slane %v2900_v22, 4  ;;  %s249_s5 = scalar_lea.vmem %s5778_s3, %s3419_s29  ;;  %s5720_s10 = scalar_lea.vmem %s5779_s4, %s3419_s29 }
  0xb3   : > { %4369 = vmatprep.mubr.bf16.mxu1 %v3811_v36  ;;  %v2882_v62 = vrot.slane %v5235_v0, 5  ;;  %v3812_v10 = vcombine.low %v2894_v42, %v2897_v18  ;;  %v2881_v53 = vrot.slane %v2879_v7, 4  ;;  %v2907_v26 = vrot.slane %v5330_v43, 5 }
  0xb4   : > { %4362 = vmatmul.mubr.bf16.vlgmr.msra.gmra.mxu0 %v3808_v51  ;;  %v2904_v14 = vsel %vm4880_vm5, %v2902_v11, %v2903_v5  ;;  %v2880_v3 = vsel %vm4880_vm5, %v3786_v57, %v2879_v7  ;;  %v3790_v6 = vrot.slane %v3782_v15, 9  ;;  %v2910_v19 = vrot.slane %v5333_v48, 5 }
  0xb5   : > { %4392 = vmatpush3.bf16.msra.mxu1 %v4529_v21  ;;  %4365 = vmatprep.mubr.bf16.mxu0 %v3809_v16  ;;  %v3813_v8 = vcombine.low %v2901_v24, %v2904_v14  ;;  %v2883_v21 = vsel %vm4880_vm5, %v2881_v53, %v2882_v62  ;;  %v2909_v0 = vrot.slane %v2907_v26, 4 }
  0xb6   : > { %v3810_v23 = vcombine.low %v2880_v3, %v2883_v21  ;;  %v2908_v43 = vsel %vm4880_vm5, %v3790_v6, %v2907_v26 }
  0xb7   : > { %v2911_v45 = vsel %vm4880_vm5, %v2909_v0, %v2910_v19 }
  0xb8   : > { %v3814_v1 = vcombine.low %v2908_v43, %v2911_v45 }
  0xba   : > { %4370 = vmatmul.mubr.bf16.vlgmr.msra.gmra.mxu1 %v3812_v10 }
  0xbb   : > { %4373 = vmatprep.mubr.bf16.mxu1 %v3813_v8 }
  0xbc   : > { %4366 = vmatmul.mubr.bf16.gmra.mxu0 %v3810_v23 }
  0xc2   : > { %4374 = vmatmul.mubr.bf16.gmra.mxu1 %v3814_v1 }
  0xef   : > { %v4107_v27 = vpop.f32.mrf.mxu0 }
  0xf0   : > { %v4139_v28 = vpop.f32.mrf.mxu1 }
  0xf1   : > { %v835_v48 = vadd.f32 %v4139_v28, %v4107_v27  ;;  %v633_v9 = vpop.f32.mrf.mxu0 }
  0xf2   : > { %v826_v31 = vpop.f32.mrf.mxu1 }
  0xf3   : > { %v827_v33 = vadd.f32 %v826_v31, %v633_v9  ;;  %v4108_v61 = vpop.f32.mrf.mxu0 }
  0xf4   : > { %v4140_v46 = vpop.f32.mrf.mxu1 }
  0xf5   : > { %v838_v34 = vadd.f32 %v4140_v46, %v4108_v61  ;;  %v636_v47 = vpop.f32.mrf.mxu0 }
  0xf6   : > { %v829_v12 = vpop.f32.mrf.mxu1 }
  0xf7   : > { %v830_v35 = vadd.f32 %v829_v12, %v636_v47  ;;  %v4111_v37 = vpop.f32.mrf.mxu0 }
  0xf8   : > { %v4143_v39 = vpop.f32.mrf.mxu1 }
  0xf9   : > { %v851_v40 = vadd.f32 %v4143_v39, %v4111_v37  ;;  %v649_v32 = vpop.f32.mrf.mxu0 }
  0xfa   : > { %v842_v4 = vpop.f32.mrf.mxu1 }
  0xfb   : > { %v843_v29 = vadd.f32 %v842_v4, %v649_v32  ;;  %v4112_v52 = vpop.f32.mrf.mxu0 }
  0xfc   : > { %v4144_v55 = vpop.f32.mrf.mxu1 }
  0xfd   : > { %v854_v30 = vadd.f32 %v4144_v55, %v4112_v52  ;;  %v652_v50 = vpop.f32.mrf.mxu0 }
  0xfe   : > { %v845_v41 = vpop.f32.mrf.mxu1 }
  0xff   : > { %v846_v54 = vadd.f32 %v845_v41, %v652_v50  ;;  %v4115_v58 = vpop.f32.mrf.mxu0 }
 0x100   : > { %v4147_v56 = vpop.f32.mrf.mxu1 }
 0x101   : > { %v867_v59 = vadd.f32 %v4147_v56, %v4115_v58  ;;  %v665_v36 = vpop.f32.mrf.mxu0 }
 0x102   : > { %v858_v49 = vpop.f32.mrf.mxu1 }
 0x103   : > { %v859_v60 = vadd.f32 %v858_v49, %v665_v36  ;;  %v4116_v18 = vpop.f32.mrf.mxu0 }
 0x104   : > { %v4148_v38 = vpop.f32.mrf.mxu1 }
 0x105   : > { %v870_v42 = vadd.f32 %v4148_v38, %v4116_v18  ;;  %v668_v13 = vpop.f32.mrf.mxu0 }
 0x106   : > { %v861_v20 = vpop.f32.mrf.mxu1 }
 0x107   : > { %v862_v2 = vadd.f32 %v861_v20, %v668_v13  ;;  %v4119_v25 = vpop.f32.mrf.mxu0 }
 0x108   : > { %v4151_v63 = vpop.f32.mrf.mxu1 }
 0x109   : > { %v883_v5 = vadd.f32 %v4151_v63, %v4119_v25  ;;  %v681_v51 = vpop.f32.mrf.mxu0 }
 0x10a   : > { %v874_v44 = vpop.f32.mrf.mxu1 }
 0x10b   : > { %v875_v57 = vadd.f32 %v874_v44, %v681_v51  ;;  %v4120_v7 = vpop.f32.mrf.mxu0 }
 0x10c   : > { %v4152_v22 = vpop.f32.mrf.mxu1 }
 0x10d   : > { %v886_v16 = vadd.f32 %v4152_v22, %v4120_v7  ;;  %v684_v24 = vpop.f32.mrf.mxu0 }
 0x10e   : > { %v877_v17 = vpop.f32.mrf.mxu1 }
 0x10f   : > { %v5424_v62 = vadd.f32 %v877_v17, %v684_v24  ;;  %v4171_v10 = vpop.f32.mrf.mxu0 }
 0x110   : > { %v4203_v15 = vpop.f32.mrf.mxu1  ;;  %v1168_v26 = vadd.f32 %v4171_v10, %v835_v48 }
 0x111   : > { %v1103_v14 = vpop.f32.mrf.mxu0 }
 0x112   : > { %v1349_v11 = vpop.f32.mrf.mxu1  ;;  %v5426_v6 = vadd.f32 %v4203_v15, %v1168_v26  ;;  %v1166_v19 = vadd.f32 %v1103_v14, %v827_v33 }
 0x113   : > { %v4172_v8 = vpop.f32.mrf.mxu0 }
 0x114   : > { %v4204_v53 = vpop.f32.mrf.mxu1  ;;  %v5428_v0 = vadd.f32 %v1349_v11, %v1166_v19  ;;  %v1169_v23 = vadd.f32 %v4172_v8, %v838_v34 }
 0x115   : > { %v1106_v43 = vpop.f32.mrf.mxu0 }
 0x116   : > { %v1352_v3 = vpop.f32.mrf.mxu1  ;;  %v5430_v1 = vadd.f32 %v4204_v53, %v1169_v23  ;;  %v1167_v27 = vadd.f32 %v1106_v43, %v830_v35 }
 0x117   : > { %v4175_v28 = vpop.f32.mrf.mxu0 }
 0x118   : > { %v4207_v21 = vpop.f32.mrf.mxu1  ;;  %v5432_v31 = vadd.f32 %v1352_v3, %v1167_v27  ;;  %v1172_v48 = vadd.f32 %v4175_v28, %v851_v40 }
 0x119   : > { %v1119_v61 = vpop.f32.mrf.mxu0 }
 0x11a   : > { %v1365_v45 = vpop.f32.mrf.mxu1  ;;  %v5434_v47 = vadd.f32 %v4207_v21, %v1172_v48  ;;  %v1170_v33 = vadd.f32 %v1119_v61, %v843_v29 }
 0x11b   : > { %v4176_v12 = vpop.f32.mrf.mxu0 }
 0x11c   : > { %v4208_v9 = vpop.f32.mrf.mxu1  ;;  %v5436_v39 = vadd.f32 %v1365_v45, %v1170_v33  ;;  %v1173_v34 = vadd.f32 %v4176_v12, %v854_v30 }
 0x11d   : > { %v1122_v32 = vpop.f32.mrf.mxu0 }
 0x11e   : > { %v1368_v46 = vpop.f32.mrf.mxu1  ;;  %v5438_v52 = vadd.f32 %v4208_v9, %v1173_v34  ;;  %v1171_v35 = vadd.f32 %v1122_v32, %v846_v54 }
 0x11f   : > { %v4179_v55 = vpop.f32.mrf.mxu0 }
 0x120   : > { %v4211_v37 = vpop.f32.mrf.mxu1  ;;  %v5440_v41 = vadd.f32 %v1368_v46, %v1171_v35  ;;  %v1176_v40 = vadd.f32 %v4179_v55, %v867_v59 }
 0x121   : > { %v1135_v56 = vpop.f32.mrf.mxu0 }
 0x122   : > { %v1381_v4 = vpop.f32.mrf.mxu1  ;;  %v5442_v49 = vadd.f32 %v4211_v37, %v1176_v40  ;;  %v1174_v29 = vadd.f32 %v1135_v56, %v859_v60 }
 0x123   : > { %v4180_v36 = vpop.f32.mrf.mxu0 }
 0x124   : > { %v4212_v50 = vpop.f32.mrf.mxu1  ;;  %v5444_v18 = vadd.f32 %v1381_v4, %v1174_v29  ;;  %v1177_v30 = vadd.f32 %v4180_v36, %v870_v42 }
 0x125   : > { %v1138_v20 = vpop.f32.mrf.mxu0 }
 0x126   : > { %v1384_v58 = vpop.f32.mrf.mxu1  ;;  %v5446_v63 = vadd.f32 %v4212_v50, %v1177_v30  ;;  %v1175_v54 = vadd.f32 %v1138_v20, %v862_v2 }
 0x127   : > { %v4183_v44 = vpop.f32.mrf.mxu0 }
 0x128   : > { %v4215_v38 = vpop.f32.mrf.mxu1  ;;  %v5448_v22 = vadd.f32 %v1384_v58, %v1175_v54  ;;  %v1180_v59 = vadd.f32 %v4183_v44, %v883_v5 }
 0x129   : > { %v1151_v51 = vpop.f32.mrf.mxu0 }
 0x12a   : > { %v1397_v13 = vpop.f32.mrf.mxu1  ;;  %v5450_v7 = vadd.f32 %v4215_v38, %v1180_v59  ;;  %v1178_v60 = vadd.f32 %v1151_v51, %v875_v57 }
 0x12b   : > { %v4184_v15 = vpop.f32.mrf.mxu0 }
 0x12c   : > { %v4216_v25 = vpop.f32.mrf.mxu1  ;;  %v5454_v11 = vadd.f32 %v1397_v13, %v1178_v60  ;;  %v1181_v42 = vadd.f32 %v4184_v15, %v886_v16 }
 0x12d   : > { %v1154_v10 = vpop.f32.mrf.mxu0 }
 0x12e   : > { %v1400_v17 = vpop.f32.mrf.mxu1  ;;  %v5458_v2 = vadd.f32 %v4216_v25, %v1181_v42  ;;  %v1179_v26 = vadd.f32 %v1154_v10, %v5424_v62 }
 0x12f   : > { %v5461_v14 = vpop.f32.mrf.mxu0 }
 0x130   : > { %v5452_v24 = vpop.f32.mrf.mxu1  ;;  %v5463_v5 = vadd.f32 %v1400_v17, %v1179_v26 }
 0x131   : > { %v5467_v57 = vpop.f32.mrf.mxu0 }
 0x132   : > { %v5456_v53 = vpop.f32.mrf.mxu1 }
 0x133   : > { %v5469_v19 = vpop.f32.mrf.mxu0 }
 0x134   : > { %v5465_v3 = vpop.f32.mrf.mxu1 }
 0x135   : > { %v5473_v16 = vpop.f32.mrf.mxu0 }
 0x136   : > { %v5471_v8 = vpop.f32.mrf.mxu1 }
 0x138   : > { %v5475_v21 = vpop.f32.mrf.mxu0  ;;  %v5477_v23 = vpop.f32.mrf.mxu1 }
 0x13a   : > { %v5479_v43 = vpop.f32.mrf.mxu0  ;;  %v5481_v62 = vpop.f32.mrf.mxu1 }
 0x13c   : > { %v5483_v45 = vpop.f32.mrf.mxu0  ;;  %v5485_v27 = vpop.f32.mrf.mxu1 }
 0x13e   : > { %v5487_v28 = vpop.f32.mrf.mxu0  ;;  %v5489_v9 = vpop.f32.mrf.mxu1 }
 0x140   : > { %v5491_v48 = vpop.f32.mrf.mxu0  ;;  %v5493_v61 = vpop.f32.mrf.mxu1 }
 0x142   : > { %v5495_v46 = vpop.f32.mrf.mxu0  ;;  %v5497_v33 = vpop.f32.mrf.mxu1 }
 0x144   : > { %v5499_v12 = vpop.f32.mrf.mxu0  ;;  %v5501_v37 = vpop.f32.mrf.mxu1 }
 0x146   : > { %v5503_v34 = vpop.f32.mrf.mxu0  ;;  %v5505_v32 = vpop.f32.mrf.mxu1 }
 0x14b   : > { %v5507_v4 = vpop.f32.mrf.mxu0  ;;  %v5509_v35 = vpop.f32.mrf.mxu1 }
 0x14c   : > { %5784 = vst [vmem:[#allocation2_spill] sm:$0xff] %v5509_v35 }
 0x14d   : > { %v5511_v55 = vpop.f32.mrf.mxu0  ;;  %v5513_v50 = vpop.f32.mrf.mxu1 }
 0x14e   : > { %5785 = vst [vmem:[#allocation3_spill] sm:$0xff] %v5513_v50  ;;  %v1841_v50 = vadd.f32 %v5469_v19, %v5430_v1  ;;  %v1844_v1 = vadd.f32 %v5475_v21, %v5434_v47  ;;  %v1848_v19 = vadd.f32 %v5491_v48, %v5442_v49  ;;  %v1850_v49 = vadd.f32 %v5511_v55, %v5454_v11 }
 0x14f   : > { %v5515_v40 = vpop.f32.mrf.mxu0  ;;  %v5517_v56 = vpop.f32.mrf.mxu1 }
 0x150   : > { %5786 = vst [vmem:[#allocation4_spill] sm:$0xff] %v5517_v56  ;;  %v5588_v56 = vld [vmem:[%s249_s5 + $0x10] sm:$0xff]   ;;  %v2139_v21 = vadd.f32 %v5465_v3, %v1841_v50 }
 0x151   : > { %v5520_v58 = vpop.f32.mrf.mxu0  ;;  %v5522_v29 = vpop.f32.mrf.mxu1 }
 0x152   : > { %5787 = vst [vmem:[#allocation5_spill] sm:$0xff] %v5522_v29  ;;  %v5579_v29 = vld [vmem:[%s249_s5 + $0x18] sm:$0xff]  }
 0x153   : > { %v5524_v36 = vpop.f32.mrf.mxu0 }
 0x155   : > { %v5526_v38 = vpop.f32.mrf.mxu0 }
 0x157   : > { %v5530_v20 = vpop.f32.mrf.mxu0 }
 0x158   : > { %v5528_v30 = vpop.f32.mrf.mxu1 }
 0x159   : > { %5788 = vst [vmem:[#allocation6_spill] sm:$0xff] %v5528_v30  ;;  %v5534_v54 = vpop.f32.mrf.mxu0  ;;  %v1842_v30 = vadd.f32 %v5479_v43, %v5436_v39  ;;  %v1846_v39 = vadd.f32 %v5495_v46, %v5444_v18  ;;  %v2142_v43 = vadd.f32 %v5477_v23, %v1844_v1  ;;  %v1851_v23 = vadd.f32 %v5520_v58, %v5463_v5  ;;  %v5815_v1 = vld [vmem:[#allocation5_spill] sm:$0xff] }
 0x15a   : > { %v5532_v13 = vpop.f32.mrf.mxu1  ;;  %5790 = vst [vmem:[#allocation8_spill] sm:$0xff] %v5534_v54  ;;  %v2385_v46 = vadd.f32 %v5530_v20, %v2139_v21 }
 0x15b   : > { %5789 = vst [vmem:[#allocation7_spill] sm:$0xff] %v5532_v13  ;;  %v5541_v59 = vpop.f32.mrf.mxu0  ;;  %v2140_v18 = vadd.f32 %v5481_v62, %v1842_v30  ;;  %v2144_v62 = vadd.f32 %v5497_v33, %v1846_v39 }
 0x15c   : > { %v5536_v44 = vpop.f32.mrf.mxu1  ;;  %5793 = vst [vmem:[#allocation11_spill] sm:$0xff] %v5541_v59  ;;  %v5586_v59 = vld [vmem:[%s249_s5 + $0x38] sm:$0xff]  }
 0x15d   : > { %5791 = vst [vmem:[#allocation9_spill] sm:$0xff] %v5536_v44  ;;  %v5545_v51 = vpop.f32.mrf.mxu0 }
 0x15e   : > { %v5539_v25 = vpop.f32.mrf.mxu1  ;;  %5794 = vst [vmem:[#allocation12_spill] sm:$0xff] %v5545_v51 }
 0x15f   : > { %5792 = vst [vmem:[#allocation10_spill] sm:$0xff] %v5539_v25  ;;  %v5549_v60 = vpop.f32.mrf.mxu0 }
 0x160   : > { %v5547_v17 = vpop.f32.mrf.mxu1  ;;  %5796 = vst [vmem:[#allocation14_spill] sm:$0xff] %v5549_v60  ;;  %v5571_v60 = vld [vmem:[%s249_s5 + $0x28] sm:$0xff]   ;;  %v5808_v50 = vld [vmem:[#allocation6_spill] sm:$0xff] }
 0x161   : > { %5795 = vst [vmem:[#allocation13_spill] sm:$0xff] %v5547_v17  ;;  %v5554_v42 = vpop.f32.mrf.mxu0  ;;  %v5569_v17 = vld [vmem:[%s249_s5 + $0x8] sm:$0xff]  }
 0x162   : > { %v5552_v15 = vpop.f32.mrf.mxu1  ;;  %5798 = vst [vmem:[#allocation16_spill] sm:$0xff] %v5554_v42  ;;  %v5575_v42 = vld [vmem:[%s249_s5 + $0x20] sm:$0xff]  }
 0x163   : > { %5797 = vst [vmem:[#allocation15_spill] sm:$0xff] %v5552_v15  ;;  %v5563_v26 = vpop.f32.mrf.mxu0  ;;  %v5573_v15 = vld [vmem:[%s249_s5] sm:$0xff]   ;;  %v5812_v20 = vld [vmem:[#allocation11_spill] sm:$0xff] }
 0x164   : > { %v5561_v10 = vpop.f32.mrf.mxu1  ;;  %5800 = vst [vmem:[#allocation18_spill] sm:$0xff] %v5563_v26  ;;  %v5590_v26 = vld [vmem:[%s249_s5 + $0x30] sm:$0xff]   ;;  %v5817_v21 = vld [vmem:[#allocation9_spill] sm:$0xff] }
 0x165   : > { %5799 = vst [vmem:[#allocation17_spill] sm:$0xff] %v5561_v10  ;;  %v5567_v44 = vpop.f32.mrf.mxu0  ;;  %v5813_v33 = vld [vmem:[#allocation12_spill] sm:$0xff]  ;;  %v2811_v39 = vadd.f32 %v5817_v21, %v2385_v46 }
 0x166   : > { %v5565_v25 = vpop.f32.mrf.mxu1  ;;  %5802 = vst [vmem:[#allocation20_spill] sm:$0xff] %v5567_v44  ;;  %v1838_v44 = vadd.f32 %v5467_v57, %v5428_v0  ;;  %v1839_v0 = vadd.f32 %v5473_v16, %v5432_v31  ;;  %v3870_v31 = vunpack.c.h.bf16 %v5588_v56 }
 0x167   : > { %5801 = vst [vmem:[#allocation19_spill] sm:$0xff] %v5565_v25  ;;  %v5577_v13 = vpop.f32.mrf.mxu0  ;;  %v1840_v25 = vadd.f32 %v5461_v14, %v5426_v6  ;;  %v1843_v6 = vadd.f32 %v5487_v28, %v5440_v41  ;;  %v1847_v41 = vadd.f32 %v5503_v34, %v5448_v22  ;;  %v1853_v22 = vadd.f32 %v5515_v40, %v5458_v2  ;;  %v5809_v40 = vld [vmem:[#allocation8_spill] sm:$0xff] }
 0x168   : > { %5803 = vst [vmem:[#allocation21_spill] sm:$0xff] %v5577_v13  ;;  %v5581_v51 = vpop.f32.mrf.mxu1  ;;  %v2136_v16 = vadd.f32 %v5456_v53, %v1838_v44  ;;  %v2137_v3 = vadd.f32 %v5471_v8, %v1839_v0  ;;  %v2146_v8 = vadd.f32 %v5493_v61, %v1848_v19  ;;  %v2388_v44 = vadd.f32 %v5812_v20, %v2142_v43  ;;  %v5673_v0 = vld [vmem:[%s5777_s2] ss:$0 sm:$0xff]  ;;  %v5824_v46 = vld [vmem:[#allocation13_spill] sm:$0xff] }
 0x169   : > { %5804 = vst [vmem:[#allocation22_spill] sm:$0xff] %v5581_v51  ;;  %v5592_v54 = vpop.f32.mrf.mxu0  ;;  %v1845_v51 = vadd.f32 %v5483_v45, %v5438_v52  ;;  %v2138_v47 = vadd.f32 %v5452_v24, %v1840_v25  ;;  %v1849_v52 = vadd.f32 %v5499_v12, %v5446_v63  ;;  %v1852_v24 = vadd.f32 %v5507_v4, %v5450_v7  ;;  %v5806_v12 = vld [vmem:[#allocation2_spill] sm:$0xff]  ;;  %v5807_v4 = vld [vmem:[#allocation3_spill] sm:$0xff] }
 0x16a   : > { %5805 = vst [vmem:[#allocation23_spill] sm:$0xff] %v5592_v54  ;;  %v5604_v35 = vpop.f32.mrf.mxu1  ;;  %v3878_v54 = vunpack.c.h.bf16 %v5575_v42  ;;  %v2141_v28 = vadd.f32 %v5489_v9, %v1843_v6  ;;  %v2382_v11 = vadd.f32 %v5526_v38, %v2136_v16  ;;  %v2145_v9 = vadd.f32 %v5505_v32, %v1847_v41  ;;  %v5811_v38 = vld [vmem:[#allocation4_spill] sm:$0xff]  ;;  %v5818_v41 = vld [vmem:[#allocation14_spill] sm:$0xff] }
 0x16b   : > { %v5607_v13 = vpop.f32.mrf.mxu0  ;;  %v2384_v45 = vadd.f32 %v5524_v36, %v2138_v47  ;;  %v2143_v63 = vadd.f32 %v5485_v27, %v1845_v51  ;;  %v2147_v27 = vadd.f32 %v5501_v37, %v1849_v52  ;;  %v2150_v34 = vadd.f32 %v5806_v12, %v1852_v24  ;;  %v5810_v5 = vld [vmem:[#allocation18_spill] sm:$0xff]  ;;  %v5816_v47 = vld [vmem:[#allocation7_spill] sm:$0xff] }
 0x16c   : > { %v5617_v14 = vpop.f32.mrf.mxu1  ;;  %v2148_v55 = vadd.f32 %v5807_v4, %v1850_v49  ;;  %v2383_v36 = vadd.f32 %v5809_v40, %v2137_v3  ;;  %v2392_v58 = vadd.f32 %v5810_v5, %v2146_v8  ;;  %v2151_v30 = vadd.f32 %v5811_v38, %v1853_v22  ;;  %v5819_v3 = vld [vmem:[#allocation16_spill] sm:$0xff]  ;;  %v5822_v12 = vld [vmem:[#allocation10_spill] sm:$0xff]  ;;  %v5825_v5 = vld [vmem:[#allocation15_spill] sm:$0xff] }
 0x16d   : > { %v2367_v10 = vpop.f32.mrf.mxu0  ;;  %v2810_v61 = vadd.f32 %v5808_v50, %v2384_v45  ;;  %v2386_v25 = vadd.f32 %v5813_v33, %v2140_v18  ;;  %v5814_v37 = vld [vmem:[#allocation20_spill] sm:$0xff]  ;;  %v2149_v19 = vadd.f32 %v5815_v1, %v1851_v23  ;;  %v2808_v16 = vadd.f32 %v5816_v47, %v2382_v11 }
 0x16e   : > { %v5633_v57 = vpop.f32.mrf.mxu1  ;;  %v2390_v51 = vadd.f32 %v5814_v37, %v2144_v62  ;;  %v2389_v24 = vadd.f32 %v5818_v41, %v2143_v63  ;;  %v2387_v43 = vadd.f32 %v5819_v3, %v2141_v28  ;;  %v2809_v4 = vadd.f32 %v5822_v12, %v2383_v36  ;;  %v5827_v1 = vld [vmem:[#allocation19_spill] sm:$0xff] }
 0x16f   : > { %v4312_v53 = vpop.f32.mrf.mxu0  ;;  %v5820_v49 = vld [vmem:[#allocation21_spill] sm:$0xff]  ;;  %v2812_v63 = vadd.f32 %v5825_v5, %v2386_v25  ;;  %v2394_v20 = vadd.f32 %v2367_v10, %v2148_v55 }
 0x170   : > { %v2393_v45 = vadd.f32 %v5820_v49, %v2147_v27  ;;  %v5823_v50 = vld [vmem:[#allocation22_spill] sm:$0xff]  ;;  %v2816_v28 = vadd.f32 %v5604_v35, %v2390_v51  ;;  %v2396_v27 = vadd.f32 %v5607_v13, %v2150_v34  ;;  %v5694_v47 = vadd.f32 %v5827_v1, %v2387_v43 }
 0x171   : > { %v2370_v48 = vpop.f32.mrf.mxu0  ;;  %v5821_v18 = vld [vmem:[#allocation23_spill] sm:$0xff]  ;;  %v2818_v23 = vadd.f32 %v5823_v50, %v2392_v58  ;;  %v2397_v51 = vadd.f32 %v4312_v53, %v2151_v30  ;;  %v5828_v13 = vunpack.c.l.bf16 %v5569_v17  ;;  %v5830_v30 = vunpack.c.l.bf16 %v5571_v60 }
 0x172   : > { %v4343_v7 = vpop.f32.mrf.mxu1  ;;  %v2391_v22 = vadd.f32 %v5821_v18, %v2145_v9  ;;  %v5831_v18 = vunpack.c.h.bf16 %v5569_v17 }
 0x173   : > { %v2822_v21 = vadd.f32 %v4343_v7, %v2396_v27  ;;  %v5833_v27 = vunpack.c.l.bf16 %v5575_v42 }
 0x174   : > { %v2793_v2 = vpop.f32.mrf.mxu1  ;;  %v4363_v6 = vpop.f32.mrf.mxu0  ;;  %v2817_v25 = vadd.f32 %v5633_v57, %v2391_v22  ;;  %v2395_v57 = vadd.f32 %v2370_v48, %v2149_v19 }
 0x175   : > { %v3108_v52 = vadd.f32 %v4363_v6, %v2810_v61  ;;  %v2814_v61 = vadd.f32 %v5824_v46, %v2388_v44  ;;  %v5826_v6 = vld [vmem:[#allocation17_spill] sm:$0xff]  ;;  %v2819_v44 = vadd.f32 %v5617_v14, %v2393_v45  ;;  %v2820_v43 = vadd.f32 %v2793_v2, %v2394_v20 }
 0x176   : > { %v4344_v32 = vpop.f32.mrf.mxu1  ;;  %v3043_v62 = vpop.f32.mrf.mxu0  ;;  %v2815_v58 = vadd.f32 %v5826_v6, %v2389_v24 }
 0x177   : > { %v3131_v11 = vadd.f32 %v5673_v0, %v3108_v52  ;;  %v3106_v40 = vadd.f32 %v3043_v62, %v2808_v16 }
 0x178   : > { %v5682_v8 = vpop.f32.mrf.mxu1  ;;  %v4364_v9 = vpop.f32.mrf.mxu0 }
 0x179   : > { %v3129_v37 = vadd.f32 %v5673_v0, %v3106_v40  ;;  %v3109_v36 = vadd.f32 %v4364_v9, %v2811_v39  ;;  %v3179_v34 = vadd.f32 %v5828_v13, %v3131_v11  ;;  %v5829_v39 = vunpack.c.l.bf16 %v5573_v15 }
 0x17a   : > { %v4371_v38 = vpop.f32.mrf.mxu1  ;;  %v3046_v35 = vpop.f32.mrf.mxu0  ;;  %v5832_v40 = vunpack.c.h.bf16 %v5573_v15 }
 0x17b   : > { %v3116_v33 = vadd.f32 %v4371_v38, %v2818_v23  ;;  %v3177_v52 = vadd.f32 %v5829_v39, %v3129_v37  ;;  %v3132_v41 = vadd.f32 %v5673_v0, %v3109_v36  ;;  %v3107_v3 = vadd.f32 %v3046_v35, %v2809_v4 }
 0x17c   : > { %v3075_v16 = vpop.f32.mrf.mxu1  ;;  %v4367_v14 = vpop.f32.mrf.mxu0  ;;  %v2823_v23 = vadd.f32 %v4344_v32, %v2397_v51  ;;  %v3195_v4 = vmax.f32 %v3179_v34, 0.0  ;;  %v5834_v32 = vunpack.c.h.bf16 %v5571_v60 }
 0x17d   : > { %v3139_v10 = vadd.f32 %v5673_v0, %v3116_v33  ;;  %v3114_v55 = vadd.f32 %v3075_v16, %v2816_v28  ;;  %v3180_v22 = vadd.f32 %v5831_v18, %v3132_v41  ;;  %v3130_v7 = vadd.f32 %v5673_v0, %v3107_v3 }
 0x17e   : > { %v4372_v24 = vpop.f32.mrf.mxu1  ;;  %v3112_v12 = vadd.f32 %v4367_v14, %v2814_v61  ;;  %v3059_v50 = vpop.f32.mrf.mxu0  ;;  %v3193_v19 = vmax.f32 %v3177_v52, 0.0  ;;  %v2821_v16 = vadd.f32 %v5682_v8, %v2395_v57  ;;  %v3886_v57 = vunpack.c.h.bf16 %v5590_v26 }
 0x17f   : > { %v3137_v49 = vadd.f32 %v5673_v0, %v3114_v55  ;;  %v3117_v53 = vadd.f32 %v4372_v24, %v2819_v44  ;;  %v3187_v45 = vadd.f32 %v5830_v30, %v3139_v10  ;;  %v3196_v11 = vmax.f32 %v3180_v22, 0.0 }
 0x180   : > { %v3078_v62 = vpop.f32.mrf.mxu1  ;;  %v3178_v46 = vadd.f32 %v5832_v40, %v3130_v7  ;;  %v3110_v28 = vadd.f32 %v3059_v50, %v2812_v63  ;;  %v4368_v17 = vpop.f32.mrf.mxu0  ;;  %v3135_v37 = vadd.f32 %v5673_v0, %v3112_v12  ;;  %v5838_v30 = vunpack.c.h.bf16 %v5579_v29 }
 0x181   : > { %v3140_v2 = vadd.f32 %v5673_v0, %v3117_v53  ;;  %v3115_v48 = vadd.f32 %v3078_v62, %v2817_v25  ;;  %v3185_v38 = vadd.f32 %v5833_v27, %v3137_v49  ;;  %v3203_v20 = vmax.f32 %v3187_v45, 0.0 }
 0x182   : > { %v4375_v5 = vpop.f32.mrf.mxu1  ;;  %v3899_v33 = vpack.c.bf16 %v3196_v11, %v3195_v4  ;;  %v3194_v63 = vmax.f32 %v3178_v46, 0.0  ;;  %v3133_v44 = vadd.f32 %v5673_v0, %v3110_v28  ;;  %v3062_v60 = vpop.f32.mrf.mxu0  ;;  %v3113_v13 = vadd.f32 %v4368_v17, %v2815_v58 }
 0x183   : > { %v3188_v61 = vadd.f32 %v5834_v32, %v3140_v2  ;;  %v3138_v9 = vadd.f32 %v5673_v0, %v3115_v48  ;;  %v3120_v15 = vadd.f32 %v4375_v5, %v2822_v21  ;;  %v3201_v10 = vmax.f32 %v3185_v38, 0.0 }
 0x184   : > { %v3091_v36 = vpop.f32.mrf.mxu1  ;;  %3938 = vst [vmem:[%s5720_s10 + $0x8] sm:$0xff] %v3899_v33   ;;  %v3894_v35 = vpack.c.bf16 %v3194_v63, %v3193_v19  ;;  %v3136_v52 = vadd.f32 %v5673_v0, %v3113_v13  ;;  %v3111_v41 = vadd.f32 %v3062_v60, %v5694_v47  ;;  %v5836_v58 = vunpack.c.l.bf16 %v5588_v56 }
 0x185   : > { %v3204_v6 = vmax.f32 %v3188_v61, 0.0  ;;  %v3186_v1 = vadd.f32 %v3878_v54, %v3138_v9  ;;  %v3118_v25 = vadd.f32 %v3091_v36, %v2820_v43  ;;  %v3143_v51 = vadd.f32 %v5673_v0, %v3120_v15 }
 0x186   : > { %v4376_v34 = vpop.f32.mrf.mxu1  ;;  %3895 = vst [vmem:[%s5720_s10] sm:$0xff] %v3894_v35   ;;  %v5835_v54 = vunpack.c.l.bf16 %v5579_v29  ;;  %v3181_v14 = vadd.f32 %v5836_v58, %v3133_v44  ;;  %v5837_v49 = vunpack.c.l.bf16 %v5586_v59  ;;  %v3184_v45 = vadd.f32 %v5838_v30, %v3136_v52 }
 0x187   : > { %v3919_v55 = vpack.c.bf16 %v3204_v6, %v3203_v20  ;;  %v3202_v21 = vmax.f32 %v3186_v1, 0.0  ;;  %v3141_v39 = vadd.f32 %v5673_v0, %v3118_v25  ;;  %v3121_v8 = vadd.f32 %v4376_v34, %v2823_v23 }
 0x188   : > { %v3183_v42 = vadd.f32 %v5835_v54, %v3135_v37  ;;  %v3094_v24 = vpop.f32.mrf.mxu1  ;;  %v3191_v53 = vadd.f32 %v5837_v49, %v3143_v51  ;;  %v3134_v22 = vadd.f32 %v5673_v0, %v3111_v41  ;;  %v5839_v47 = vunpack.c.l.bf16 %v5590_v26 }
 0x189   : > { %3942 = vst [vmem:[%s5720_s10 + $0x28] sm:$0xff] %v3919_v55   ;;  %v3914_v3 = vpack.c.bf16 %v3202_v21, %v3201_v10  ;;  %v3119_v43 = vadd.f32 %v3094_v24, %v2821_v16  ;;  %v3144_v18 = vadd.f32 %v5673_v0, %v3121_v8  ;;  %v3200_v50 = vmax.f32 %v3184_v45, 0.0 }
 0x18a   : > { %v3189_v7 = vadd.f32 %v5839_v47, %v3141_v39  ;;  %v3199_v12 = vmax.f32 %v3183_v42, 0.0  ;;  %v5840_v23 = vunpack.c.h.bf16 %v5586_v59  ;;  %v3182_v29 = vadd.f32 %v3870_v31, %v3134_v22 }
 0x18b   : > { %3941 = vst [vmem:[%s5720_s10 + $0x20] sm:$0xff] %v3914_v3   ;;  %v3142_v62 = vadd.f32 %v5673_v0, %v3119_v43  ;;  %v3197_v2 = vmax.f32 %v3181_v14, 0.0  ;;  %v3207_v19 = vmax.f32 %v3191_v53, 0.0 }
 0x18c   : > { %v3192_v4 = vadd.f32 %v5840_v23, %v3144_v18  ;;  %v3909_v11 = vpack.c.bf16 %v3200_v50, %v3199_v12  ;;  %v3198_v26 = vmax.f32 %v3182_v29, 0.0  ;;  %v3205_v46 = vmax.f32 %v3189_v7, 0.0 }
 0x18d   : > { %v3190_v48 = vadd.f32 %v3886_v57, %v3142_v62 }
 0x18e   : > { %v3208_v40 = vmax.f32 %v3192_v4, 0.0  ;;  %3940 = vst [vmem:[%s5720_s10 + $0x18] sm:$0xff] %v3909_v11   ;;  %v3904_v28 = vpack.c.bf16 %v3198_v26, %v3197_v2 }
 0x18f   : > { %v3206_v5 = vmax.f32 %v3190_v48, 0.0 }
 0x190   : > { %v3929_v0 = vpack.c.bf16 %v3208_v40, %v3207_v19  ;;  %3939 = vst [vmem:[%s5720_s10 + $0x10] sm:$0xff] %v3904_v28  }
 0x191   : > { %v3924_v17 = vpack.c.bf16 %v3206_v5, %v3205_v46 }
 0x192   : > { %3944 = vst [vmem:[%s5720_s10 + $0x38] sm:$0xff] %v3929_v0  }
 0x193   : > { %3943 = vst [vmem:[%s5720_s10 + $0x30] sm:$0xff] %v3924_v17  }
 0x194 PF: > { %s14_s19 = sadd.s32 1, %s4568_s19   ;;  %s5841_s15 = smov %s4560_s17 }
 0x195   : > { %p11_p7 = scmp.ge.s32.totalorder %s14_s19, 6   ;;  %s5842_s16 = smov %s4564_s18 }
 0x196   : > { %s5843_s17 = smov %s5846_s20  ;;  %s5844_s18 = smov %s5850_s21 }
 0x197   :  { %13 = sbr.rel (!%p11_p7) target bundleno = 3 (0x3), region = 80 }

</bundles_post_ra>
